<compile_context>
chip_gen: v7x
topology: tpu7x:2x2x1
jax: 0.10.0
libtpu: 0.0.40
codegen_flags: <defaults>
</compile_context>

<pallas_src>
import functools

import jax
import jax.numpy as jnp
from jax import lax
from jax.experimental import pallas as pl
from jax.experimental.pallas import tpu as pltpu

EPS = 1e-5
VMEM_LIMIT_BYTES = 48 * 1024 * 1024  # below v7x's 64 MiB physical; ample on v5e/v6e


# ----------------------------------------------------------------------------
# Tiling helpers
# ----------------------------------------------------------------------------
def _round_up(x, m):
    return (x + m - 1) // m * m


def _sublane_multiple(dtype):
    return {4: 8, 2: 16, 1: 32}.get(jnp.dtype(dtype).itemsize, 8)


def _choose_tile_rows(rows, widest_cols, dtype, target_bytes=2 << 20, cap=1024):
    """Row-tile so each (tile_rows, widest_cols) block is ~target_bytes."""
    sub = _sublane_multiple(dtype)
    bytes_per_row = max(1, widest_cols) * jnp.dtype(dtype).itemsize
    tr = max(sub, min(cap, target_bytes // bytes_per_row))
    tr = min(tr, _round_up(rows, sub))
    return _round_up(tr, sub)


def _choose_tile_cols(n, cap=512):
    if n <= cap:
        return n
    for tn in (512, 384, 256, 128):
        if n % tn == 0:
            return tn
    return n


# ----------------------------------------------------------------------------
# Exact GELU (erf via Abramowitz & Stegun 7.1.26, max abs err ~1.5e-7: matches
# torch's exact erf-based GELU to float32 precision using only exp/mul/add).
# ----------------------------------------------------------------------------
_SQRT_HALF = 0.7071067811865476


def _erf_poly(x):
    p = 0.3275911
    a1, a2, a3, a4, a5 = 0.254829592, -0.284496736, 1.421413741, -1.453152027, 1.061405429
    ax = jnp.abs(x)
    t = 1.0 / (1.0 + p * ax)
    poly = ((((a5 * t + a4) * t + a3) * t + a2) * t + a1) * t
    y = 1.0 - poly * jnp.exp(-ax * ax)
    return jnp.where(x >= 0, y, -y)


def _gelu_exact(x):
    return 0.5 * x * (1.0 + _erf_poly(x * _SQRT_HALF))


# ----------------------------------------------------------------------------
# Kernels
# ----------------------------------------------------------------------------
def _ln_gemm_kernel(x_ref, g_ref, b_ref, w_ref, bias_ref, o_ref, *, activation):
    # x_ref: (tm, D) rows of flattened (B*S, D); w_ref: (D, tn); bias_ref: (1, tn)
    x = x_ref[...].astype(jnp.float32)
    d = x.shape[-1]
    s = jnp.sum(x, axis=-1, keepdims=True)
    ss = jnp.sum(x * x, axis=-1, keepdims=True)
    mean = s * (1.0 / d)
    var = jnp.maximum(ss * (1.0 / d) - mean * mean, 0.0)  # single-pass, biased (as torch)
    inv = lax.rsqrt(var + EPS)
    scale = inv * g_ref[...].astype(jnp.float32)            # fold gamma into inv-std
    shift = b_ref[...].astype(jnp.float32) - mean * scale
    y = x * scale + shift                                   # LayerNorm(x)
    acc = jnp.dot(y, w_ref[...].astype(jnp.float32),
                  preferred_element_type=jnp.float32)
    acc = acc + bias_ref[...].astype(jnp.float32)
    if activation == "gelu":
        acc = _gelu_exact(acc)
    o_ref[...] = acc.astype(o_ref.dtype)


def _gemm_bias_res_kernel(h_ref, w_ref, bias_ref, r_ref, o_ref):
    acc = jnp.dot(h_ref[...].astype(jnp.float32), w_ref[...].astype(jnp.float32),
                  preferred_element_type=jnp.float32)
    acc = acc + bias_ref[...].astype(jnp.float32) + r_ref[...].astype(jnp.float32)
    o_ref[...] = acc.astype(o_ref.dtype)


def _attn_block_kernel(qkv_ref, wo_ref, bo_ref, res_ref, o_ref, *,
                       heads, dim_head, scale):
    # qkv_ref: (1, N, 3*inner) in torch layout [q(all heads) | k | v];
    # full-sequence softmax per head, then fused out-projection + bias + residual.
    inner = heads * dim_head
    qkv = qkv_ref[0].astype(jnp.float32)                 # (N, 3*inner)
    head_outs = []
    for hh in range(heads):                              # static loop over heads
        lo = hh * dim_head
        hi = lo + dim_head
        q = qkv[:, lo:hi]
        k = qkv[:, inner + lo:inner + hi]
        v = qkv[:, 2 * inner + lo:2 * inner + hi]
        dots = lax.dot_general(q, k, (((1,), (1,)), ((), ())),
                               preferred_element_type=jnp.float32) * scale
        m = jnp.max(dots, axis=-1, keepdims=True)
        p = jnp.exp(dots - m)
        l = jnp.sum(p, axis=-1, keepdims=True)
        head_outs.append(jnp.dot(p / l, v, preferred_element_type=jnp.float32))
    o = jnp.concatenate(head_outs, axis=-1)              # (N, inner), lane-dense
    proj = jnp.dot(o, wo_ref[...].astype(jnp.float32),
                   preferred_element_type=jnp.float32)
    proj = proj + bo_ref[...].astype(jnp.float32) + res_ref[0].astype(jnp.float32)
    o_ref[0] = proj.astype(o_ref.dtype)


# ----------------------------------------------------------------------------
# pallas_call wrappers
# ----------------------------------------------------------------------------
def ln_gemm(x2, gamma, beta, w, bias=None, *, activation="none"):
    """LayerNorm(x2) @ w (+ bias) (+ exact GELU), fused in one Pallas kernel."""
    rows, d = x2.shape
    d_w, n = w.shape
    assert d == d_w
    if bias is None:
        bias = jnp.zeros((n,), dtype=x2.dtype)
    tm = _choose_tile_rows(rows, max(d, n), x2.dtype)
    rows_p = _round_up(rows, tm)
    xp = x2 if rows_p == rows else jnp.pad(x2, ((0, rows_p - rows), (0, 0)))
    tn = _choose_tile_cols(n)
    out = pl.pallas_call(
        functools.partial(_ln_gemm_kernel, activation=activation),
        out_shape=jax.ShapeDtypeStruct((rows_p, n), x2.dtype),
        grid_spec=pltpu.PrefetchScalarGridSpec(
            num_scalar_prefetch=0,
            grid=(rows_p // tm, n // tn),
            in_specs=[
                pl.BlockSpec((tm, d), lambda i, j: (i, 0)),
                pl.BlockSpec((1, d), lambda i, j: (0, 0)),
                pl.BlockSpec((1, d), lambda i, j: (0, 0)),
                pl.BlockSpec((d, tn), lambda i, j: (0, j)),
                pl.BlockSpec((1, tn), lambda i, j: (0, j)),
            ],
            out_specs=pl.BlockSpec((tm, tn), lambda i, j: (i, j)),
        ),
        compiler_params=pltpu.CompilerParams(
            dimension_semantics=("parallel", "parallel"),
            vmem_limit_bytes=VMEM_LIMIT_BYTES,
        ),
    )(xp, gamma.reshape(1, d), beta.reshape(1, d), w, bias.reshape(1, n))
    return out[:rows]


def gemm_bias_residual(h2, w, bias, r2):
    """h2 @ w + bias + r2 (residual) in one Pallas kernel."""
    rows, k = h2.shape
    k_w, n = w.shape
    assert k == k_w and r2.shape == (rows, n)
    tm = _choose_tile_rows(rows, max(k, n), h2.dtype)
    rows_p = _round_up(rows, tm)
    if rows_p != rows:
        h2 = jnp.pad(h2, ((0, rows_p - rows), (0, 0)))
        r2 = jnp.pad(r2, ((0, rows_p - rows), (0, 0)))
    tn = _choose_tile_cols(n)
    out = pl.pallas_call(
        _gemm_bias_res_kernel,
        out_shape=jax.ShapeDtypeStruct((rows_p, n), r2.dtype),
        grid_spec=pltpu.PrefetchScalarGridSpec(
            num_scalar_prefetch=0,
            grid=(rows_p // tm, n // tn),
            in_specs=[
                pl.BlockSpec((tm, k), lambda i, j: (i, 0)),
                pl.BlockSpec((k, tn), lambda i, j: (0, j)),
                pl.BlockSpec((1, tn), lambda i, j: (0, j)),
                pl.BlockSpec((tm, tn), lambda i, j: (i, j)),
            ],
            out_specs=pl.BlockSpec((tm, tn), lambda i, j: (i, j)),
        ),
        compiler_params=pltpu.CompilerParams(
            dimension_semantics=("parallel", "parallel"),
            vmem_limit_bytes=VMEM_LIMIT_BYTES,
        ),
    )(h2, w, bias.reshape(1, n), r2)
    return out[:rows]


def attention_block(qkv3, w_out, b_out, res3, *, heads, dim_head, scale):
    """Per-batch multi-head attention + out-projection + bias + residual.

    qkv3: (B, N, 3*inner) torch-layout qkv, res3: (B, N, dim) residual input.
    Returns (B, N, dim) = res3 + (softmax(qk^T*scale)v for all heads) @ w_out + b_out.
    """
    b, n, three_inner = qkv3.shape
    inner = heads * dim_head
    assert three_inner == 3 * inner
    d = res3.shape[-1]
    return pl.pallas_call(
        functools.partial(_attn_block_kernel, heads=heads, dim_head=dim_head,
                          scale=scale),
        out_shape=jax.ShapeDtypeStruct((b, n, d), res3.dtype),
        grid_spec=pltpu.PrefetchScalarGridSpec(
            num_scalar_prefetch=0,
            grid=(b,),
            in_specs=[
                pl.BlockSpec((1, n, three_inner), lambda i: (i, 0, 0)),
                pl.BlockSpec((inner, d), lambda i: (0, 0)),
                pl.BlockSpec((1, d), lambda i: (0, 0)),
                pl.BlockSpec((1, n, d), lambda i: (i, 0, 0)),
            ],
            out_specs=pl.BlockSpec((1, n, d), lambda i: (i, 0, 0)),
        ),
        compiler_params=pltpu.CompilerParams(
            dimension_semantics=("parallel",),
            vmem_limit_bytes=VMEM_LIMIT_BYTES,
        ),
    )(qkv3, w_out, b_out.reshape(1, d), res3)


# ----------------------------------------------------------------------------
# Module: Transformer (depth x [Residual(PreNorm(Attention)), Residual(PreNorm(FFN))])
# ----------------------------------------------------------------------------
class Transformer:
    """JAX/Pallas equivalent of the PyTorch Transformer (eval / dropout=0)."""

    def __init__(self, dim, depth, heads, dim_head, mlp_dim, dropout=0.0, *, key):
        # TODO(synk): training-mode dropout (dropout > 0) not implemented; eval
        # semantics (dropout is the identity) only.
        assert dropout == 0.0
        self.dim, self.heads, self.dim_head = dim, heads, dim_head
        inner = heads * dim_head
        f32 = jnp.float32
        self.layers = []
        for _ in range(depth):
            key, *ks = jax.random.split(key, 12)
            self.layers.append(dict(
                ln1_g=1.0 + 0.1 * jax.random.normal(ks[0], (dim,), f32),
                ln1_b=0.1 * jax.random.normal(ks[1], (dim,), f32),
                w_qkv=0.05 * jax.random.normal(ks[2], (dim, inner * 3), f32),
                w_out=0.05 * jax.random.normal(ks[3], (inner, dim), f32),
                b_out=0.05 * jax.random.normal(ks[4], (dim,), f32),
                ln2_g=1.0 + 0.1 * jax.random.normal(ks[5], (dim,), f32),
                ln2_b=0.1 * jax.random.normal(ks[6], (dim,), f32),
                w1=0.05 * jax.random.normal(ks[7], (dim, mlp_dim), f32),
                b1=0.05 * jax.random.normal(ks[8], (mlp_dim,), f32),
                w2=0.05 * jax.random.normal(ks[9], (mlp_dim, dim), f32),
                b2=0.05 * jax.random.normal(ks[10], (dim,), f32),
            ))

    def __call__(self, x, mask=None):
        # TODO(synk): boolean attention mask (masked_fill) path not implemented;
        # the module's default forward (mask=None) is what is supported here.
        assert mask is None
        b, n, d = x.shape
        h, dh = self.heads, self.dim_head
        rows = b * n
        x2 = x.reshape(rows, d)
        for lp in self.layers:
            # ---- Residual(PreNorm(Attention)) : LN -> qkv GEMM, then fused
            #      per-batch multi-head attention + out-proj + bias + residual.
            qkv = ln_gemm(x2, lp["ln1_g"], lp["ln1_b"], lp["w_qkv"])     # (rows, 3*inner)
            x3 = attention_block(qkv.reshape(b, n, -1), lp["w_out"], lp["b_out"],
                                 x2.reshape(b, n, d),
                                 heads=h, dim_head=dh, scale=dh ** -0.5)  # (b, n, d)
            x2 = x3.reshape(rows, d)
            # ---- Residual(PreNorm(FeedForward)) ----
            hid = ln_gemm(x2, lp["ln2_g"], lp["ln2_b"], lp["w1"], lp["b1"],
                          activation="gelu")                              # (rows, mlp_dim)
            x2 = gemm_bias_residual(hid, lp["w2"], lp["b2"], x2)
        return x2.reshape(b, n, d)


# ----------------------------------------------------------------------------
# Pure-JAX reference (mirrors the PyTorch forward exactly)
# ----------------------------------------------------------------------------
def _reference_forward(model, x):
    hi = jax.lax.Precision.HIGHEST

    def ln(t, g, bb):
        mu = jnp.mean(t, -1, keepdims=True)
        var = jnp.mean((t - mu) ** 2, -1, keepdims=True)
        return (t - mu) / jnp.sqrt(var + EPS) * g + bb

    h, dh = model.heads, model.dim_head
    b, n, d = x.shape
    for lp in model.layers:
        t = ln(x, lp["ln1_g"], lp["ln1_b"])
        qkv = jnp.einsum("bnd,de->bne", t, lp["w_qkv"], precision=hi)
        q, k, v = jnp.split(qkv, 3, axis=-1)
        split = lambda z: z.reshape(b, n, h, dh).transpose(0, 2, 1, 3)
        q, k, v = split(q), split(k), split(v)
        dots = jnp.einsum("bhid,bhjd->bhij", q, k, precision=hi) * (dh ** -0.5)
        attn = jax.nn.softmax(dots, axis=-1)
        o = jnp.einsum("bhij,bhjd->bhid", attn, v, precision=hi)
        o = o.transpose(0, 2, 1, 3).reshape(b, n, h * dh)
        x = x + jnp.einsum("bni,id->bnd", o, lp["w_out"], precision=hi) + lp["b_out"]
        t = ln(x, lp["ln2_g"], lp["ln2_b"])
        t = jnp.einsum("bnd,dm->bnm", t, lp["w1"], precision=hi) + lp["b1"]
        t = jax.nn.gelu(t, approximate=False)
        x = x + jnp.einsum("bnm,md->bnd", t, lp["w2"], precision=hi) + lp["b2"]
    return x


if __name__ == "__main__":
    # Small but lane-dense demo: dim / 3*inner / mlp_dim are multiples of 128.
    B, S = 2, 16
    DIM, DEPTH, HEADS, DIM_HEAD, MLP_DIM = 128, 2, 4, 32, 256

    key = jax.random.PRNGKey(0)
    kx, kp = jax.random.split(key)
    x = jax.random.normal(kx, (B, S, DIM), dtype=jnp.float32)

    model = Transformer(DIM, DEPTH, HEADS, DIM_HEAD, MLP_DIM, dropout=0.0, key=kp)

    fwd = jax.jit(model.__call__)
    y = fwd(x)
    jax.block_until_ready(y)

    ref = _reference_forward(model, x)
    assert y.shape == ref.shape
    max_err = float(jnp.max(jnp.abs(y - ref)))
    assert jnp.allclose(y, ref, atol=1e-2, rtol=1e-2), f"max abs err {max_err}"

    print("KERNEL_OK")
</pallas_src>

<mosaic_0001>
module attributes {stable_mosaic.version = 11 : i64} {
  func.func @_ln_gemm_kernel(%arg0: i32, %arg1: i32, %arg2: memref<32x128xf32, #tpu.memory_space<vmem>>, %arg3: memref<1x128xf32, #tpu.memory_space<vmem>>, %arg4: memref<1x128xf32, #tpu.memory_space<vmem>>, %arg5: memref<128x384xf32, #tpu.memory_space<vmem>>, %arg6: memref<1x384xf32, #tpu.memory_space<vmem>>, %arg7: memref<32x384xf32, #tpu.memory_space<vmem>>) attributes {dimension_semantics = [#tpu.dimension_semantics<parallel>, #tpu.dimension_semantics<parallel>], iteration_bounds = array<i64: 1, 1>, scalar_prefetch = 0 : i64, scratch_operands = 0 : i64, tpu.core_type = #tpu.core_type<tc>, window_params = [{transform_indices = @transform_0, window_bounds = array<i64: 32, 128>}, {pipeline_mode = #tpu.pipeline_mode<synchronous>, transform_indices = @transform_1, window_bounds = array<i64: 1, 128>}, {pipeline_mode = #tpu.pipeline_mode<synchronous>, transform_indices = @transform_2, window_bounds = array<i64: 1, 128>}, {transform_indices = @transform_3, window_bounds = array<i64: 128, 384>}, {transform_indices = @transform_4, window_bounds = array<i64: 1, 384>}, {transform_indices = @transform_5, window_bounds = array<i64: 32, 384>}]} {
    %c0 = arith.constant 0 : index
    %c0_0 = arith.constant 0 : index
    %0 = vector.load %arg2[%c0, %c0_0] : memref<32x128xf32, #tpu.memory_space<vmem>>, vector<32x128xf32>
    %cst = arith.constant dense<0.000000e+00> : vector<32xf32>
    %1 = vector.multi_reduction <add>, %0, %cst [1] : vector<32x128xf32> to vector<32xf32>
    %2 = vector.shape_cast %1 : vector<32xf32> to vector<32x1xf32>
    %3 = arith.mulf %0, %0 : vector<32x128xf32>
    %cst_1 = arith.constant dense<0.000000e+00> : vector<32xf32>
    %4 = vector.multi_reduction <add>, %3, %cst_1 [1] : vector<32x128xf32> to vector<32xf32>
    %5 = vector.shape_cast %4 : vector<32xf32> to vector<32x1xf32>
    %cst_2 = arith.constant 7.812500e-03 : f32
    %6 = vector.broadcast %cst_2 : f32 to vector<32x1xf32>
    %7 = arith.mulf %2, %6 : vector<32x1xf32>
    %cst_3 = arith.constant 7.812500e-03 : f32
    %8 = vector.broadcast %cst_3 : f32 to vector<32x1xf32>
    %9 = arith.mulf %5, %8 : vector<32x1xf32>
    %10 = arith.mulf %7, %7 : vector<32x1xf32>
    %11 = arith.subf %9, %10 : vector<32x1xf32>
    %cst_4 = arith.constant 0.000000e+00 : f32
    %12 = vector.broadcast %cst_4 : f32 to vector<32x1xf32>
    %13 = arith.maximumf %11, %12 : vector<32x1xf32>
    %cst_5 = arith.constant 9.99999974E-6 : f32
    %14 = vector.broadcast %cst_5 : f32 to vector<32x1xf32>
    %15 = arith.addf %13, %14 : vector<32x1xf32>
    %16 = math.rsqrt %15 : vector<32x1xf32>
    %c0_6 = arith.constant 0 : index
    %c0_7 = arith.constant 0 : index
    %17 = vector.load %arg3[%c0_6, %c0_7] : memref<1x128xf32, #tpu.memory_space<vmem>>, vector<1x128xf32>
    %18 = vector.broadcast %16 : vector<32x1xf32> to vector<32x128xf32>
    %19 = vector.broadcast %17 : vector<1x128xf32> to vector<32x128xf32>
    %20 = arith.mulf %18, %19 : vector<32x128xf32>
    %c0_8 = arith.constant 0 : index
    %c0_9 = arith.constant 0 : index
    %21 = vector.load %arg4[%c0_8, %c0_9] : memref<1x128xf32, #tpu.memory_space<vmem>>, vector<1x128xf32>
    %22 = vector.broadcast %7 : vector<32x1xf32> to vector<32x128xf32>
    %23 = arith.mulf %22, %20 : vector<32x128xf32>
    %24 = vector.broadcast %21 : vector<1x128xf32> to vector<32x128xf32>
    %25 = arith.subf %24, %23 : vector<32x128xf32>
    %26 = arith.mulf %0, %20 : vector<32x128xf32>
    %27 = arith.addf %26, %25 : vector<32x128xf32>
    %c0_10 = arith.constant 0 : index
    %c0_11 = arith.constant 0 : index
    %28 = vector.load %arg5[%c0_10, %c0_11] : memref<128x384xf32, #tpu.memory_space<vmem>>, vector<128x384xf32>
    %cst_12 = arith.constant dense<0.000000e+00> : vector<32x384xf32>
    %29 = tpu.matmul %27, %28, %cst_12 {dimension_numbers = #tpu.dot_dimension_numbers<[1], [0], [0], [1], [0, 0, 1, 1], [], []>} : vector<32x128xf32>, vector<128x384xf32>, vector<32x384xf32> -> vector<32x384xf32>
    %c0_13 = arith.constant 0 : index
    %c0_14 = arith.constant 0 : index
    %30 = vector.load %arg6[%c0_13, %c0_14] : memref<1x384xf32, #tpu.memory_space<vmem>>, vector<1x384xf32>
    %31 = vector.broadcast %30 : vector<1x384xf32> to vector<32x384xf32>
    %32 = arith.addf %29, %31 : vector<32x384xf32>
    %c0_15 = arith.constant 0 : index
    %c0_16 = arith.constant 0 : index
    %33 = vector.load %arg7[%c0_15, %c0_16] : memref<32x384xf32, #tpu.memory_space<vmem>>, vector<32x384xf32>
    tpu.vector_store %arg7[%c0_15, %c0_16], %32 {strides = array<i32>} : memref<32x384xf32, #tpu.memory_space<vmem>>, vector<32x384xf32>,
    return
  }
  func.func @transform_0(%arg0: i32, %arg1: i32) -> (i32, i32) {
    %c0_i32 = arith.constant 0 : i32
    %c0_i32_0 = arith.constant 0 : i32
    return %arg0, %c0_i32 : i32, i32
  }
  func.func @transform_1(%arg0: i32, %arg1: i32) -> (i32, i32) {
    %c0_i32 = arith.constant 0 : i32
    %c0_i32_0 = arith.constant 0 : i32
    %c0_i32_1 = arith.constant 0 : i32
    return %c0_i32, %c0_i32_0 : i32, i32
  }
  func.func @transform_2(%arg0: i32, %arg1: i32) -> (i32, i32) {
    %c0_i32 = arith.constant 0 : i32
    %c0_i32_0 = arith.constant 0 : i32
    %c0_i32_1 = arith.constant 0 : i32
    return %c0_i32, %c0_i32_0 : i32, i32
  }
  func.func @transform_3(%arg0: i32, %arg1: i32) -> (i32, i32) {
    %c0_i32 = arith.constant 0 : i32
    %c0_i32_0 = arith.constant 0 : i32
    return %c0_i32, %arg1 : i32, i32
  }
  func.func @transform_4(%arg0: i32, %arg1: i32) -> (i32, i32) {
    %c0_i32 = arith.constant 0 : i32
    %c0_i32_0 = arith.constant 0 : i32
    return %c0_i32, %arg1 : i32, i32
  }
  func.func @transform_5(%arg0: i32, %arg1: i32) -> (i32, i32) {
    %c0_i32 = arith.constant 0 : i32
    return %arg0, %arg1 : i32, i32
  }
}

module attributes {stable_mosaic.version = 11 : i64} {
  func.func @_ln_gemm_kernel(%arg0: i32, %arg1: i32, %arg2: memref<32x128xf32, #tpu.memory_space<vmem>>, %arg3: memref<1x128xf32, #tpu.memory_space<vmem>>, %arg4: memref<1x128xf32, #tpu.memory_space<vmem>>, %arg5: memref<128x256xf32, #tpu.memory_space<vmem>>, %arg6: memref<1x256xf32, #tpu.memory_space<vmem>>, %arg7: memref<32x256xf32, #tpu.memory_space<vmem>>) attributes {dimension_semantics = [#tpu.dimension_semantics<parallel>, #tpu.dimension_semantics<parallel>], iteration_bounds = array<i64: 1, 1>, scalar_prefetch = 0 : i64, scratch_operands = 0 : i64, tpu.core_type = #tpu.core_type<tc>, window_params = [{transform_indices = @transform_0, window_bounds = array<i64: 32, 128>}, {pipeline_mode = #tpu.pipeline_mode<synchronous>, transform_indices = @transform_1, window_bounds = array<i64: 1, 128>}, {pipeline_mode = #tpu.pipeline_mode<synchronous>, transform_indices = @transform_2, window_bounds = array<i64: 1, 128>}, {transform_indices = @transform_3, window_bounds = array<i64: 128, 256>}, {transform_indices = @transform_4, window_bounds = array<i64: 1, 256>}, {transform_indices = @transform_5, window_bounds = array<i64: 32, 256>}]} {
    %c0 = arith.constant 0 : index
    %c0_0 = arith.constant 0 : index
    %0 = vector.load %arg2[%c0, %c0_0] : memref<32x128xf32, #tpu.memory_space<vmem>>, vector<32x128xf32>
    %cst = arith.constant dense<0.000000e+00> : vector<32xf32>
    %1 = vector.multi_reduction <add>, %0, %cst [1] : vector<32x128xf32> to vector<32xf32>
    %2 = vector.shape_cast %1 : vector<32xf32> to vector<32x1xf32>
    %3 = arith.mulf %0, %0 : vector<32x128xf32>
    %cst_1 = arith.constant dense<0.000000e+00> : vector<32xf32>
    %4 = vector.multi_reduction <add>, %3, %cst_1 [1] : vector<32x128xf32> to vector<32xf32>
    %5 = vector.shape_cast %4 : vector<32xf32> to vector<32x1xf32>
    %cst_2 = arith.constant 7.812500e-03 : f32
    %6 = vector.broadcast %cst_2 : f32 to vector<32x1xf32>
    %7 = arith.mulf %2, %6 : vector<32x1xf32>
    %cst_3 = arith.constant 7.812500e-03 : f32
    %8 = vector.broadcast %cst_3 : f32 to vector<32x1xf32>
    %9 = arith.mulf %5, %8 : vector<32x1xf32>
    %10 = arith.mulf %7, %7 : vector<32x1xf32>
    %11 = arith.subf %9, %10 : vector<32x1xf32>
    %cst_4 = arith.constant 0.000000e+00 : f32
    %12 = vector.broadcast %cst_4 : f32 to vector<32x1xf32>
    %13 = arith.maximumf %11, %12 : vector<32x1xf32>
    %cst_5 = arith.constant 9.99999974E-6 : f32
    %14 = vector.broadcast %cst_5 : f32 to vector<32x1xf32>
    %15 = arith.addf %13, %14 : vector<32x1xf32>
    %16 = math.rsqrt %15 : vector<32x1xf32>
    %c0_6 = arith.constant 0 : index
    %c0_7 = arith.constant 0 : index
    %17 = vector.load %arg3[%c0_6, %c0_7] : memref<1x128xf32, #tpu.memory_space<vmem>>, vector<1x128xf32>
    %18 = vector.broadcast %16 : vector<32x1xf32> to vector<32x128xf32>
    %19 = vector.broadcast %17 : vector<1x128xf32> to vector<32x128xf32>
    %20 = arith.mulf %18, %19 : vector<32x128xf32>
    %c0_8 = arith.constant 0 : index
    %c0_9 = arith.constant 0 : index
    %21 = vector.load %arg4[%c0_8, %c0_9] : memref<1x128xf32, #tpu.memory_space<vmem>>, vector<1x128xf32>
    %22 = vector.broadcast %7 : vector<32x1xf32> to vector<32x128xf32>
    %23 = arith.mulf %22, %20 : vector<32x128xf32>
    %24 = vector.broadcast %21 : vector<1x128xf32> to vector<32x128xf32>
    %25 = arith.subf %24, %23 : vector<32x128xf32>
    %26 = arith.mulf %0, %20 : vector<32x128xf32>
    %27 = arith.addf %26, %25 : vector<32x128xf32>
    %c0_10 = arith.constant 0 : index
    %c0_11 = arith.constant 0 : index
    %28 = vector.load %arg5[%c0_10, %c0_11] : memref<128x256xf32, #tpu.memory_space<vmem>>, vector<128x256xf32>
    %cst_12 = arith.constant dense<0.000000e+00> : vector<32x256xf32>
    %29 = tpu.matmul %27, %28, %cst_12 {dimension_numbers = #tpu.dot_dimension_numbers<[1], [0], [0], [1], [0, 0, 1, 1], [], []>} : vector<32x128xf32>, vector<128x256xf32>, vector<32x256xf32> -> vector<32x256xf32>
    %c0_13 = arith.constant 0 : index
    %c0_14 = arith.constant 0 : index
    %30 = vector.load %arg6[%c0_13, %c0_14] : memref<1x256xf32, #tpu.memory_space<vmem>>, vector<1x256xf32>
    %31 = vector.broadcast %30 : vector<1x256xf32> to vector<32x256xf32>
    %32 = arith.addf %29, %31 : vector<32x256xf32>
    %cst_15 = arith.constant 5.000000e-01 : f32
    %33 = vector.broadcast %cst_15 : f32 to vector<32x256xf32>
    %34 = arith.mulf %33, %32 : vector<32x256xf32>
    %cst_16 = arith.constant 0.707106769 : f32
    %35 = vector.broadcast %cst_16 : f32 to vector<32x256xf32>
    %36 = arith.mulf %32, %35 : vector<32x256xf32>
    %37 = math.absf %36 : vector<32x256xf32>
    %cst_17 = arith.constant 0.327591091 : f32
    %38 = vector.broadcast %cst_17 : f32 to vector<32x256xf32>
    %39 = arith.mulf %38, %37 : vector<32x256xf32>
    %cst_18 = arith.constant 1.000000e+00 : f32
    %40 = vector.broadcast %cst_18 : f32 to vector<32x256xf32>
    %41 = arith.addf %40, %39 : vector<32x256xf32>
    %cst_19 = arith.constant 1.000000e+00 : f32
    %42 = vector.broadcast %cst_19 : f32 to vector<32x256xf32>
    %43 = arith.divf %42, %41 : vector<32x256xf32>
    %cst_20 = arith.constant 1.06140542 : f32
    %44 = vector.broadcast %cst_20 : f32 to vector<32x256xf32>
    %45 = arith.mulf %44, %43 : vector<32x256xf32>
    %cst_21 = arith.constant -1.45315206 : f32
    %46 = vector.broadcast %cst_21 : f32 to vector<32x256xf32>
    %47 = arith.addf %45, %46 : vector<32x256xf32>
    %48 = arith.mulf %47, %43 : vector<32x256xf32>
    %cst_22 = arith.constant 1.42141378 : f32
    %49 = vector.broadcast %cst_22 : f32 to vector<32x256xf32>
    %50 = arith.addf %48, %49 : vector<32x256xf32>
    %51 = arith.mulf %50, %43 : vector<32x256xf32>
    %cst_23 = arith.constant -0.284496725 : f32
    %52 = vector.broadcast %cst_23 : f32 to vector<32x256xf32>
    %53 = arith.addf %51, %52 : vector<32x256xf32>
    %54 = arith.mulf %53, %43 : vector<32x256xf32>
    %cst_24 = arith.constant 0.254829586 : f32
    %55 = vector.broadcast %cst_24 : f32 to vector<32x256xf32>
    %56 = arith.addf %54, %55 : vector<32x256xf32>
    %57 = arith.mulf %56, %43 : vector<32x256xf32>
    %cst_25 = arith.constant 0.000000e+00 : f32
    %58 = vector.broadcast %cst_25 : f32 to vector<32x256xf32>
    %59 = arith.subf %58, %37 : vector<32x256xf32>
    %60 = arith.mulf %59, %37 : vector<32x256xf32>
    %61 = math.exp %60 : vector<32x256xf32>
    %62 = arith.mulf %57, %61 : vector<32x256xf32>
    %cst_26 = arith.constant 1.000000e+00 : f32
    %63 = vector.broadcast %cst_26 : f32 to vector<32x256xf32>
    %64 = arith.subf %63, %62 : vector<32x256xf32>
    %cst_27 = arith.constant 0.000000e+00 : f32
    %65 = vector.broadcast %cst_27 : f32 to vector<32x256xf32>
    %66 = arith.cmpf oge, %36, %65 : vector<32x256xf32>
    %cst_28 = arith.constant 0.000000e+00 : f32
    %67 = vector.broadcast %cst_28 : f32 to vector<32x256xf32>
    %68 = arith.subf %67, %64 : vector<32x256xf32>
    %69 = arith.select %66, %64, %68 : vector<32x256xi1>, vector<32x256xf32>
    %cst_29 = arith.constant 1.000000e+00 : f32
    %70 = vector.broadcast %cst_29 : f32 to vector<32x256xf32>
    %71 = arith.addf %70, %69 : vector<32x256xf32>
    %72 = arith.mulf %34, %71 : vector<32x256xf32>
    %c0_30 = arith.constant 0 : index
    %c0_31 = arith.constant 0 : index
    %73 = vector.load %arg7[%c0_30, %c0_31] : memref<32x256xf32, #tpu.memory_space<vmem>>, vector<32x256xf32>
    tpu.vector_store %arg7[%c0_30, %c0_31], %72 {strides = array<i32>} : memref<32x256xf32, #tpu.memory_space<vmem>>, vector<32x256xf32>,
    return
  }
  func.func @transform_0(%arg0: i32, %arg1: i32) -> (i32, i32) {
    %c0_i32 = arith.constant 0 : i32
    %c0_i32_0 = arith.constant 0 : i32
    return %arg0, %c0_i32 : i32, i32
  }
  func.func @transform_1(%arg0: i32, %arg1: i32) -> (i32, i32) {
    %c0_i32 = arith.constant 0 : i32
    %c0_i32_0 = arith.constant 0 : i32
    %c0_i32_1 = arith.constant 0 : i32
    return %c0_i32, %c0_i32_0 : i32, i32
  }
  func.func @transform_2(%arg0: i32, %arg1: i32) -> (i32, i32) {
    %c0_i32 = arith.constant 0 : i32
    %c0_i32_0 = arith.constant 0 : i32
    %c0_i32_1 = arith.constant 0 : i32
    return %c0_i32, %c0_i32_0 : i32, i32
  }
  func.func @transform_3(%arg0: i32, %arg1: i32) -> (i32, i32) {
    %c0_i32 = arith.constant 0 : i32
    %c0_i32_0 = arith.constant 0 : i32
    return %c0_i32, %arg1 : i32, i32
  }
  func.func @transform_4(%arg0: i32, %arg1: i32) -> (i32, i32) {
    %c0_i32 = arith.constant 0 : i32
    %c0_i32_0 = arith.constant 0 : i32
    return %c0_i32, %arg1 : i32, i32
  }
  func.func @transform_5(%arg0: i32, %arg1: i32) -> (i32, i32) {
    %c0_i32 = arith.constant 0 : i32
    return %arg0, %arg1 : i32, i32
  }
}

module attributes {stable_mosaic.version = 11 : i64} {
  func.func @_attn_block_kernel(%arg0: i32, %arg1: memref<1x16x384xf32, #tpu.memory_space<vmem>>, %arg2: memref<128x128xf32, #tpu.memory_space<vmem>>, %arg3: memref<1x128xf32, #tpu.memory_space<vmem>>, %arg4: memref<1x16x128xf32, #tpu.memory_space<vmem>>, %arg5: memref<1x16x128xf32, #tpu.memory_space<vmem>>) attributes {dimension_semantics = [#tpu.dimension_semantics<parallel>], iteration_bounds = array<i64: 2>, scalar_prefetch = 0 : i64, scratch_operands = 0 : i64, tpu.core_type = #tpu.core_type<tc>, window_params = [{transform_indices = @transform_0, window_bounds = array<i64: 1, 16, 384>}, {pipeline_mode = #tpu.pipeline_mode<synchronous>, transform_indices = @transform_1, window_bounds = array<i64: 128, 128>}, {pipeline_mode = #tpu.pipeline_mode<synchronous>, transform_indices = @transform_2, window_bounds = array<i64: 1, 128>}, {transform_indices = @transform_3, window_bounds = array<i64: 1, 16, 128>}, {transform_indices = @transform_4, window_bounds = array<i64: 1, 16, 128>}]} {
    %c0 = arith.constant 0 : index
    %c0_0 = arith.constant 0 : index
    %c0_1 = arith.constant 0 : index
    %0 = vector.load %arg1[%c0, %c0_0, %c0_1] : memref<1x16x384xf32, #tpu.memory_space<vmem>>, vector<1x16x384xf32>
    %1 = vector.shape_cast %0 : vector<1x16x384xf32> to vector<16x384xf32>
    %2 = vector.extract_strided_slice %1 {offsets = [0, 0], sizes = [16, 32], strides = [1, 1]} : vector<16x384xf32> to vector<16x32xf32>
    %3 = vector.extract_strided_slice %1 {offsets = [0, 128], sizes = [16, 32], strides = [1, 1]} : vector<16x384xf32> to vector<16x32xf32>
    %4 = vector.extract_strided_slice %1 {offsets = [0, 256], sizes = [16, 32], strides = [1, 1]} : vector<16x384xf32> to vector<16x32xf32>
    %cst = arith.constant dense<0.000000e+00> : vector<16x16xf32>
    %5 = tpu.matmul %2, %3, %cst {dimension_numbers = #tpu.dot_dimension_numbers<[1], [1], [0], [0], [0, 0, 1, 0], [], []>} : vector<16x32xf32>, vector<16x32xf32>, vector<16x16xf32> -> vector<16x16xf32>
    %cst_2 = arith.constant 0.176776692 : f32
    %6 = vector.broadcast %cst_2 : f32 to vector<16x16xf32>
    %7 = arith.mulf %5, %6 : vector<16x16xf32>
    %cst_3 = arith.constant dense<0xFF800000> : vector<16xf32>
    %8 = vector.multi_reduction <maximumf>, %7, %cst_3 [1] : vector<16x16xf32> to vector<16xf32>
    %9 = vector.shape_cast %8 : vector<16xf32> to vector<16x1xf32>
    %10 = vector.broadcast %9 : vector<16x1xf32> to vector<16x16xf32>
    %11 = arith.subf %7, %10 : vector<16x16xf32>
    %12 = math.exp %11 : vector<16x16xf32>
    %cst_4 = arith.constant dense<0.000000e+00> : vector<16xf32>
    %13 = vector.multi_reduction <add>, %12, %cst_4 [1] : vector<16x16xf32> to vector<16xf32>
    %14 = vector.shape_cast %13 : vector<16xf32> to vector<16x1xf32>
    %15 = vector.broadcast %14 : vector<16x1xf32> to vector<16x16xf32>
    %16 = arith.divf %12, %15 : vector<16x16xf32>
    %cst_5 = arith.constant dense<0.000000e+00> : vector<16x32xf32>
    %17 = tpu.matmul %16, %4, %cst_5 {dimension_numbers = #tpu.dot_dimension_numbers<[1], [0], [0], [1], [0, 0, 1, 1], [], []>} : vector<16x16xf32>, vector<16x32xf32>, vector<16x32xf32> -> vector<16x32xf32>
    %18 = vector.extract_strided_slice %1 {offsets = [0, 32], sizes = [16, 32], strides = [1, 1]} : vector<16x384xf32> to vector<16x32xf32>
    %19 = vector.extract_strided_slice %1 {offsets = [0, 160], sizes = [16, 32], strides = [1, 1]} : vector<16x384xf32> to vector<16x32xf32>
    %20 = vector.extract_strided_slice %1 {offsets = [0, 288], sizes = [16, 32], strides = [1, 1]} : vector<16x384xf32> to vector<16x32xf32>
    %cst_6 = arith.constant dense<0.000000e+00> : vector<16x16xf32>
    %21 = tpu.matmul %18, %19, %cst_6 {dimension_numbers = #tpu.dot_dimension_numbers<[1], [1], [0], [0], [0, 0, 1, 0], [], []>} : vector<16x32xf32>, vector<16x32xf32>, vector<16x16xf32> -> vector<16x16xf32>
    %cst_7 = arith.constant 0.176776692 : f32
    %22 = vector.broadcast %cst_7 : f32 to vector<16x16xf32>
    %23 = arith.mulf %21, %22 : vector<16x16xf32>
    %cst_8 = arith.constant dense<0xFF800000> : vector<16xf32>
    %24 = vector.multi_reduction <maximumf>, %23, %cst_8 [1] : vector<16x16xf32> to vector<16xf32>
    %25 = vector.shape_cast %24 : vector<16xf32> to vector<16x1xf32>
    %26 = vector.broadcast %25 : vector<16x1xf32> to vector<16x16xf32>
    %27 = arith.subf %23, %26 : vector<16x16xf32>
    %28 = math.exp %27 : vector<16x16xf32>
    %cst_9 = arith.constant dense<0.000000e+00> : vector<16xf32>
    %29 = vector.multi_reduction <add>, %28, %cst_9 [1] : vector<16x16xf32> to vector<16xf32>
    %30 = vector.shape_cast %29 : vector<16xf32> to vector<16x1xf32>
    %31 = vector.broadcast %30 : vector<16x1xf32> to vector<16x16xf32>
    %32 = arith.divf %28, %31 : vector<16x16xf32>
    %cst_10 = arith.constant dense<0.000000e+00> : vector<16x32xf32>
    %33 = tpu.matmul %32, %20, %cst_10 {dimension_numbers = #tpu.dot_dimension_numbers<[1], [0], [0], [1], [0, 0, 1, 1], [], []>} : vector<16x16xf32>, vector<16x32xf32>, vector<16x32xf32> -> vector<16x32xf32>
    %34 = vector.extract_strided_slice %1 {offsets = [0, 64], sizes = [16, 32], strides = [1, 1]} : vector<16x384xf32> to vector<16x32xf32>
    %35 = vector.extract_strided_slice %1 {offsets = [0, 192], sizes = [16, 32], strides = [1, 1]} : vector<16x384xf32> to vector<16x32xf32>
    %36 = vector.extract_strided_slice %1 {offsets = [0, 320], sizes = [16, 32], strides = [1, 1]} : vector<16x384xf32> to vector<16x32xf32>
    %cst_11 = arith.constant dense<0.000000e+00> : vector<16x16xf32>
    %37 = tpu.matmul %34, %35, %cst_11 {dimension_numbers = #tpu.dot_dimension_numbers<[1], [1], [0], [0], [0, 0, 1, 0], [], []>} : vector<16x32xf32>, vector<16x32xf32>, vector<16x16xf32> -> vector<16x16xf32>
    %cst_12 = arith.constant 0.176776692 : f32
    %38 = vector.broadcast %cst_12 : f32 to vector<16x16xf32>
    %39 = arith.mulf %37, %38 : vector<16x16xf32>
    %cst_13 = arith.constant dense<0xFF800000> : vector<16xf32>
    %40 = vector.multi_reduction <maximumf>, %39, %cst_13 [1] : vector<16x16xf32> to vector<16xf32>
    %41 = vector.shape_cast %40 : vector<16xf32> to vector<16x1xf32>
    %42 = vector.broadcast %41 : vector<16x1xf32> to vector<16x16xf32>
    %43 = arith.subf %39, %42 : vector<16x16xf32>
    %44 = math.exp %43 : vector<16x16xf32>
    %cst_14 = arith.constant dense<0.000000e+00> : vector<16xf32>
    %45 = vector.multi_reduction <add>, %44, %cst_14 [1] : vector<16x16xf32> to vector<16xf32>
    %46 = vector.shape_cast %45 : vector<16xf32> to vector<16x1xf32>
    %47 = vector.broadcast %46 : vector<16x1xf32> to vector<16x16xf32>
    %48 = arith.divf %44, %47 : vector<16x16xf32>
    %cst_15 = arith.constant dense<0.000000e+00> : vector<16x32xf32>
    %49 = tpu.matmul %48, %36, %cst_15 {dimension_numbers = #tpu.dot_dimension_numbers<[1], [0], [0], [1], [0, 0, 1, 1], [], []>} : vector<16x16xf32>, vector<16x32xf32>, vector<16x32xf32> -> vector<16x32xf32>
    %50 = vector.extract_strided_slice %1 {offsets = [0, 96], sizes = [16, 32], strides = [1, 1]} : vector<16x384xf32> to vector<16x32xf32>
    %51 = vector.extract_strided_slice %1 {offsets = [0, 224], sizes = [16, 32], strides = [1, 1]} : vector<16x384xf32> to vector<16x32xf32>
    %52 = vector.extract_strided_slice %1 {offsets = [0, 352], sizes = [16, 32], strides = [1, 1]} : vector<16x384xf32> to vector<16x32xf32>
    %cst_16 = arith.constant dense<0.000000e+00> : vector<16x16xf32>
    %53 = tpu.matmul %50, %51, %cst_16 {dimension_numbers = #tpu.dot_dimension_numbers<[1], [1], [0], [0], [0, 0, 1, 0], [], []>} : vector<16x32xf32>, vector<16x32xf32>, vector<16x16xf32> -> vector<16x16xf32>
    %cst_17 = arith.constant 0.176776692 : f32
    %54 = vector.broadcast %cst_17 : f32 to vector<16x16xf32>
    %55 = arith.mulf %53, %54 : vector<16x16xf32>
    %cst_18 = arith.constant dense<0xFF800000> : vector<16xf32>
    %56 = vector.multi_reduction <maximumf>, %55, %cst_18 [1] : vector<16x16xf32> to vector<16xf32>
    %57 = vector.shape_cast %56 : vector<16xf32> to vector<16x1xf32>
    %58 = vector.broadcast %57 : vector<16x1xf32> to vector<16x16xf32>
    %59 = arith.subf %55, %58 : vector<16x16xf32>
    %60 = math.exp %59 : vector<16x16xf32>
    %cst_19 = arith.constant dense<0.000000e+00> : vector<16xf32>
    %61 = vector.multi_reduction <add>, %60, %cst_19 [1] : vector<16x16xf32> to vector<16xf32>
    %62 = vector.shape_cast %61 : vector<16xf32> to vector<16x1xf32>
    %63 = vector.broadcast %62 : vector<16x1xf32> to vector<16x16xf32>
    %64 = arith.divf %60, %63 : vector<16x16xf32>
    %cst_20 = arith.constant dense<0.000000e+00> : vector<16x32xf32>
    %65 = tpu.matmul %64, %52, %cst_20 {dimension_numbers = #tpu.dot_dimension_numbers<[1], [0], [0], [1], [0, 0, 1, 1], [], []>} : vector<16x16xf32>, vector<16x32xf32>, vector<16x32xf32> -> vector<16x32xf32>
    %66 = tpu.concatenate %17, %33, %49, %65 in 1 : vector<16x32xf32>, vector<16x32xf32>, vector<16x32xf32>, vector<16x32xf32> -> vector<16x128xf32>
    %c0_21 = arith.constant 0 : index
    %c0_22 = arith.constant 0 : index
    %67 = vector.load %arg2[%c0_21, %c0_22] : memref<128x128xf32, #tpu.memory_space<vmem>>, vector<128x128xf32>
    %cst_23 = arith.constant dense<0.000000e+00> : vector<16x128xf32>
    %68 = tpu.matmul %66, %67, %cst_23 {dimension_numbers = #tpu.dot_dimension_numbers<[1], [0], [0], [1], [0, 0, 1, 1], [], []>} : vector<16x128xf32>, vector<128x128xf32>, vector<16x128xf32> -> vector<16x128xf32>
    %c0_24 = arith.constant 0 : index
    %c0_25 = arith.constant 0 : index
    %69 = vector.load %arg3[%c0_24, %c0_25] : memref<1x128xf32, #tpu.memory_space<vmem>>, vector<1x128xf32>
    %70 = vector.broadcast %69 : vector<1x128xf32> to vector<16x128xf32>
    %71 = arith.addf %68, %70 : vector<16x128xf32>
    %c0_26 = arith.constant 0 : index
    %c0_27 = arith.constant 0 : index
    %c0_28 = arith.constant 0 : index
    %72 = vector.load %arg4[%c0_26, %c0_27, %c0_28] : memref<1x16x128xf32, #tpu.memory_space<vmem>>, vector<1x16x128xf32>
    %73 = vector.shape_cast %72 : vector<1x16x128xf32> to vector<16x128xf32>
    %74 = arith.addf %71, %73 : vector<16x128xf32>
    %c0_29 = arith.constant 0 : index
    %c0_30 = arith.constant 0 : index
    %c0_31 = arith.constant 0 : index
    %75 = vector.load %arg5[%c0_29, %c0_30, %c0_31] : memref<1x16x128xf32, #tpu.memory_space<vmem>>, vector<1x16x128xf32>
    %76 = vector.shape_cast %75 : vector<1x16x128xf32> to vector<16x128xf32>
    %77 = vector.shape_cast %74 : vector<16x128xf32> to vector<1x16x128xf32>
    tpu.vector_store %arg5[%c0_29, %c0_30, %c0_31], %77 {strides = array<i32>} : memref<1x16x128xf32, #tpu.memory_space<vmem>>, vector<1x16x128xf32>,
    return
  }
  func.func @transform_0(%arg0: i32) -> (i32, i32, i32) {
    %c0_i32 = arith.constant 0 : i32
    %c0_i32_0 = arith.constant 0 : i32
    %c0_i32_1 = arith.constant 0 : i32
    return %arg0, %c0_i32, %c0_i32_0 : i32, i32, i32
  }
  func.func @transform_1(%arg0: i32) -> (i32, i32) {
    %c0_i32 = arith.constant 0 : i32
    %c0_i32_0 = arith.constant 0 : i32
    %c0_i32_1 = arith.constant 0 : i32
    return %c0_i32, %c0_i32_0 : i32, i32
  }
  func.func @transform_2(%arg0: i32) -> (i32, i32) {
    %c0_i32 = arith.constant 0 : i32
    %c0_i32_0 = arith.constant 0 : i32
    %c0_i32_1 = arith.constant 0 : i32
    return %c0_i32, %c0_i32_0 : i32, i32
  }
  func.func @transform_3(%arg0: i32) -> (i32, i32, i32) {
    %c0_i32 = arith.constant 0 : i32
    %c0_i32_0 = arith.constant 0 : i32
    %c0_i32_1 = arith.constant 0 : i32
    return %arg0, %c0_i32, %c0_i32_0 : i32, i32, i32
  }
  func.func @transform_4(%arg0: i32) -> (i32, i32, i32) {
    %c0_i32 = arith.constant 0 : i32
    %c0_i32_0 = arith.constant 0 : i32
    %c0_i32_1 = arith.constant 0 : i32
    return %arg0, %c0_i32, %c0_i32_0 : i32, i32, i32
  }
}

module attributes {stable_mosaic.version = 11 : i64} {
  func.func @_gemm_bias_res_kernel(%arg0: i32, %arg1: i32, %arg2: memref<32x256xf32, #tpu.memory_space<vmem>>, %arg3: memref<256x128xf32, #tpu.memory_space<vmem>>, %arg4: memref<1x128xf32, #tpu.memory_space<vmem>>, %arg5: memref<32x128xf32, #tpu.memory_space<vmem>>, %arg6: memref<32x128xf32, #tpu.memory_space<vmem>>) attributes {dimension_semantics = [#tpu.dimension_semantics<parallel>, #tpu.dimension_semantics<parallel>], iteration_bounds = array<i64: 1, 1>, scalar_prefetch = 0 : i64, scratch_operands = 0 : i64, tpu.core_type = #tpu.core_type<tc>, window_params = [{transform_indices = @transform_0, window_bounds = array<i64: 32, 256>}, {transform_indices = @transform_1, window_bounds = array<i64: 256, 128>}, {transform_indices = @transform_2, window_bounds = array<i64: 1, 128>}, {transform_indices = @transform_3, window_bounds = array<i64: 32, 128>}, {transform_indices = @transform_4, window_bounds = array<i64: 32, 128>}]} {
    %c0 = arith.constant 0 : index
    %c0_0 = arith.constant 0 : index
    %0 = vector.load %arg2[%c0, %c0_0] : memref<32x256xf32, #tpu.memory_space<vmem>>, vector<32x256xf32>
    %c0_1 = arith.constant 0 : index
    %c0_2 = arith.constant 0 : index
    %1 = vector.load %arg3[%c0_1, %c0_2] : memref<256x128xf32, #tpu.memory_space<vmem>>, vector<256x128xf32>
    %cst = arith.constant dense<0.000000e+00> : vector<32x128xf32>
    %2 = tpu.matmul %0, %1, %cst {dimension_numbers = #tpu.dot_dimension_numbers<[1], [0], [0], [1], [0, 0, 1, 1], [], []>} : vector<32x256xf32>, vector<256x128xf32>, vector<32x128xf32> -> vector<32x128xf32>
    %c0_3 = arith.constant 0 : index
    %c0_4 = arith.constant 0 : index
    %3 = vector.load %arg4[%c0_3, %c0_4] : memref<1x128xf32, #tpu.memory_space<vmem>>, vector<1x128xf32>
    %4 = vector.broadcast %3 : vector<1x128xf32> to vector<32x128xf32>
    %5 = arith.addf %2, %4 : vector<32x128xf32>
    %c0_5 = arith.constant 0 : index
    %c0_6 = arith.constant 0 : index
    %6 = vector.load %arg5[%c0_5, %c0_6] : memref<32x128xf32, #tpu.memory_space<vmem>>, vector<32x128xf32>
    %7 = arith.addf %5, %6 : vector<32x128xf32>
    %c0_7 = arith.constant 0 : index
    %c0_8 = arith.constant 0 : index
    %8 = vector.load %arg6[%c0_7, %c0_8] : memref<32x128xf32, #tpu.memory_space<vmem>>, vector<32x128xf32>
    tpu.vector_store %arg6[%c0_7, %c0_8], %7 {strides = array<i32>} : memref<32x128xf32, #tpu.memory_space<vmem>>, vector<32x128xf32>,
    return
  }
  func.func @transform_0(%arg0: i32, %arg1: i32) -> (i32, i32) {
    %c0_i32 = arith.constant 0 : i32
    %c0_i32_0 = arith.constant 0 : i32
    return %arg0, %c0_i32 : i32, i32
  }
  func.func @transform_1(%arg0: i32, %arg1: i32) -> (i32, i32) {
    %c0_i32 = arith.constant 0 : i32
    %c0_i32_0 = arith.constant 0 : i32
    return %c0_i32, %arg1 : i32, i32
  }
  func.func @transform_2(%arg0: i32, %arg1: i32) -> (i32, i32) {
    %c0_i32 = arith.constant 0 : i32
    %c0_i32_0 = arith.constant 0 : i32
    return %c0_i32, %arg1 : i32, i32
  }
  func.func @transform_3(%arg0: i32, %arg1: i32) -> (i32, i32) {
    %c0_i32 = arith.constant 0 : i32
    return %arg0, %arg1 : i32, i32
  }
  func.func @transform_4(%arg0: i32, %arg1: i32) -> (i32, i32) {
    %c0_i32 = arith.constant 0 : i32
    return %arg0, %arg1 : i32, i32
  }
}

module attributes {stable_mosaic.version = 11 : i64} {
  func.func @_gemm_bias_res_kernel(%arg0: i32, %arg1: i32, %arg2: memref<32x256xf32, #tpu.memory_space<vmem>>, %arg3: memref<256x128xf32, #tpu.memory_space<vmem>>, %arg4: memref<1x128xf32, #tpu.memory_space<vmem>>, %arg5: memref<32x128xf32, #tpu.memory_space<vmem>>, %arg6: memref<32x128xf32, #tpu.memory_space<vmem>>) attributes {dimension_semantics = [#tpu.dimension_semantics<parallel>, #tpu.dimension_semantics<parallel>], iteration_bounds = array<i64: 1, 1>, scalar_prefetch = 0 : i64, scratch_operands = 0 : i64, tpu.core_type = #tpu.core_type<tc>, window_params = [{transform_indices = @transform_0, window_bounds = array<i64: 32, 256>}, {transform_indices = @transform_1, window_bounds = array<i64: 256, 128>}, {transform_indices = @transform_2, window_bounds = array<i64: 1, 128>}, {transform_indices = @transform_3, window_bounds = array<i64: 32, 128>}, {transform_indices = @transform_4, window_bounds = array<i64: 32, 128>}]} {
    %c0 = arith.constant 0 : index
    %c0_0 = arith.constant 0 : index
    %0 = vector.load %arg2[%c0, %c0_0] : memref<32x256xf32, #tpu.memory_space<vmem>>, vector<32x256xf32>
    %c0_1 = arith.constant 0 : index
    %c0_2 = arith.constant 0 : index
    %1 = vector.load %arg3[%c0_1, %c0_2] : memref<256x128xf32, #tpu.memory_space<vmem>>, vector<256x128xf32>
    %cst = arith.constant dense<0.000000e+00> : vector<32x128xf32>
    %2 = tpu.matmul %0, %1, %cst {dimension_numbers = #tpu.dot_dimension_numbers<[1], [0], [0], [1], [0, 0, 1, 1], [], []>} : vector<32x256xf32>, vector<256x128xf32>, vector<32x128xf32> -> vector<32x128xf32>
    %c0_3 = arith.constant 0 : index
    %c0_4 = arith.constant 0 : index
    %3 = vector.load %arg4[%c0_3, %c0_4] : memref<1x128xf32, #tpu.memory_space<vmem>>, vector<1x128xf32>
    %4 = vector.broadcast %3 : vector<1x128xf32> to vector<32x128xf32>
    %5 = arith.addf %2, %4 : vector<32x128xf32>
    %c0_5 = arith.constant 0 : index
    %c0_6 = arith.constant 0 : index
    %6 = vector.load %arg5[%c0_5, %c0_6] : memref<32x128xf32, #tpu.memory_space<vmem>>, vector<32x128xf32>
    %7 = arith.addf %5, %6 : vector<32x128xf32>
    %c0_7 = arith.constant 0 : index
    %c0_8 = arith.constant 0 : index
    %8 = vector.load %arg6[%c0_7, %c0_8] : memref<32x128xf32, #tpu.memory_space<vmem>>, vector<32x128xf32>
    tpu.vector_store %arg6[%c0_7, %c0_8], %7 {strides = array<i32>} : memref<32x128xf32, #tpu.memory_space<vmem>>, vector<32x128xf32>,
    return
  }
  func.func @transform_0(%arg0: i32, %arg1: i32) -> (i32, i32) {
    %c0_i32 = arith.constant 0 : i32
    %c0_i32_0 = arith.constant 0 : i32
    return %arg0, %c0_i32 : i32, i32
  }
  func.func @transform_1(%arg0: i32, %arg1: i32) -> (i32, i32) {
    %c0_i32 = arith.constant 0 : i32
    %c0_i32_0 = arith.constant 0 : i32
    return %c0_i32, %arg1 : i32, i32
  }
  func.func @transform_2(%arg0: i32, %arg1: i32) -> (i32, i32) {
    %c0_i32 = arith.constant 0 : i32
    %c0_i32_0 = arith.constant 0 : i32
    return %c0_i32, %arg1 : i32, i32
  }
  func.func @transform_3(%arg0: i32, %arg1: i32) -> (i32, i32) {
    %c0_i32 = arith.constant 0 : i32
    return %arg0, %arg1 : i32, i32
  }
  func.func @transform_4(%arg0: i32, %arg1: i32) -> (i32, i32) {
    %c0_i32 = arith.constant 0 : i32
    return %arg0, %arg1 : i32, i32
  }
}

module attributes {stable_mosaic.version = 11 : i64} {
  func.func @_ln_gemm_kernel(%arg0: i32, %arg1: i32, %arg2: memref<32x128xf32, #tpu.memory_space<vmem>>, %arg3: memref<1x128xf32, #tpu.memory_space<vmem>>, %arg4: memref<1x128xf32, #tpu.memory_space<vmem>>, %arg5: memref<128x384xf32, #tpu.memory_space<vmem>>, %arg6: memref<1x384xf32, #tpu.memory_space<vmem>>, %arg7: memref<32x384xf32, #tpu.memory_space<vmem>>) attributes {dimension_semantics = [#tpu.dimension_semantics<parallel>, #tpu.dimension_semantics<parallel>], iteration_bounds = array<i64: 1, 1>, scalar_prefetch = 0 : i64, scratch_operands = 0 : i64, tpu.core_type = #tpu.core_type<tc>, window_params = [{transform_indices = @transform_0, window_bounds = array<i64: 32, 128>}, {pipeline_mode = #tpu.pipeline_mode<synchronous>, transform_indices = @transform_1, window_bounds = array<i64: 1, 128>}, {pipeline_mode = #tpu.pipeline_mode<synchronous>, transform_indices = @transform_2, window_bounds = array<i64: 1, 128>}, {transform_indices = @transform_3, window_bounds = array<i64: 128, 384>}, {transform_indices = @transform_4, window_bounds = array<i64: 1, 384>}, {transform_indices = @transform_5, window_bounds = array<i64: 32, 384>}]} {
    %c0 = arith.constant 0 : index
    %c0_0 = arith.constant 0 : index
    %0 = vector.load %arg2[%c0, %c0_0] : memref<32x128xf32, #tpu.memory_space<vmem>>, vector<32x128xf32>
    %cst = arith.constant dense<0.000000e+00> : vector<32xf32>
    %1 = vector.multi_reduction <add>, %0, %cst [1] : vector<32x128xf32> to vector<32xf32>
    %2 = vector.shape_cast %1 : vector<32xf32> to vector<32x1xf32>
    %3 = arith.mulf %0, %0 : vector<32x128xf32>
    %cst_1 = arith.constant dense<0.000000e+00> : vector<32xf32>
    %4 = vector.multi_reduction <add>, %3, %cst_1 [1] : vector<32x128xf32> to vector<32xf32>
    %5 = vector.shape_cast %4 : vector<32xf32> to vector<32x1xf32>
    %cst_2 = arith.constant 7.812500e-03 : f32
    %6 = vector.broadcast %cst_2 : f32 to vector<32x1xf32>
    %7 = arith.mulf %2, %6 : vector<32x1xf32>
    %cst_3 = arith.constant 7.812500e-03 : f32
    %8 = vector.broadcast %cst_3 : f32 to vector<32x1xf32>
    %9 = arith.mulf %5, %8 : vector<32x1xf32>
    %10 = arith.mulf %7, %7 : vector<32x1xf32>
    %11 = arith.subf %9, %10 : vector<32x1xf32>
    %cst_4 = arith.constant 0.000000e+00 : f32
    %12 = vector.broadcast %cst_4 : f32 to vector<32x1xf32>
    %13 = arith.maximumf %11, %12 : vector<32x1xf32>
    %cst_5 = arith.constant 9.99999974E-6 : f32
    %14 = vector.broadcast %cst_5 : f32 to vector<32x1xf32>
    %15 = arith.addf %13, %14 : vector<32x1xf32>
    %16 = math.rsqrt %15 : vector<32x1xf32>
    %c0_6 = arith.constant 0 : index
    %c0_7 = arith.constant 0 : index
    %17 = vector.load %arg3[%c0_6, %c0_7] : memref<1x128xf32, #tpu.memory_space<vmem>>, vector<1x128xf32>
    %18 = vector.broadcast %16 : vector<32x1xf32> to vector<32x128xf32>
    %19 = vector.broadcast %17 : vector<1x128xf32> to vector<32x128xf32>
    %20 = arith.mulf %18, %19 : vector<32x128xf32>
    %c0_8 = arith.constant 0 : index
    %c0_9 = arith.constant 0 : index
    %21 = vector.load %arg4[%c0_8, %c0_9] : memref<1x128xf32, #tpu.memory_space<vmem>>, vector<1x128xf32>
    %22 = vector.broadcast %7 : vector<32x1xf32> to vector<32x128xf32>
    %23 = arith.mulf %22, %20 : vector<32x128xf32>
    %24 = vector.broadcast %21 : vector<1x128xf32> to vector<32x128xf32>
    %25 = arith.subf %24, %23 : vector<32x128xf32>
    %26 = arith.mulf %0, %20 : vector<32x128xf32>
    %27 = arith.addf %26, %25 : vector<32x128xf32>
    %c0_10 = arith.constant 0 : index
    %c0_11 = arith.constant 0 : index
    %28 = vector.load %arg5[%c0_10, %c0_11] : memref<128x384xf32, #tpu.memory_space<vmem>>, vector<128x384xf32>
    %cst_12 = arith.constant dense<0.000000e+00> : vector<32x384xf32>
    %29 = tpu.matmul %27, %28, %cst_12 {dimension_numbers = #tpu.dot_dimension_numbers<[1], [0], [0], [1], [0, 0, 1, 1], [], []>} : vector<32x128xf32>, vector<128x384xf32>, vector<32x384xf32> -> vector<32x384xf32>
    %c0_13 = arith.constant 0 : index
    %c0_14 = arith.constant 0 : index
    %30 = vector.load %arg6[%c0_13, %c0_14] : memref<1x384xf32, #tpu.memory_space<vmem>>, vector<1x384xf32>
    %31 = vector.broadcast %30 : vector<1x384xf32> to vector<32x384xf32>
    %32 = arith.addf %29, %31 : vector<32x384xf32>
    %c0_15 = arith.constant 0 : index
    %c0_16 = arith.constant 0 : index
    %33 = vector.load %arg7[%c0_15, %c0_16] : memref<32x384xf32, #tpu.memory_space<vmem>>, vector<32x384xf32>
    tpu.vector_store %arg7[%c0_15, %c0_16], %32 {strides = array<i32>} : memref<32x384xf32, #tpu.memory_space<vmem>>, vector<32x384xf32>,
    return
  }
  func.func @transform_0(%arg0: i32, %arg1: i32) -> (i32, i32) {
    %c0_i32 = arith.constant 0 : i32
    %c0_i32_0 = arith.constant 0 : i32
    return %arg0, %c0_i32 : i32, i32
  }
  func.func @transform_1(%arg0: i32, %arg1: i32) -> (i32, i32) {
    %c0_i32 = arith.constant 0 : i32
    %c0_i32_0 = arith.constant 0 : i32
    %c0_i32_1 = arith.constant 0 : i32
    return %c0_i32, %c0_i32_0 : i32, i32
  }
  func.func @transform_2(%arg0: i32, %arg1: i32) -> (i32, i32) {
    %c0_i32 = arith.constant 0 : i32
    %c0_i32_0 = arith.constant 0 : i32
    %c0_i32_1 = arith.constant 0 : i32
    return %c0_i32, %c0_i32_0 : i32, i32
  }
  func.func @transform_3(%arg0: i32, %arg1: i32) -> (i32, i32) {
    %c0_i32 = arith.constant 0 : i32
    %c0_i32_0 = arith.constant 0 : i32
    return %c0_i32, %arg1 : i32, i32
  }
  func.func @transform_4(%arg0: i32, %arg1: i32) -> (i32, i32) {
    %c0_i32 = arith.constant 0 : i32
    %c0_i32_0 = arith.constant 0 : i32
    return %c0_i32, %arg1 : i32, i32
  }
  func.func @transform_5(%arg0: i32, %arg1: i32) -> (i32, i32) {
    %c0_i32 = arith.constant 0 : i32
    return %arg0, %arg1 : i32, i32
  }
}

</mosaic_0001>

<bundles_post_ra>
// kernel: a_call__.10
= control target key start
LH: loop header
LB: loop body
LE: loop exit
PB: predicated region body
PF: predicated region fallthrough
CT: control target
= control target key end

     0   :  { %v558_v55 = vmov 0.0   ;;  %s887_s0 = inlined_call_operand.vmem [shape: f32[32,128], index: 0, kind: input, shape index: {}]   ;;  %s888_s3 = inlined_call_operand.vmem [shape: f32[128,256], index: 3, kind: input, shape index: {}]   ;;  %s889_s1 = inlined_call_operand.vmem [shape: f32[1,128], index: 1, kind: input, shape index: {}]   ;;  %s890_s2 = inlined_call_operand.vmem [shape: f32[1,128], index: 2, kind: input, shape index: {}]   ;;  %s891_s4 = inlined_call_operand.vmem [shape: f32[1,256], index: 4, kind: input, shape index: {}]   ;;  %s892_s5 = inlined_call_operand.vmem [shape: f32[32,256], index: 5, kind: output, shape index: {}]  }
   0x1   :  { %v592_v0 = vld [vmem:[%s887_s0] sm:$0xff]  ;;  %v597_v1 = vld [vmem:[%s887_s0 + $0x10] sm:$0xff]  ;;  %v107_v3 = vld [vmem:[%s888_s3 + $0x8] sm:$0xff]  ;;  %214 = vmatprep.mubr.f32.mxu0 %v558_v55  ;;  %226 = vmatprep.mubr.f32.mxu1 %v558_v55 }
   0x2   :  { %24 = vadd.xlane.f32.xlu0 %v592_v0  ;;  %v32_v2 = vmul.f32 %v592_v0, %v592_v0  ;;  %v109_v4 = vld [vmem:[%s888_s3 + $0x18] sm:$0xff]  ;;  %v106_v6 = vld [vmem:[%s888_s3] sm:$0xff]  ;;  %v108_v7 = vld [vmem:[%s888_s3 + $0x10] sm:$0xff]  ;;  %v34_v8 = vmul.f32 %v597_v1, %v597_v1 }
   0x3   :  { %v469_v5 = vpack.c.bf16 %v109_v4, %v107_v3  ;;  %v471_v9 = vpack.c.bf16 %v108_v7, %v106_v6  ;;  %v620_v10 = vld [vmem:[%s887_s0 + $0x8] sm:$0xff]  ;;  %v625_v11 = vld [vmem:[%s887_s0 + $0x18] sm:$0xff]  ;;  %v110_v17 = vld [vmem:[%s888_s3 + $0x20] sm:$0xff] }
   0x4   :  { %36 = vadd.xlane.f32.xlu1 %v32_v2  ;;  %v33_v12 = vmul.f32 %v620_v10, %v620_v10  ;;  %v35_v13 = vmul.f32 %v625_v11, %v625_v11  ;;  %v111_v14 = vld [vmem:[%s888_s3 + $0x28] sm:$0xff]  ;;  %v113_v15 = vld [vmem:[%s888_s3 + $0x38] sm:$0xff]  ;;  %v112_v18 = vld [vmem:[%s888_s3 + $0x30] sm:$0xff] }
   0x5   :  { %470 = vmatprep.subr.bf16.mxu0 %v469_v5  ;;  %501 = vmatprep.subr.bf16.mxu1 %v469_v5  ;;  %v473_v16 = vpack.c.bf16 %v113_v15, %v111_v14  ;;  %v475_v19 = vpack.c.bf16 %v112_v18, %v110_v17  ;;  %v115_v20 = vld [vmem:[%s888_s3 + $0x48] sm:$0xff]  ;;  %v117_v21 = vld [vmem:[%s888_s3 + $0x58] sm:$0xff]  ;;  %v114_v23 = vld [vmem:[%s888_s3 + $0x40] sm:$0xff] }
   0x6   :  { %28 = vadd.xlane.f32.xlu0 %v597_v1  ;;  %472 = vmatpush1.bf16.msra.mxu0 %v471_v9  ;;  %v477_v22 = vpack.c.bf16 %v117_v21, %v115_v20  ;;  %v116_v24 = vld [vmem:[%s888_s3 + $0x50] sm:$0xff]  ;;  %v119_v26 = vld [vmem:[%s888_s3 + $0x68] sm:$0xff]  ;;  %v121_v27 = vld [vmem:[%s888_s3 + $0x78] sm:$0xff] }
   0x7   :  { %509 = vmatpush1.bf16.msra.mxu1 %v471_v9  ;;  %474 = vmatprep.subr.bf16.mxu0 %v473_v16  ;;  %v479_v25 = vpack.c.bf16 %v116_v24, %v114_v23  ;;  %v481_v28 = vpack.c.bf16 %v121_v27, %v119_v26  ;;  %v118_v29 = vld [vmem:[%s888_s3 + $0x60] sm:$0xff]  ;;  %v120_v30 = vld [vmem:[%s888_s3 + $0x70] sm:$0xff]  ;;  %v123_v32 = vld [vmem:[%s888_s3 + $0x88] sm:$0xff] }
   0x8   :  { %40 = vadd.xlane.f32.xlu1 %v34_v8  ;;  %502 = vmatprep.subr.bf16.mxu1 %v473_v16  ;;  %v483_v31 = vpack.c.bf16 %v120_v30, %v118_v29  ;;  %v125_v33 = vld [vmem:[%s888_s3 + $0x98] sm:$0xff]  ;;  %v122_v35 = vld [vmem:[%s888_s3 + $0x80] sm:$0xff]  ;;  %v124_v36 = vld [vmem:[%s888_s3 + $0x90] sm:$0xff] }
   0x9   :  { %v485_v34 = vpack.c.bf16 %v125_v33, %v123_v32  ;;  %v487_v37 = vpack.c.bf16 %v124_v36, %v122_v35  ;;  %v127_v38 = vld [vmem:[%s888_s3 + $0xa8] sm:$0xff]  ;;  %v129_v39 = vld [vmem:[%s888_s3 + $0xb8] sm:$0xff]  ;;  %v126_v41 = vld [vmem:[%s888_s3 + $0xa0] sm:$0xff] }
   0xa   :  { %26 = vadd.xlane.f32.xlu0 %v620_v10  ;;  %476 = vmatpush1.bf16.msra.mxu0 %v475_v19  ;;  %v489_v40 = vpack.c.bf16 %v129_v39, %v127_v38  ;;  %v128_v42 = vld [vmem:[%s888_s3 + $0xb0] sm:$0xff]  ;;  %v131_v44 = vld [vmem:[%s888_s3 + $0xc8] sm:$0xff]  ;;  %v133_v45 = vld [vmem:[%s888_s3 + $0xd8] sm:$0xff] }
   0xb   :  { %510 = vmatpush1.bf16.msra.mxu1 %v475_v19  ;;  %478 = vmatprep.subr.bf16.mxu0 %v477_v22  ;;  %v491_v43 = vpack.c.bf16 %v128_v42, %v126_v41  ;;  %v493_v46 = vpack.c.bf16 %v133_v45, %v131_v44  ;;  %v130_v47 = vld [vmem:[%s888_s3 + $0xc0] sm:$0xff]  ;;  %v132_v48 = vld [vmem:[%s888_s3 + $0xd0] sm:$0xff]  ;;  %v135_v50 = vld [vmem:[%s888_s3 + $0xe8] sm:$0xff] }
   0xc   :  { %30 = vadd.xlane.f32.xlu1 %v625_v11  ;;  %503 = vmatprep.subr.bf16.mxu1 %v477_v22  ;;  %v495_v49 = vpack.c.bf16 %v132_v48, %v130_v47  ;;  %v137_v51 = vld [vmem:[%s888_s3 + $0xf8] sm:$0xff]  ;;  %v134_v52 = vld [vmem:[%s888_s3 + $0xe0] sm:$0xff]  ;;  %v136_v54 = vld [vmem:[%s888_s3 + $0xf0] sm:$0xff] }
   0xd   :  { %v497_v53 = vpack.c.bf16 %v137_v51, %v135_v50  ;;  %v499_v56 = vpack.c.bf16 %v136_v54, %v134_v52  ;;  %v468_v32 = vld [vmem:[%s890_s2] ss:$0 sm:$0xff] }
   0xe   :  { %38 = vadd.xlane.f32.xlu0 %v33_v12  ;;  %480 = vmatpush1.bf16.msra.mxu0 %v479_v25 }
   0xf   :  { %511 = vmatpush1.bf16.msra.mxu1 %v479_v25  ;;  %482 = vmatprep.subr.bf16.mxu0 %v481_v28 }
  0x10   :  { %42 = vadd.xlane.f32.xlu1 %v35_v13  ;;  %504 = vmatprep.subr.bf16.mxu1 %v481_v28  ;;  %v467_v28 = vld [vmem:[%s889_s1] ss:$0 sm:$0xff] }
  0x12   :  { %484 = vmatpush1.bf16.msra.mxu0 %v483_v31 }
  0x13   :  { %512 = vmatpush1.bf16.msra.mxu1 %v483_v31  ;;  %486 = vmatprep.subr.bf16.mxu0 %v485_v34 }
  0x14   :  { %505 = vmatprep.subr.bf16.mxu1 %v485_v34 }
  0x16   :  { %488 = vmatpush1.bf16.msra.mxu0 %v487_v37 }
  0x17   :  { %513 = vmatpush1.bf16.msra.mxu1 %v487_v37  ;;  %490 = vmatprep.subr.bf16.mxu0 %v489_v40 }
  0x18   :  { %506 = vmatprep.subr.bf16.mxu1 %v489_v40 }
  0x1a   :  { %492 = vmatpush1.bf16.msra.mxu0 %v491_v43 }
  0x1b   :  { %514 = vmatpush1.bf16.msra.mxu1 %v491_v43  ;;  %494 = vmatprep.subr.bf16.mxu0 %v493_v46 }
  0x1c   :  { %507 = vmatprep.subr.bf16.mxu1 %v493_v46 }
  0x1e   :  { %496 = vmatpush1.bf16.msra.mxu0 %v495_v49 }
  0x1f   :  { %515 = vmatpush1.bf16.msra.mxu1 %v495_v49  ;;  %498 = vmatprep.subr.bf16.mxu0 %v497_v53 }
  0x20   :  { %508 = vmatprep.subr.bf16.mxu1 %v497_v53  ;;  %v140_v53 = vlaneseq }
  0x22   :  { %500 = vmatpush1.bf16.msra.mxu0 %v499_v56  ;;  %v141_v54 = vshrl.u32 %v140_v53, 7 }
  0x23   :  { %516 = vmatpush1.bf16.msra.mxu1 %v499_v56 }
  0x24   :  { %v142_v56 = vsub.s32 0, %v141_v54 }
  0x8f   :  { %v25_v57 = vpop.xlane.xlu0 %24 }
  0x90   :  { %v44_v58 = vmul.f32 0.0078125, %v25_v57  ;;  %v138_v57 = vld [vmem:[%s891_s4] sm:$0x3] }
  0x91   :  { %v37_v59 = vpop.xlane.xlu1 %36 }
  0x92   :  { %v52_v60 = vmul.f32 %v44_v58, %v44_v58  ;;  %v48_v61 = vmul.f32 0.0078125, %v37_v59 }
  0x93   :  { %v29_v62 = vpop.xlane.xlu0 %28 }
  0x94   :  { %v56_v63 = vsub.f32 %v48_v61, %v52_v60  ;;  %v46_v2 = vmul.f32 0.0078125, %v29_v62 }
  0x95   :  { %v41_v3 = vpop.xlane.xlu1 %40 }
  0x96   :  { %v60_v4 = vmax.f32 %v56_v63, 0.0  ;;  %v54_v5 = vmul.f32 %v46_v2, %v46_v2  ;;  %v50_v6 = vmul.f32 0.0078125, %v41_v3 }
  0x97   :  { %v27_v7 = vpop.xlane.xlu0 %26 }
  0x98   :  { %v64_v8 = vadd.f32 1e-05, %v60_v4  ;;  %v58_v9 = vsub.f32 %v50_v6, %v54_v5  ;;  %v45_v12 = vmul.f32 0.0078125, %v27_v7 }
  0x99   :  { %v31_v13 = vpop.xlane.xlu1 %30 }
  0x9a   :  { %518 = vrsqrt.f32 %v64_v8  ;;  %v62_v14 = vmax.f32 %v58_v9, 0.0  ;;  %v53_v15 = vmul.f32 %v45_v12, %v45_v12  ;;  %v47_v16 = vmul.f32 0.0078125, %v31_v13 }
  0x9b   :  { %v39_v17 = vpop.xlane.xlu0 %38 }
  0x9c   :  { %v66_v18 = vadd.f32 1e-05, %v62_v14  ;;  %v49_v19 = vmul.f32 0.0078125, %v39_v17  ;;  %v55_v21 = vmul.f32 %v47_v16, %v47_v16 }
  0x9d   :  { %v43_v20 = vpop.xlane.xlu1 %42 }
  0x9e   :  { %520 = vrsqrt.f32 %v66_v18  ;;  %v57_v22 = vsub.f32 %v49_v19, %v53_v15  ;;  %v51_v23 = vmul.f32 0.0078125, %v43_v20 }
  0xa0   :  { %v61_v24 = vmax.f32 %v57_v22, 0.0  ;;  %v59_v25 = vsub.f32 %v51_v23, %v55_v21 }
  0xa2   :  { %v65_v26 = vadd.f32 1e-05, %v61_v24  ;;  %v63_v27 = vmax.f32 %v59_v25, 0.0 }
  0xa4   :  { %v519_v29 = vpop.eup %518  ;;  %522 = vrsqrt.f32 %v65_v26  ;;  %v67_v30 = vadd.f32 1e-05, %v63_v27 }
  0xa5   :  { %v79_v31 = vmul.f32 %v519_v29, %v467_v28 }
  0xa6   :  { %524 = vrsqrt.f32 %v67_v30 }
  0xa7   :  { %v84_v33 = vmul.f32 %v79_v31, %v44_v58  ;;  %v98_v36 = vmul.f32 %v79_v31, %v592_v0  ;;  %v146_v58 = vsub.s32 1, %v141_v54 }
  0xa8   :  { %v521_v34 = vpop.eup %520 }
  0xa9   :  { %v94_v35 = vsub.f32 %v468_v32, %v84_v33  ;;  %v81_v37 = vmul.f32 %v521_v34, %v467_v28  ;;  %v147_v59 = vrot.slane %v138_v57, %v146_v58 }
  0xab   :  { %v102_v38 = vadd.f32 %v98_v36, %v94_v35  ;;  %v86_v39 = vmul.f32 %v81_v37, %v46_v2  ;;  %v100_v41 = vmul.f32 %v81_v37, %v597_v1 }
  0xad   :  { %215 = vmatmul.mubr.f32.vlgmr.msra.gmra.mrb[0].mxu0 %v102_v38  ;;  %v96_v40 = vsub.f32 %v468_v32, %v86_v39 }
  0xae   :  { %v523_v42 = vpop.eup %522  ;;  %220 = vmatprep.mubr.f32.mxu0 %v558_v55 }
  0xaf   :  { %v104_v43 = vadd.f32 %v100_v41, %v96_v40  ;;  %v80_v44 = vmul.f32 %v523_v42, %v467_v28 }
  0xb0   :  { %v525_v45 = vpop.eup %524 }
  0xb1   :  { %227 = vmatmul.mubr.f32.vlgmr.msra.gmra.mrb[0].mxu1 %v104_v43  ;;  %v85_v46 = vmul.f32 %v80_v44, %v45_v12  ;;  %v82_v47 = vmul.f32 %v525_v45, %v467_v28  ;;  %v99_v0 = vmul.f32 %v80_v44, %v620_v10 }
  0xb2   :  { %232 = vmatprep.mubr.f32.mxu1 %v558_v55  ;;  %v143_v55 = vrot.slane %v138_v57, %v142_v56 }
  0xb3   :  { %v95_v48 = vsub.f32 %v468_v32, %v85_v46  ;;  %v87_v49 = vmul.f32 %v82_v47, %v47_v16  ;;  %v101_v52 = vmul.f32 %v82_v47, %v625_v11 }
  0xb5   :  { %v103_v50 = vadd.f32 %v99_v0, %v95_v48  ;;  %v97_v51 = vsub.f32 %v468_v32, %v87_v49 }
  0xb7   :  { %221 = vmatmul.mubr.f32.gmra.mrb[2].mxu0 %v103_v50  ;;  %v105_v1 = vadd.f32 %v101_v52, %v97_v51 }
  0xb9   :  { %233 = vmatmul.mubr.f32.gmra.mrb[2].mxu1 %v105_v1 }
 0x180   :  { %v216_v60 = vpop.f32.mrb[0].mxu0 }
 0x181   :  { %v217_v10 = vadd.f32 %v216_v60, %v143_v55  ;;  %v218_v61 = vpop.f32.mrb[1].mxu0 }
 0x182   :  { %v219_v62 = vadd.f32 %v218_v61, %v147_v59 }
 0x183   :  { %v734_v63 = vmul.f32 0.70710677, %v217_v10  ;;  %v765_v38 = vmul.f32 0.5, %v217_v10 }
 0x184   :  { %v736_v11 = vmul.f32 0.70710677, %v219_v62  ;;  %v228_v2 = vpop.f32.mrb[0].mxu1  ;;  %v770_v41 = vmul.f32 0.5, %v219_v62 }
 0x185   :  { %v255_v3 = vand.u32 2147483647, %v734_v63  ;;  %v739_v4 = vadd.f32 %v228_v2, %v143_v55  ;;  %v230_v5 = vpop.f32.mrb[1].mxu1  ;;  %vm415_vm0 = vcmp.ge.f32.partialorder %v734_v63, 0.0 }
 0x186   :  { %v256_v6 = vand.u32 2147483647, %v736_v11  ;;  %v742_v7 = vadd.f32 %v230_v5, %v147_v59  ;;  %vm416_vm1 = vcmp.ge.f32.partialorder %v736_v11, 0.0 }
 0x187   :  { %v263_v8 = vmul.f32 0.3275911, %v255_v3  ;;  %v745_v9 = vmul.f32 0.70710677, %v739_v4  ;;  %v367_v21 = vsub.f32 0.0, %v255_v3 }
 0x188   :  { %v264_v12 = vmul.f32 0.3275911, %v256_v6  ;;  %v748_v13 = vmul.f32 0.70710677, %v742_v7  ;;  %v368_v24 = vsub.f32 0.0, %v256_v6 }
 0x189   :  { %v271_v14 = vadd.f32 1.0, %v263_v8  ;;  %v259_v15 = vand.u32 2147483647, %v745_v9  ;;  %v375_v32 = vmul.f32 %v367_v21, %v255_v3  ;;  %vm419_vm2 = vcmp.ge.f32.partialorder %v745_v9, 0.0 }
 0x18a   :  { %v272_v16 = vadd.f32 1.0, %v264_v12  ;;  %v260_v17 = vand.u32 2147483647, %v748_v13  ;;  %v222_v18 = vpop.f32.mrb[2].mxu0  ;;  %v376_v34 = vmul.f32 %v368_v24, %v256_v6  ;;  %vm420_vm3 = vcmp.ge.f32.partialorder %v748_v13, 0.0 }
 0x18b   :  { %526 = vrcp.f32 %v271_v14  ;;  %v267_v19 = vmul.f32 0.3275911, %v259_v15  ;;  %v224_v20 = vpop.f32.mrb[3].mxu0  ;;  %v752_v26 = vadd.f32 %v222_v18, %v143_v55  ;;  %v371_v30 = vsub.f32 0.0, %v259_v15 }
 0x18c   :  { %528 = vrcp.f32 %v272_v16  ;;  %v268_v22 = vmul.f32 0.3275911, %v260_v17  ;;  %v234_v23 = vpop.f32.mrb[2].mxu1  ;;  %v754_v29 = vadd.f32 %v224_v20, %v147_v59  ;;  %v372_v35 = vsub.f32 0.0, %v260_v17 }
 0x18d   :  { %v275_v25 = vadd.f32 1.0, %v267_v19  ;;  %v236_v27 = vpop.f32.mrb[3].mxu1  ;;  %v757_v31 = vmul.f32 0.70710677, %v752_v26  ;;  %v763_v37 = vadd.f32 %v234_v23, %v143_v55  ;;  %v379_v42 = vmul.f32 %v371_v30, %v259_v15 }
 0x18e   :  { %v276_v28 = vadd.f32 1.0, %v268_v22  ;;  %v760_v33 = vmul.f32 0.70710677, %v754_v29  ;;  %v768_v40 = vadd.f32 %v236_v27, %v147_v59  ;;  %v383_v45 = vmul.f32 1.442695, %v375_v32 }
 0x18f   :  { %530 = vrcp.f32 %v275_v25  ;;  %v257_v36 = vand.u32 2147483647, %v757_v31  ;;  %v773_v44 = vmul.f32 0.70710677, %v763_v37  ;;  %v385_v0 = vmul.f32 1.442695, %v376_v34 }
 0x190   :  { %532 = vrcp.f32 %v276_v28  ;;  %v258_v39 = vand.u32 2147483647, %v760_v33  ;;  %v776_v47 = vmul.f32 0.70710677, %v768_v40  ;;  %v380_v49 = vmul.f32 %v372_v35, %v260_v17 }
 0x191   :  { %v265_v43 = vmul.f32 0.3275911, %v257_v36  ;;  %v261_v51 = vand.u32 2147483647, %v773_v44  ;;  %v369_v53 = vsub.f32 0.0, %v257_v36  ;;  %v798_v32 = vmul.f32 0.5, %v739_v4 }
 0x192   :  { %v266_v46 = vmul.f32 0.3275911, %v258_v39  ;;  %v262_v56 = vand.u32 2147483647, %v776_v47  ;;  %v391_v58 = vmul.f32 1.442695, %v379_v42 }
 0x193   :  { %v273_v50 = vadd.f32 1.0, %v265_v43  ;;  %v269_v55 = vmul.f32 0.3275911, %v261_v51  ;;  %v370_v60 = vsub.f32 0.0, %v258_v39  ;;  %v373_v10 = vsub.f32 0.0, %v261_v51 }
 0x194   :  { %v274_v54 = vadd.f32 1.0, %v266_v46  ;;  %v270_v3 = vmul.f32 0.3275911, %v262_v56  ;;  %v393_v12 = vmul.f32 1.442695, %v380_v49  ;;  %v377_v14 = vmul.f32 %v369_v53, %v257_v36 }
 0x195   :  { %v778_v48 = vpop.eup %526  ;;  %534 = vrcp.f32 %v273_v50  ;;  %v277_v2 = vadd.f32 1.0, %v269_v55  ;;  %v378_v20 = vmul.f32 %v370_v60, %v258_v39  ;;  %v381_v21 = vmul.f32 %v373_v10, %v261_v51 }
 0x196   :  { %v781_v52 = vpop.eup %528  ;;  %v295_v1 = vmul.f32 1.0614054, %v778_v48  ;;  %536 = vrcp.f32 %v274_v54  ;;  %v278_v17 = vadd.f32 1.0, %v270_v3  ;;  %v374_v24 = vsub.f32 0.0, %v262_v56 }
 0x197   :  { %v296_v57 = vmul.f32 1.0614054, %v781_v52  ;;  %538 = vpow2.f32 %v383_v45  ;;  %v387_v28 = vmul.f32 1.442695, %v377_v14  ;;  %v389_v42 = vmul.f32 1.442695, %v378_v20 }
 0x198   :  { %v303_v59 = vadd.f32 -1.4531521, %v295_v1  ;;  %540 = vrcp.f32 %v277_v2  ;;  %v382_v35 = vmul.f32 %v374_v24, %v262_v56  ;;  %v244_v9 = vmul.f32 0.5, %v742_v7 }
 0x199   :  { %v786_v61 = vpop.eup %530  ;;  %v304_v62 = vadd.f32 -1.4531521, %v296_v57  ;;  %542 = vrcp.f32 %v278_v17  ;;  %vm417_vm4 = vcmp.ge.f32.partialorder %v757_v31, 0.0  ;;  %vm418_vm5 = vcmp.ge.f32.partialorder %v760_v33, 0.0 }
 0x19a   :  { %v788_v5 = vpop.eup %532  ;;  %v311_v6 = vmul.f32 %v778_v48, %v303_v59  ;;  %v299_v8 = vmul.f32 1.0614054, %v786_v61  ;;  %544 = vpow2.f32 %v385_v0  ;;  %v395_v0 = vmul.f32 1.442695, %v381_v21 }
 0x19b   :  { %v312_v15 = vmul.f32 %v781_v52, %v304_v62  ;;  %v300_v16 = vmul.f32 1.0614054, %v788_v5  ;;  %546 = vpow2.f32 %v391_v58  ;;  %v397_v57 = vmul.f32 1.442695, %v382_v35 }
 0x19c   :  { %v319_v18 = vadd.f32 1.4214138, %v311_v6  ;;  %v307_v19 = vadd.f32 -1.4531521, %v299_v8  ;;  %548 = vpow2.f32 %v393_v12  ;;  %vm421_vm6 = vcmp.ge.f32.partialorder %v773_v44, 0.0 }
 0x19d   :  { %v320_v22 = vadd.f32 1.4214138, %v312_v15  ;;  %v308_v23 = vadd.f32 -1.4531521, %v300_v16  ;;  %550 = vpow2.f32 %v387_v28  ;;  %vm422_vm7 = vcmp.ge.f32.partialorder %v776_v47, 0.0 }
 0x19e   :  { %v327_v25 = vmul.f32 %v778_v48, %v319_v18  ;;  %v315_v27 = vmul.f32 %v786_v61, %v307_v19  ;;  %552 = vpow2.f32 %v389_v42 }
 0x19f   :  { %v328_v30 = vmul.f32 %v781_v52, %v320_v22  ;;  %v316_v34 = vmul.f32 %v788_v5, %v308_v23  ;;  %v801_v43 = vpop.eup %534  ;;  %554 = vpow2.f32 %v395_v0 }
 0x1a0   :  { %v335_v36 = vadd.f32 -0.28449672, %v327_v25  ;;  %v323_v39 = vadd.f32 1.4214138, %v315_v27  ;;  %v803_v49 = vpop.eup %536  ;;  %v297_v51 = vmul.f32 1.0614054, %v801_v43  ;;  %556 = vpow2.f32 %v397_v57 }
 0x1a1   :  { %v336_v45 = vadd.f32 -0.28449672, %v328_v30  ;;  %v324_v46 = vadd.f32 1.4214138, %v316_v34  ;;  %v539_v1 = vpop.eup %538  ;;  %v298_v56 = vmul.f32 1.0614054, %v803_v49 }
 0x1a2   :  { %v343_v50 = vmul.f32 %v778_v48, %v335_v36  ;;  %v331_v4 = vmul.f32 %v786_v61, %v323_v39  ;;  %v305_v59 = vadd.f32 -1.4531521, %v297_v51  ;;  %v811_v60 = vpop.eup %540 }
 0x1a3   :  { %v344_v53 = vmul.f32 %v781_v52, %v336_v45  ;;  %v332_v54 = vmul.f32 %v788_v5, %v324_v46  ;;  %v306_v2 = vadd.f32 -1.4531521, %v298_v56  ;;  %v301_v12 = vmul.f32 1.0614054, %v811_v60  ;;  %v819_v14 = vpop.eup %542 }
 0x1a4   :  { %v351_v58 = vadd.f32 0.2548296, %v343_v50  ;;  %v339_v55 = vadd.f32 -0.28449672, %v331_v4  ;;  %v313_v8 = vmul.f32 %v801_v43, %v305_v59  ;;  %v545_v18 = vpop.eup %544  ;;  %v302_v25 = vmul.f32 1.0614054, %v819_v14 }
 0x1a5   :  { %v352_v10 = vadd.f32 0.2548296, %v344_v53  ;;  %v340_v62 = vadd.f32 -0.28449672, %v332_v54  ;;  %v314_v17 = vmul.f32 %v803_v49, %v306_v2  ;;  %v309_v21 = vadd.f32 -1.4531521, %v301_v12  ;;  %v547_v27 = vpop.eup %546 }
 0x1a6   :  { %v359_v3 = vmul.f32 %v778_v48, %v351_v58  ;;  %v347_v6 = vmul.f32 %v786_v61, %v339_v55  ;;  %v321_v20 = vadd.f32 1.4214138, %v313_v8  ;;  %v549_v35 = vpop.eup %548  ;;  %v310_v45 = vadd.f32 -1.4531521, %v302_v25 }
 0x1a7   :  { %v360_v15 = vmul.f32 %v781_v52, %v352_v10  ;;  %v348_v16 = vmul.f32 %v788_v5, %v340_v62  ;;  %v322_v24 = vadd.f32 1.4214138, %v314_v17  ;;  %v317_v34 = vmul.f32 %v811_v60, %v309_v21  ;;  %v551_v46 = vpop.eup %550 }
 0x1a8   :  { %v399_v19 = vmul.f32 %v539_v1, %v359_v3  ;;  %v355_v48 = vadd.f32 0.2548296, %v347_v6  ;;  %v329_v30 = vmul.f32 %v801_v43, %v321_v20  ;;  %v318_v54 = vmul.f32 %v819_v14, %v310_v45  ;;  %v553_v56 = vpop.eup %552 }
 0x1a9   :  { %v400_v22 = vmul.f32 %v545_v18, %v360_v15  ;;  %v356_v23 = vadd.f32 0.2548296, %v348_v16  ;;  %v330_v42 = vmul.f32 %v803_v49, %v322_v24  ;;  %v325_v51 = vadd.f32 1.4214138, %v317_v34  ;;  %v555_v59 = vpop.eup %554 }
 0x1aa   :  { %v407_v28 = vsub.f32 1.0, %v399_v19  ;;  %v363_v52 = vmul.f32 %v786_v61, %v355_v48  ;;  %v337_v4 = vadd.f32 -0.28449672, %v329_v30  ;;  %v557_v16 = vpop.eup %556  ;;  %v326_v19 = vadd.f32 1.4214138, %v318_v54 }
 0x1ab   :  { %v408_v36 = vsub.f32 1.0, %v400_v22  ;;  %v364_v39 = vmul.f32 %v788_v5, %v356_v23  ;;  %v338_v53 = vadd.f32 -0.28449672, %v330_v42  ;;  %v333_v55 = vmul.f32 %v811_v60, %v325_v51 }
 0x1ac   :  { %v423_v0 = vsub.f32 0.0, %v407_v28  ;;  %v403_v50 = vmul.f32 %v547_v27, %v363_v52  ;;  %v345_v5 = vmul.f32 %v801_v43, %v337_v4  ;;  %v334_v24 = vmul.f32 %v819_v14, %v326_v19 }
 0x1ad   :  { %v424_v1 = vsub.f32 0.0, %v408_v36  ;;  %v404_v61 = vmul.f32 %v549_v35, %v364_v39  ;;  %v346_v3 = vmul.f32 %v803_v49, %v338_v53  ;;  %v341_v15 = vadd.f32 -0.28449672, %v333_v55 }
 0x1ae   :  { %v431_v57 = vsel %vm415_vm0, %v407_v28, %v423_v0  ;;  %v411_v58 = vsub.f32 1.0, %v403_v50  ;;  %v353_v12 = vadd.f32 0.2548296, %v345_v5  ;;  %v342_v52 = vadd.f32 -0.28449672, %v334_v24 }
 0x1af   :  { %v439_v10 = vadd.f32 1.0, %v431_v57  ;;  %v432_v62 = vsel %vm416_vm1, %v408_v36, %v424_v1  ;;  %v412_v2 = vsub.f32 1.0, %v404_v61  ;;  %v354_v18 = vadd.f32 0.2548296, %v346_v3 }
 0x1b0   :  { %v440_v6 = vadd.f32 1.0, %v432_v62  ;;  %v427_v8 = vsub.f32 0.0, %v411_v58  ;;  %v361_v11 = vmul.f32 %v801_v43, %v353_v12  ;;  %v349_v21 = vmul.f32 %v811_v60, %v341_v15 }
 0x1b1   :  { %v447_v63 = vmul.f32 %v439_v10, %v765_v38  ;;  %v428_v17 = vsub.f32 0.0, %v412_v2  ;;  %v362_v23 = vmul.f32 %v803_v49, %v354_v18  ;;  %v350_v35 = vmul.f32 %v819_v14, %v342_v52 }
 0x1b2   :  { %v448_v48 = vmul.f32 %v440_v6, %v770_v41  ;;  %v435_v20 = vsel %vm419_vm2, %v411_v58, %v427_v8  ;;  %v401_v43 = vmul.f32 %v551_v46, %v361_v11  ;;  %v357_v25 = vadd.f32 0.2548296, %v349_v21 }
 0x1b3   :  { %455 = vst [vmem:[%s892_s5] sm:$0xff] %v447_v63  ;;  %v443_v22 = vadd.f32 1.0, %v435_v20  ;;  %v436_v38 = vsel %vm420_vm3, %v412_v2, %v428_v17  ;;  %v402_v28 = vmul.f32 %v553_v56, %v362_v23  ;;  %v358_v39 = vadd.f32 0.2548296, %v350_v35 }
 0x1b4   :  { %456 = vst [vmem:[%s892_s5 + $0x8] sm:$0xff] %v448_v48  ;;  %v444_v41 = vadd.f32 1.0, %v436_v38  ;;  %v409_v13 = vsub.f32 1.0, %v401_v43  ;;  %v365_v34 = vmul.f32 %v811_v60, %v357_v25  ;;  %v241_v45 = vmul.f32 0.5, %v752_v26 }
 0x1b5   :  { %v451_v27 = vmul.f32 %v443_v22, %v798_v32  ;;  %v410_v49 = vsub.f32 1.0, %v402_v28  ;;  %v366_v50 = vmul.f32 %v819_v14, %v358_v39  ;;  %v242_v4 = vmul.f32 0.5, %v754_v29 }
 0x1b6   :  { %v452_v30 = vmul.f32 %v444_v41, %v244_v9  ;;  %v425_v7 = vsub.f32 0.0, %v409_v13  ;;  %v405_v36 = vmul.f32 %v555_v59, %v365_v34  ;;  %v245_v26 = vmul.f32 0.5, %v763_v37 }
 0x1b7   :  { %459 = vst [vmem:[%s892_s5 + $0x20] sm:$0xff] %v451_v27  ;;  %v426_v32 = vsub.f32 0.0, %v410_v49  ;;  %v406_v31 = vmul.f32 %v557_v16, %v366_v50  ;;  %v246_v57 = vmul.f32 0.5, %v768_v40 }
 0x1b8   :  { %460 = vst [vmem:[%s892_s5 + $0x28] sm:$0xff] %v452_v30  ;;  %v433_v42 = vsel %vm417_vm4, %v409_v13, %v425_v7  ;;  %v413_v60 = vsub.f32 1.0, %v405_v36 }
 0x1b9   :  { %v441_v46 = vadd.f32 1.0, %v433_v42  ;;  %v434_v0 = vsel %vm418_vm5, %v410_v49, %v426_v32  ;;  %v414_v56 = vsub.f32 1.0, %v406_v31 }
 0x1ba   :  { %v442_v51 = vadd.f32 1.0, %v434_v0  ;;  %v429_v1 = vsub.f32 0.0, %v413_v60 }
 0x1bb   :  { %v449_v61 = vmul.f32 %v441_v46, %v241_v45  ;;  %v430_v14 = vsub.f32 0.0, %v414_v56 }
 0x1bc   :  { %v450_v53 = vmul.f32 %v442_v51, %v242_v4  ;;  %v437_v54 = vsel %vm421_vm6, %v413_v60, %v429_v1 }
 0x1bd   :  { %457 = vst [vmem:[%s892_s5 + $0x10] sm:$0xff] %v449_v61  ;;  %v445_v33 = vadd.f32 1.0, %v437_v54  ;;  %v438_v44 = vsel %vm422_vm7, %v414_v56, %v430_v14 }
 0x1be   :  { %458 = vst [vmem:[%s892_s5 + $0x18] sm:$0xff] %v450_v53  ;;  %v446_v58 = vadd.f32 1.0, %v438_v44 }
 0x1bf   :  { %v453_v29 = vmul.f32 %v445_v33, %v245_v26 }
 0x1c0   :  { %v454_v5 = vmul.f32 %v446_v58, %v246_v57 }
 0x1c1   :  { %461 = vst [vmem:[%s892_s5 + $0x30] sm:$0xff] %v453_v29 }
 0x1c2   :  { %462 = vst [vmem:[%s892_s5 + $0x38] sm:$0xff] %v454_v5 }

// kernel: a_call__.8
= control target key start
LH: loop header
LB: loop body
LE: loop exit
PB: predicated region body
PF: predicated region fallthrough
CT: control target
= control target key end

     0   :  { %10 = vsyncpa [#allocation3], 0  ;;  %s712_s0 = inlined_call_operand.hbm [shape: f32[32,128], index: 0, kind: input, shape index: {}]   ;;  %s713_s1 = inlined_call_operand.vmem [shape: f32[1,128], index: 1, kind: input, shape index: {}]   ;;  %s714_s2 = inlined_call_operand.vmem [shape: f32[1,128], index: 2, kind: input, shape index: {}]   ;;  %s715_s3 = inlined_call_operand.hbm [shape: f32[128,384], index: 3, kind: input, shape index: {}]   ;;  %s716_s4 = inlined_call_operand.vmem [shape: f32[1,384], index: 4, kind: input, shape index: {}]   ;;  %s717_s5 = inlined_call_operand.vmem [shape: f32[32,384], index: 5, kind: output, shape index: {}]  }
   0x1   :  { %11 = vsyncpa [#allocation5], 0  ;;  %s578_s18 = smov [#allocation2]   ;;  %s530_s22 = scalar_lea.hbm %s712_s0, 512 }
   0x2   :  { %s17_s19 = sshll.u32 %s578_s18, 4  ;;  %p531_p0 = scmp.ne.s32.totalorder %s712_s0, %s530_s22  ;;  %s18_s19 = int_to_ptr.vmem [resolvable:$true] %s17_s19 }
   0x3   :  { %p534_p1 = scmp.lt.u32.totalorder %s530_s22, %s712_s0 }
   0x5   :  { %p536_p2 = pnand %p534_p1, %p531_p0 }
   0x7   :  { %539 = shalt.err (!%p536_p2)
}
   0x8   :  { %s540_s27 = scalar_lea.vmem %s18_s19, 512  ;;  %p545_p4 = scmp.lt.s32.totalorder %s18_s19, %s18_s19 }
   0x9   :  { %p541_p3 = scmp.ne.s32.totalorder %s18_s19, %s540_s27  ;;  %p546_p5 = scmp.lt.s32.totalorder %s540_s27, %s540_s27 }
   0xb   :  { %p547_p6 = por %p546_p5, %p545_p4 }
   0xd   :  { %p548_p7 = pnand %p547_p6, %p541_p3 }
   0xf   :  { %551 = shalt.err (!%p548_p7)
}
  0x10   :  { %s579_s28 = smov 128   ;;  %s580_s29 = smov 8  }
  0x11   :  { %23 = dma.hbm_to_vmem [thread:$0]  %s712_s0, 512, %s18_s19, [#allocation3], %s579_s28, %s579_s28, %s580_s29  }
  0x12   :  { %s581_s7 = smov [#allocation4]   ;;  %s552_s11 = scalar_lea.hbm %s715_s3, 6144 }
  0x13   :  { %s33_s8 = sshll.u32 %s581_s7, 4  ;;  %p553_p8 = scmp.ne.s32.totalorder %s715_s3, %s552_s11  ;;  %s34_s8 = int_to_ptr.vmem [resolvable:$true] %s33_s8 }
  0x14   :  { %p556_p9 = scmp.lt.u32.totalorder %s552_s11, %s715_s3 }
  0x16   :  { %p558_p10 = pnand %p556_p9, %p553_p8 }
  0x18   :  { %561 = shalt.err (!%p558_p10)
}
  0x19   :  { %s562_s16 = scalar_lea.vmem %s34_s8, 6144  ;;  %p567_p12 = scmp.lt.s32.totalorder %s34_s8, %s34_s8 }
  0x1a   :  { %p563_p11 = scmp.ne.s32.totalorder %s34_s8, %s562_s16  ;;  %p568_p13 = scmp.lt.s32.totalorder %s562_s16, %s562_s16 }
  0x1c   :  { %p569_p0 = por %p568_p13, %p567_p12 }
  0x1e   :  { %p570_p1 = pnand %p569_p0, %p563_p11 }
  0x20   :  { %573 = shalt.err (!%p570_p1)
}
  0x21   :  { %s582_s0 = smov 384   ;;  %s583_s17 = smov 24  }
  0x22   :  { %39 = dma.hbm_to_vmem [thread:$0]  %s715_s3, 6144, %s34_s8, [#allocation5], %s582_s0, %s582_s0, %s583_s17  }
  0x23   :  { %574 = dma.done.wait [#allocation3], 512  }
  0x24   :  { %575 = vsyncadd [#allocation3], 4294966784 }
  0x25   :  { %576 = dma.done.wait [#allocation5], 6144  }
  0x26   :  { %577 = vsyncadd [#allocation5], 4294961152  ;;  %v639_v0 = vld [vmem:[#allocation2 + $0x8] sm:$0xff]  ;;  %v641_v1 = vld [vmem:[#allocation2] sm:$0xff] }
  0x27   :  { %54 = vadd.xlane.f32.xlu1 %v639_v0  ;;  %52 = vadd.xlane.f32.xlu0 %v641_v1  ;;  %v61_v2 = vmul.f32 %v639_v0, %v639_v0  ;;  %v60_v3 = vmul.f32 %v641_v1, %v641_v1  ;;  %v135_v4 = vld [vmem:[#allocation4 + $0x8] sm:$0xff]  ;;  %v138_v5 = vld [vmem:[#allocation4 + $0x20] sm:$0xff]  ;;  %v649_v6 = vld [vmem:[#allocation2 + $0x10] sm:$0xff] }
  0x28   :  { %v451_v7 = vpack.c.bf16 %v138_v5, %v135_v4  ;;  %v62_v8 = vmul.f32 %v649_v6, %v649_v6  ;;  %v653_v9 = vld [vmem:[#allocation2 + $0x18] sm:$0xff]  ;;  %v134_v11 = vld [vmem:[#allocation4] sm:$0xff]  ;;  %v136_v13 = vld [vmem:[#allocation4 + $0x10] sm:$0xff] }
  0x29   :  { %v63_v10 = vmul.f32 %v653_v9, %v653_v9  ;;  %v137_v12 = vld [vmem:[#allocation4 + $0x18] sm:$0xff]  ;;  %v139_v15 = vld [vmem:[#allocation4 + $0x28] sm:$0xff]  ;;  %v144_v18 = vld [vmem:[#allocation4 + $0x50] sm:$0xff] }
  0x2a   :  { %452 = vmatprep.subr.bf16.mxu0 %v451_v7  ;;  %v453_v14 = vpack.c.bf16 %v137_v12, %v134_v11  ;;  %v483_v16 = vpack.c.bf16 %v139_v15, %v136_v13  ;;  %v141_v17 = vld [vmem:[#allocation4 + $0x38] sm:$0xff]  ;;  %v140_v20 = vld [vmem:[#allocation4 + $0x30] sm:$0xff]  ;;  %v143_v21 = vld [vmem:[#allocation4 + $0x48] sm:$0xff]  ;;  %v584_v12 = vmov 0.0  }
  0x2b   :  { %66 = vadd.xlane.f32.xlu1 %v61_v2  ;;  %64 = vadd.xlane.f32.xlu0 %v60_v3  ;;  %v455_v19 = vpack.c.bf16 %v144_v18, %v141_v17  ;;  %v142_v22 = vld [vmem:[#allocation4 + $0x40] sm:$0xff]  ;;  %v457_v23 = vpack.c.bf16 %v143_v21, %v140_v20  ;;  %v145_v24 = vld [vmem:[#allocation4 + $0x58] sm:$0xff]  ;;  %v147_v26 = vld [vmem:[#allocation4 + $0x68] sm:$0xff] }
  0x2c   :  { %454 = vmatpush1.bf16.msra.mxu0 %v453_v14  ;;  %484 = vmatprep.subr.bf16.mxu1 %v483_v16  ;;  %v487_v25 = vpack.c.bf16 %v145_v24, %v142_v22  ;;  %v150_v27 = vld [vmem:[#allocation4 + $0x80] sm:$0xff]  ;;  %v149_v30 = vld [vmem:[#allocation4 + $0x78] sm:$0xff]  ;;  %v148_v31 = vld [vmem:[#allocation4 + $0x70] sm:$0xff] }
  0x2d   :  { %486 = vmatpush3.bf16.msra.mxu1 %v483_v16  ;;  %456 = vmatprep.subr.bf16.mxu0 %v455_v19  ;;  %v459_v28 = vpack.c.bf16 %v150_v27, %v147_v26  ;;  %v146_v29 = vld [vmem:[#allocation4 + $0x60] sm:$0xff]  ;;  %v151_v33 = vld [vmem:[#allocation4 + $0x88] sm:$0xff]  ;;  %v153_v35 = vld [vmem:[#allocation4 + $0x98] sm:$0xff] }
  0x2e   :  { %488 = vmatprep.subr.bf16.mxu1 %v487_v25  ;;  %v461_v32 = vpack.c.bf16 %v149_v30, %v146_v29  ;;  %v491_v34 = vpack.c.bf16 %v151_v33, %v148_v31  ;;  %v156_v36 = vld [vmem:[#allocation4 + $0xb0] sm:$0xff]  ;;  %v155_v39 = vld [vmem:[#allocation4 + $0xa8] sm:$0xff]  ;;  %v154_v40 = vld [vmem:[#allocation4 + $0xa0] sm:$0xff]  ;;  %263 = vmatprep.mubr.f32.mxu0 %v584_v12 }
  0x2f   :  { %56 = vadd.xlane.f32.xlu0 %v649_v6  ;;  %68 = vadd.xlane.f32.xlu1 %v62_v8  ;;  %v463_v37 = vpack.c.bf16 %v156_v36, %v153_v35  ;;  %v152_v38 = vld [vmem:[#allocation4 + $0x90] sm:$0xff]  ;;  %v157_v42 = vld [vmem:[#allocation4 + $0xb8] sm:$0xff]  ;;  %v159_v44 = vld [vmem:[#allocation4 + $0xc8] sm:$0xff] }
  0x30   :  { %458 = vmatpush1.bf16.msra.mxu0 %v457_v23  ;;  %v465_v41 = vpack.c.bf16 %v155_v39, %v152_v38  ;;  %v495_v43 = vpack.c.bf16 %v157_v42, %v154_v40  ;;  %v162_v45 = vld [vmem:[#allocation4 + $0xe0] sm:$0xff]  ;;  %v161_v48 = vld [vmem:[#allocation4 + $0xd8] sm:$0xff]  ;;  %v160_v49 = vld [vmem:[#allocation4 + $0xd0] sm:$0xff] }
  0x31   :  { %490 = vmatpush3.bf16.msra.mxu1 %v487_v25  ;;  %460 = vmatprep.subr.bf16.mxu0 %v459_v28  ;;  %v467_v46 = vpack.c.bf16 %v162_v45, %v159_v44  ;;  %v158_v47 = vld [vmem:[#allocation4 + $0xc0] sm:$0xff]  ;;  %v163_v51 = vld [vmem:[#allocation4 + $0xe8] sm:$0xff]  ;;  %v165_v53 = vld [vmem:[#allocation4 + $0xf8] sm:$0xff] }
  0x32   :  { %492 = vmatprep.subr.bf16.mxu1 %v491_v34  ;;  %v469_v50 = vpack.c.bf16 %v161_v48, %v158_v47  ;;  %v499_v52 = vpack.c.bf16 %v163_v51, %v160_v49  ;;  %v168_v54 = vld [vmem:[#allocation4 + $0x110] sm:$0xff]  ;;  %v167_v57 = vld [vmem:[#allocation4 + $0x108] sm:$0xff]  ;;  %v166_v58 = vld [vmem:[#allocation4 + $0x100] sm:$0xff] }
  0x33   :  { %58 = vadd.xlane.f32.xlu0 %v653_v9  ;;  %70 = vadd.xlane.f32.xlu1 %v63_v10  ;;  %v471_v55 = vpack.c.bf16 %v168_v54, %v165_v53  ;;  %v164_v56 = vld [vmem:[#allocation4 + $0xf0] sm:$0xff]  ;;  %v169_v60 = vld [vmem:[#allocation4 + $0x118] sm:$0xff]  ;;  %v171_v62 = vld [vmem:[#allocation4 + $0x128] sm:$0xff] }
  0x34   :  { %462 = vmatpush1.bf16.msra.mxu0 %v461_v32  ;;  %v473_v59 = vpack.c.bf16 %v167_v57, %v164_v56  ;;  %v503_v61 = vpack.c.bf16 %v169_v60, %v166_v58  ;;  %v174_v63 = vld [vmem:[#allocation4 + $0x140] sm:$0xff]  ;;  %v173_v4 = vld [vmem:[#allocation4 + $0x138] sm:$0xff]  ;;  %v172_v5 = vld [vmem:[#allocation4 + $0x130] sm:$0xff] }
  0x35   :  { %494 = vmatpush3.bf16.msra.mxu1 %v491_v34  ;;  %464 = vmatprep.subr.bf16.mxu0 %v463_v37  ;;  %v475_v2 = vpack.c.bf16 %v174_v63, %v171_v62  ;;  %v170_v3 = vld [vmem:[#allocation4 + $0x120] sm:$0xff]  ;;  %v175_v8 = vld [vmem:[#allocation4 + $0x148] sm:$0xff]  ;;  %v177_v10 = vld [vmem:[#allocation4 + $0x158] sm:$0xff] }
  0x36   :  { %496 = vmatprep.subr.bf16.mxu1 %v495_v43  ;;  %v477_v7 = vpack.c.bf16 %v173_v4, %v170_v3  ;;  %v180_v11 = vld [vmem:[#allocation4 + $0x170] sm:$0xff]  ;;  %v507_v13 = vpack.c.bf16 %v175_v8, %v172_v5  ;;  %v179_v16 = vld [vmem:[#allocation4 + $0x168] sm:$0xff]  ;;  %v178_v17 = vld [vmem:[#allocation4 + $0x160] sm:$0xff] }
  0x37   :  { %v479_v14 = vpack.c.bf16 %v180_v11, %v177_v10  ;;  %v176_v15 = vld [vmem:[#allocation4 + $0x150] sm:$0xff]  ;;  %v181_v19 = vld [vmem:[#allocation4 + $0x178] sm:$0xff]  ;;  %v391_v53 = vld [vmem:[%s713_s1] ss:$0 sm:$0xff] }
  0x38   :  { %466 = vmatpush1.bf16.msra.mxu0 %v465_v41  ;;  %v481_v18 = vpack.c.bf16 %v179_v16, %v176_v15  ;;  %v511_v20 = vpack.c.bf16 %v181_v19, %v178_v17  ;;  %v392_v58 = vld [vmem:[%s714_s2] ss:$0 sm:$0xff] }
  0x39   :  { %498 = vmatpush3.bf16.msra.mxu1 %v495_v43  ;;  %468 = vmatprep.subr.bf16.mxu0 %v467_v46 }
  0x3a   :  { %500 = vmatprep.subr.bf16.mxu1 %v499_v52 }
  0x3c   :  { %470 = vmatpush1.bf16.msra.mxu0 %v469_v50 }
  0x3d   :  { %502 = vmatpush3.bf16.msra.mxu1 %v499_v52  ;;  %472 = vmatprep.subr.bf16.mxu0 %v471_v55 }
  0x3e   :  { %504 = vmatprep.subr.bf16.mxu1 %v503_v61 }
  0x40   :  { %474 = vmatpush1.bf16.msra.mxu0 %v473_v59 }
  0x41   :  { %506 = vmatpush3.bf16.msra.mxu1 %v503_v61  ;;  %476 = vmatprep.subr.bf16.mxu0 %v475_v2 }
  0x42   :  { %508 = vmatprep.subr.bf16.mxu1 %v507_v13 }
  0x44   :  { %478 = vmatpush1.bf16.msra.mxu0 %v477_v7 }
  0x45   :  { %480 = vmatprep.subr.bf16.mxu0 %v479_v14  ;;  %510 = vmatpush3.bf16.msra.mxu1 %v507_v13 }
  0x46   :  { %512 = vmatprep.subr.bf16.mxu1 %v511_v20 }
  0x48   :  { %482 = vmatpush1.bf16.msra.mxu0 %v481_v18 }
  0x49   :  { %514 = vmatpush3.bf16.msra.mxu1 %v511_v20  ;;  %v182_v20 = vld [vmem:[%s716_s4] sm:$0x7] }
  0xb4   :  { %v55_v21 = vpop.xlane.xlu1 %54  ;;  %v53_v22 = vpop.xlane.xlu0 %52 }
  0xb5   :  { %v73_v23 = vmul.f32 0.0078125, %v55_v21  ;;  %v72_v24 = vmul.f32 0.0078125, %v53_v22 }
  0xb7   :  { %v81_v25 = vmul.f32 %v73_v23, %v73_v23  ;;  %v80_v28 = vmul.f32 %v72_v24, %v72_v24 }
  0xb8   :  { %v67_v26 = vpop.xlane.xlu1 %66  ;;  %v65_v27 = vpop.xlane.xlu0 %64 }
  0xb9   :  { %v77_v29 = vmul.f32 0.0078125, %v67_v26  ;;  %v76_v30 = vmul.f32 0.0078125, %v65_v27 }
  0xbb   :  { %v85_v31 = vsub.f32 %v77_v29, %v81_v25  ;;  %v84_v32 = vsub.f32 %v76_v30, %v80_v28 }
  0xbc   :  { %v57_v33 = vpop.xlane.xlu0 %56  ;;  %v69_v34 = vpop.xlane.xlu1 %68 }
  0xbd   :  { %v89_v35 = vmax.f32 %v85_v31, 0.0  ;;  %v88_v36 = vmax.f32 %v84_v32, 0.0  ;;  %v74_v37 = vmul.f32 0.0078125, %v57_v33  ;;  %v78_v38 = vmul.f32 0.0078125, %v69_v34 }
  0xbf   :  { %v93_v39 = vadd.f32 1e-05, %v89_v35  ;;  %v92_v40 = vadd.f32 1e-05, %v88_v36  ;;  %v82_v41 = vmul.f32 %v74_v37, %v74_v37 }
  0xc0   :  { %v59_v42 = vpop.xlane.xlu0 %58  ;;  %v71_v43 = vpop.xlane.xlu1 %70 }
  0xc1   :  { %522 = vrsqrt.f32 %v93_v39  ;;  %v86_v44 = vsub.f32 %v78_v38, %v82_v41  ;;  %v75_v45 = vmul.f32 0.0078125, %v59_v42  ;;  %v79_v46 = vmul.f32 0.0078125, %v71_v43 }
  0xc2   :  { %524 = vrsqrt.f32 %v92_v40 }
  0xc3   :  { %v90_v47 = vmax.f32 %v86_v44, 0.0  ;;  %v83_v48 = vmul.f32 %v75_v45, %v75_v45 }
  0xc5   :  { %v94_v49 = vadd.f32 1e-05, %v90_v47  ;;  %v87_v50 = vsub.f32 %v79_v46, %v83_v48 }
  0xc7   :  { %526 = vrsqrt.f32 %v94_v49  ;;  %v91_v51 = vmax.f32 %v87_v50, 0.0 }
  0xc9   :  { %v95_v52 = vadd.f32 1e-05, %v91_v51 }
  0xcb   :  { %v523_v54 = vpop.eup %522  ;;  %528 = vrsqrt.f32 %v95_v52 }
  0xcc   :  { %v525_v55 = vpop.eup %524  ;;  %v108_v56 = vmul.f32 %v523_v54, %v391_v53 }
  0xcd   :  { %v107_v57 = vmul.f32 %v525_v55, %v391_v53 }
  0xce   :  { %v113_v59 = vmul.f32 %v108_v56, %v73_v23  ;;  %v127_v60 = vmul.f32 %v108_v56, %v639_v0 }
  0xcf   :  { %v112_v61 = vmul.f32 %v107_v57, %v72_v24  ;;  %v126_v3 = vmul.f32 %v107_v57, %v641_v1 }
  0xd0   :  { %v123_v62 = vsub.f32 %v392_v58, %v113_v59 }
  0xd1   :  { %v527_v63 = vpop.eup %526  ;;  %v122_v2 = vsub.f32 %v392_v58, %v112_v61 }
  0xd2   :  { %v131_v4 = vadd.f32 %v127_v60, %v123_v62  ;;  %v109_v5 = vmul.f32 %v527_v63, %v391_v53 }
  0xd3   :  { %v130_v7 = vadd.f32 %v126_v3, %v122_v2 }
  0xd4   :  { %v114_v8 = vmul.f32 %v109_v5, %v74_v37  ;;  %v128_v10 = vmul.f32 %v109_v5, %v649_v6  ;;  %v184_v6 = vlaneseq }
  0xd5   :  { %v529_v11 = vpop.eup %528  ;;  %264 = vmatmul.mubr.f32.vlgmr.msra.gmra.mrb[0].mxu0 %v130_v7  ;;  %445 = vmatprep.mubr.f32.mxu1 %v130_v7 }
  0xd6   :  { %446 = vmatmul.mubr.f32.vlgmr.msra.gmra.mrb[0].mxu1 %v131_v4  ;;  %269 = vmatprep.mubr.f32.mxu0 %v584_v12  ;;  %v124_v13 = vsub.f32 %v392_v58, %v114_v8  ;;  %v110_v0 = vmul.f32 %v529_v11, %v391_v53  ;;  %v185_v18 = vshrl.u32 %v184_v6, 7 }
  0xd8   :  { %v132_v14 = vadd.f32 %v128_v10, %v124_v13  ;;  %v115_v15 = vmul.f32 %v110_v0, %v75_v45  ;;  %v129_v16 = vmul.f32 %v110_v0, %v653_v9  ;;  %v186_v19 = vsub.s32 0, %v185_v18 }
  0xd9   :  { %270 = vmatmul.mubr.f32.gmra.mrb[2].mxu0 %v131_v4  ;;  %v190_v21 = vsub.s32 1, %v185_v18  ;;  %v194_v9 = vsub.s32 2, %v185_v18 }
  0xda   :  { %448 = vmatprep.mubr.f32.mxu1 %v132_v14  ;;  %275 = vmatprep.mubr.f32.mxu0 %v584_v12  ;;  %v125_v1 = vsub.f32 %v392_v58, %v115_v15  ;;  %v187_v22 = vrot.slane %v182_v20, %v186_v19 }
  0xdb   :  { %v191_v23 = vrot.slane %v182_v20, %v190_v21  ;;  %v195_v24 = vrot.slane %v182_v20, %v194_v9 }
  0xdc   :  { %v133_v17 = vadd.f32 %v129_v16, %v125_v1 }
  0xdd   :  { %276 = vmatmul.mubr.f32.gmra.mrb[4].mxu0 %v132_v14 }
  0xde   :  { %449 = vmatmul.mubr.f32.gmra.mrb[2].mxu1 %v133_v17  ;;  %281 = vmatprep.mubr.f32.mxu0 %v584_v12 }
  0xe1   :  { %282 = vmatmul.mubr.f32.gmra.mrb[6].mxu0 %v133_v17 }
 0x1a8   :  { %v265_v25 = vpop.f32.mrb[0].mxu0 }
 0x1a9   :  { %v266_v26 = vadd.f32 %v265_v25, %v187_v22  ;;  %v267_v27 = vpop.f32.mrb[1].mxu0  ;;  %v447_v28 = vpop.f32.mrb[0].mxu1 }
 0x1aa   :  { %v268_v29 = vadd.f32 %v267_v27, %v191_v23  ;;  %v360_v30 = vadd.f32 %v447_v28, %v195_v24  ;;  %v354_v12 = vpop.f32.mrb[1].mxu1 }
 0x1ab   :  { %373 = vst [vmem:[%s717_s5] sm:$0xff] %v266_v26  ;;  %v355_v31 = vadd.f32 %v354_v12, %v195_v24 }
 0x1ac   :  { %374 = vst [vmem:[%s717_s5 + $0x8] sm:$0xff] %v268_v29  ;;  %378 = vst [vmem:[%s717_s5 + $0x28] sm:$0xff] %v360_v30  ;;  %v271_v32 = vpop.f32.mrb[2].mxu0 }
 0x1ad   :  { %375 = vst [vmem:[%s717_s5 + $0x10] sm:$0xff] %v355_v31  ;;  %v272_v33 = vadd.f32 %v271_v32, %v187_v22  ;;  %v273_v34 = vpop.f32.mrb[3].mxu0 }
 0x1ae   :  { %v274_v35 = vadd.f32 %v273_v34, %v191_v23 }
 0x1af   :  { %376 = vst [vmem:[%s717_s5 + $0x18] sm:$0xff] %v272_v33 }
 0x1b0   :  { %377 = vst [vmem:[%s717_s5 + $0x20] sm:$0xff] %v274_v35  ;;  %v277_v36 = vpop.f32.mrb[4].mxu0 }
 0x1b1   :  { %v278_v37 = vadd.f32 %v277_v36, %v187_v22  ;;  %v279_v38 = vpop.f32.mrb[5].mxu0  ;;  %v450_v39 = vpop.f32.mrb[2].mxu1 }
 0x1b2   :  { %v280_v40 = vadd.f32 %v279_v38, %v191_v23  ;;  %v370_v41 = vadd.f32 %v450_v39, %v195_v24  ;;  %v364_v42 = vpop.f32.mrb[3].mxu1 }
 0x1b3   :  { %379 = vst [vmem:[%s717_s5 + $0x30] sm:$0xff] %v278_v37  ;;  %v365_v43 = vadd.f32 %v364_v42, %v195_v24 }
 0x1b4   :  { %380 = vst [vmem:[%s717_s5 + $0x38] sm:$0xff] %v280_v40  ;;  %384 = vst [vmem:[%s717_s5 + $0x58] sm:$0xff] %v370_v41  ;;  %v283_v44 = vpop.f32.mrb[6].mxu0 }
 0x1b5   :  { %381 = vst [vmem:[%s717_s5 + $0x40] sm:$0xff] %v365_v43  ;;  %v284_v45 = vadd.f32 %v283_v44, %v187_v22  ;;  %v285_v46 = vpop.f32.mrb[7].mxu0 }
 0x1b6   :  { %v286_v47 = vadd.f32 %v285_v46, %v191_v23 }
 0x1b7   :  { %382 = vst [vmem:[%s717_s5 + $0x48] sm:$0xff] %v284_v45 }
 0x1b8   :  { %383 = vst [vmem:[%s717_s5 + $0x50] sm:$0xff] %v286_v47 }
 0x1b9   :  { %389 = vsyncpa [#allocation3], 1 }
 0x1ba   :  { %390 = vsyncpa [#allocation5], 1 }

// kernel: a_call__.9
= control target key start
LH: loop header
LB: loop body
LE: loop exit
PB: predicated region body
PF: predicated region fallthrough
CT: control target
= control target key end

     0   :  { %s1606_s15 = smov 0   ;;  %s1809_s0 = inlined_call_operand.vmem [shape: f32[2,16,384], index: 0, kind: input, shape index: {}]   ;;  %s1810_s1 = inlined_call_operand.vmem [shape: f32[128,128], index: 1, kind: input, shape index: {}]   ;;  %s1811_s2 = inlined_call_operand.vmem [shape: f32[1,128], index: 2, kind: input, shape index: {}]   ;;  %s1812_s3 = inlined_call_operand.vmem [shape: f32[2,16,128], index: 3, kind: input, shape index: {}]   ;;  %s1813_s4 = inlined_call_operand.vmem [shape: f32[2,16,128], index: 4, kind: output, shape index: {}]  }
   0x1 LB: > { %s1229_s16 = sadd.s32 4294967295, %s1576_s15   ;;  %p1233_p0 = scmp.ge.s32.totalorder %s1576_s15, 1  ;;  %s1576_s15 = sphi %s1606_s15, %s14_s15  }
   0x2   : > { %p172_p1 = scmp.lt.s32.totalorder %s1576_s15, 3 }
   0x4   : > { %p173_p2 = pnand %p1233_p0, %p172_p1 }
   0x5   : > { %p203_p3 = scmp.lt.s32.totalorder (!%p173_p2), %s1229_s16, 1  ;;  %vm224_vm0 = vcmask (!%p173_p2), 261120   ;;  %s1578_s21 = smov (!%p173_p2), 64   ;;  %vm314_vm2 = vcmask (!%p173_p2), 130048   ;;  %vm1052_vm3 = vcmask (!%p173_p2), 523264   ;;  %vm1055_vm4 = vcmask (!%p173_p2), 785408  }
   0x6   : > { %176 = sbr.rel (%p173_p2) target bundleno = 2211 (0x8a3), region = 36  ;;  %vm1624_vm1 = vmpackc.low (!%p173_p2), %vm224_vm0, %vm224_vm0  ;;  %s1579_s22 = smov (!%p173_p2), 96  }
   0x7   : > { %s1580_s23 = smov (!%p173_p2), 32  }
   0xd   : > { %s1817_s16 = smov (!%p203_p3, %s1229_s16), 1 }
   0xe   : > { %s1481_s17 = smul.u32 48, %s1817_s16 }
  0x10   : > { %s1620_s20 = scalar_lea.vmem %s1809_s0, %s1481_s17 }
  0x11   : > { %v219_v1 = vld [vmem:[%s1620_s20 + $0x8] sm:$0xff]  ;;  %v222_v2 = vld [vmem:[%s1620_s20 + $0x20] sm:$0xff]  ;;  %v1640_v5 = vld [vmem:[%s1620_s20 + $0x18] sm:$0xff] }
  0x12   : > { %v1631_v3 = vld [vmem:[%s1620_s20] sm:$0xff]  ;;  %v1409_v4 = vpack.c.bf16 %v222_v2, %v219_v1  ;;  %v1644_v6 = vpack.i.bf16 %v222_v2, %v219_v1  ;;  %v1659_v23 = vld [vmem:[%s1620_s20 + $0x10] sm:$0xff]  ;;  %v1662_v24 = vld [vmem:[%s1620_s20 + $0x28] sm:$0xff] }
  0x13   : > { %1322 = vmatprep.mubr.msk.f32.mxu1 %vm224_vm0, %v1631_v3  ;;  %v1415_v25 = vpack.c.bf16 %v1662_v24, %v1659_v23 }
  0x14   : > { %1411 = vmatprep.subr.msk.bf16.mxu1 %vm1624_vm1, %v1409_v4  ;;  %1499 = vrot.lane.b32.xlu1 %v1644_v6, %s1578_s21 }
  0x15   : > { %1414 = vmatpush3.bf16.xpose.msk.msra.mxu1 %vm1624_vm1, %v1409_v4 }
  0x16   : > { %1416 = vmatprep.subr.bf16.mxu1 %v1415_v25 }
  0x18   : > { %418 = vrot.lane.b32.xlu1 %v1631_v3, %s1579_s22 }
  0x1c   : > { %1323 = vmatmul.mubr.msk.f32.vlgmr.msra.gmra.mrb[0].mxu1 %vm224_vm0, %v1640_v5 }
  0x1d   : > { %1418 = vmatpush3.bf16.msra.mxu1 %v1415_v25 }
  0x86   : > { %v1500_v30 = vpop.permute.xlu1 %1499 }
  0x87   : > { %v1502_v36 = vunpack.i.h.bf16 %v1500_v30  ;;  %v1501_v37 = vunpack.i.l.bf16 %v1500_v30 }
  0x89   : > { %v1429_v40 = vpack.c.bf16 %v1502_v36, %v1501_v37 }
  0x8a   : > { %v419_v31 = vpop.permute.xlu1 %418 }
  0xef   : > { %v1324_v7 = vpop.f32.mrb[0].mxu1 }
  0xf0   : > { %v303_v8 = vpop.f32.mrb[1].mxu1  ;;  %v313_v10 = vmul.f32 0.17677669, %v1324_v7 }
  0xf1   : > { %v312_v9 = vmul.f32 0.17677669, %v303_v8 }
  0xf2   : > { %v318_v12 = vsel %vm314_vm2, %v313_v10, -inf }
  0xf3   : > { %v315_v11 = vsel %vm314_vm2, %v312_v9, -inf }
  0xf4   : > { %316 = vmax.xlane.f32.xlu0 %v315_v11 }
  0xf8   : > { %319 = vmax.xlane.f32.xlu0 %v318_v12 }
 0x10e   : > { %1494 = vrot.lane.b32.xlu0 %v1644_v6, %s1579_s22 }
 0x112   : > { %622 = vrot.lane.b32.xlu0 %v1631_v3, %s1578_s21 }
 0x181   : > { %v317_v13 = vpop.xlane.xlu0 %316 }
 0x182   : > { %v321_v14 = vsub.f32 %v312_v9, %v317_v13 }
 0x184   : > { %v323_v17 = vmul.f32 1.442695, %v321_v14 }
 0x185   : > { %v320_v15 = vpop.xlane.xlu0 %319 }
 0x186   : > { %v322_v16 = vsub.f32 %v313_v10, %v320_v15 }
 0x188   : > { %v325_v18 = vmul.f32 1.442695, %v322_v16 }
 0x189   : > { %v1495_v26 = vpop.permute.xlu0 %1494 }
 0x18a   : > { %1538 = vpow2.f32 %v325_v18  ;;  %v1497_v27 = vunpack.i.h.bf16 %v1495_v26  ;;  %v1496_v28 = vunpack.i.l.bf16 %v1495_v26 }
 0x18b   : > { %1540 = vpow2.f32 %v323_v17 }
 0x18c   : > { %v1419_v29 = vpack.c.bf16 %v1497_v27, %v1496_v28 }
 0x18d   : > { %v623_v42 = vpop.permute.xlu0 %622 }
 0x18e   : > { %1421 = vmatprep.subr.msk.bf16.mxu1 %vm1624_vm1, %v1419_v29 }
 0x194   : > { %v1539_v19 = vpop.eup %1538 }
 0x195   : > { %v330_v20 = vsel %vm314_vm2, %v1539_v19, 0.0  ;;  %v1541_v21 = vpop.eup %1540 }
 0x196   : > { %331 = vadd.xlane.f32.xlu1 %v330_v20  ;;  %v327_v22 = vsel %vm314_vm2, %v1541_v21, 0.0 }
 0x19a   : > { %328 = vadd.xlane.f32.xlu1 %v327_v22 }
 0x1ab   : > { %420 = vrot.lane.b32.xlu1 %v1640_v5, %s1579_s22 }
 0x1af   : > { %624 = vrot.lane.b32.xlu1 %v1640_v5, %s1578_s21 }
 0x223   : > { %v332_v32 = vpop.xlane.xlu1 %331 }
 0x224   : > { %1542 = vrcp.f32 %v332_v32 }
 0x227   : > { %v329_v33 = vpop.xlane.xlu1 %328 }
 0x228   : > { %1544 = vrcp.f32 %v329_v33 }
 0x22b   : > { %v421_v41 = vpop.permute.xlu1 %420 }
 0x22e   : > { %v1543_v34 = vpop.eup %1542 }
 0x22f   : > { %v336_v39 = vmul.f32 %v1543_v34, %v1539_v19  ;;  %v625_v43 = vpop.permute.xlu1 %624 }
 0x232   : > { %v1545_v35 = vpop.eup %1544 }
 0x233   : > { %v334_v38 = vmul.f32 %v1545_v35, %v1541_v21 }
 0x235   : > { %1329 = vmatprep.mubr.msk.f32.mxu1 %vm314_vm2, %v334_v38 }
 0x236   : > { %1330 = vmatmul.mubr.msk.f32.vlgmr.msra.gmra.mrb[2].mxu1 %vm314_vm2, %v336_v39 }
 0x237   : > { %1424 = vmatpush3.bf16.xpose.msk.msra.mxu1 %vm1624_vm1, %v1419_v29  ;;  %1336 = vmatprep.mubr.msk.f32.mxu1 %vm224_vm0, %v419_v31 }
 0x238   : > { %1431 = vmatprep.subr.msk.bf16.mxu1 %vm1624_vm1, %v1429_v40 }
 0x23e   : > { %1337 = vmatmul.mubr.msk.f32.vlgmr.msra.gmra.mrb[4].mxu1 %vm224_vm0, %v421_v41 }
 0x23f   : > { %1434 = vmatpush3.bf16.xpose.msk.msra.mxu1 %vm1624_vm1, %v1429_v40  ;;  %1350 = vmatprep.mubr.msk.f32.mxu1 %vm224_vm0, %v623_v42 }
 0x246   : > { %1351 = vmatmul.mubr.msk.f32.vlgmr.msra.gmra.mrb[6].mxu1 %vm224_vm0, %v625_v43 }
 0x309   : > { %v1684_v44 = vpop.f32.mrb[2].mxu1 }
 0x30a   : > { %v1686_v45 = vpop.f32.mrb[3].mxu1 }
 0x311   : > { %v1338_v46 = vpop.f32.mrb[4].mxu1 }
 0x312   : > { %v500_v47 = vpop.f32.mrb[5].mxu1  ;;  %v510_v54 = vmul.f32 0.17677669, %v1338_v46 }
 0x313   : > { %v509_v10 = vmul.f32 0.17677669, %v500_v47 }
 0x314   : > { %v514_v55 = vsel %vm314_vm2, %v510_v54, -inf }
 0x315   : > { %v511_v11 = vsel %vm314_vm2, %v509_v10, -inf }
 0x319   : > { %v1352_v48 = vpop.f32.mrb[6].mxu1 }
 0x31a   : > { %v714_v49 = vmul.f32 0.17677669, %v1352_v48  ;;  %v704_v50 = vpop.f32.mrb[7].mxu1 }
 0x31b   : > { %v713_v51 = vmul.f32 0.17677669, %v704_v50 }
 0x31c   : > { %v718_v52 = vsel %vm314_vm2, %v714_v49, -inf }
 0x31d   : > { %719 = vmax.xlane.f32.xlu1 %v718_v52  ;;  %v715_v53 = vsel %vm314_vm2, %v713_v51, -inf }
 0x31e   : > { %716 = vmax.xlane.f32.xlu0 %v715_v53 }
 0x32e   : > { %1509 = vrot.lane.b32.xlu1 %v1644_v6, %s1580_s23 }
 0x332   : > { %824 = vrot.lane.b32.xlu1 %v1631_v3, %s1580_s23  ;;  %v1701_v3 = vpack.i.bf16 %v1662_v24, %v1659_v23 }
 0x336   : > { %826 = vrot.lane.b32.xlu1 %v1640_v5, %s1580_s23 }
 0x35a   : > { %515 = vmax.xlane.f32.xlu1 %v514_v55 }
 0x3aa   : > { %v720_v56 = vpop.xlane.xlu1 %719 }
 0x3ab   : > { %v722_v57 = vsub.f32 %v714_v49, %v720_v56  ;;  %v717_v58 = vpop.xlane.xlu0 %716 }
 0x3ac   : > { %v721_v59 = vsub.f32 %v713_v51, %v717_v58 }
 0x3ad   : > { %v725_v60 = vmul.f32 1.442695, %v722_v57 }
 0x3ae   : > { %v723_v61 = vmul.f32 1.442695, %v721_v59  ;;  %v1510_v4 = vpop.permute.xlu1 %1509 }
 0x3af   : > { %1546 = vpow2.f32 %v725_v60  ;;  %v1512_v16 = vunpack.i.h.bf16 %v1510_v4  ;;  %v1511_v17 = vunpack.i.l.bf16 %v1510_v4 }
 0x3b0   : > { %1548 = vpow2.f32 %v723_v61 }
 0x3b1   : > { %v1439_v21 = vpack.c.bf16 %v1512_v16, %v1511_v17  ;;  %v1063_v16 = vld [vmem:[%s1810_s1 + $0x28] sm:$0xff] }
 0x3b2   : > { %v825_v5 = vpop.permute.xlu1 %824 }
 0x3b6   : > { %v827_v6 = vpop.permute.xlu1 %826 }
 0x3b9   : > { %v1547_v62 = vpop.eup %1546 }
 0x3ba   : > { %v730_v63 = vsel %vm314_vm2, %v1547_v62, 0.0  ;;  %v1549_v1 = vpop.eup %1548 }
 0x3bb   : > { %731 = vadd.xlane.f32.xlu0 %v730_v63  ;;  %v727_v2 = vsel %vm314_vm2, %v1549_v1, 0.0 }
 0x3bf   : > { %728 = vadd.xlane.f32.xlu0 %v727_v2 }
 0x3d5   : > { %1504 = vrot.lane.b32.xlu0 %v1701_v3, %s1578_s21 }
 0x3e7   : > { %v516_v7 = vpop.xlane.xlu1 %515 }
 0x3e8   : > { %v518_v8 = vsub.f32 %v510_v54, %v516_v7 }
 0x3ea   : > { %v521_v9 = vmul.f32 1.442695, %v518_v8 }
 0x3ec   : > { %1550 = vpow2.f32 %v521_v9  ;;  %v1058_v9 = vld [vmem:[%s1810_s1] sm:$0xff] }
 0x3f4   : > { %512 = vmax.xlane.f32.xlu0 %v511_v11  ;;  %v1060_v11 = vld [vmem:[%s1810_s1 + $0x10] sm:$0xff] }
 0x3f6   : > { %v1706_v12 = vpop.eup %1550 }
 0x3f7   : > { %v526_v13 = vsel %vm314_vm2, %v1706_v12, 0.0 }
 0x3f8   : > { %527 = vadd.xlane.f32.xlu1 %v526_v13  ;;  %v1061_v13 = vld [vmem:[%s1810_s1 + $0x18] sm:$0xff] }
 0x448   : > { %v732_v14 = vpop.xlane.xlu0 %731 }
 0x449   : > { %1552 = vrcp.f32 %v732_v14  ;;  %v1453_v14 = vpack.c.bf16 %v1061_v13, %v1060_v11 }
 0x44c   : > { %v729_v15 = vpop.xlane.xlu0 %728 }
 0x44d   : > { %1554 = vrcp.f32 %v729_v15  ;;  %v1062_v15 = vld [vmem:[%s1810_s1 + $0x20] sm:$0xff] }
 0x44e   : > { %v1457_v17 = vpack.c.bf16 %v1063_v16, %v1062_v15 }
 0x450   : > { %v1505_v18 = vpop.permute.xlu0 %1504 }
 0x451   : > { %v1507_v19 = vunpack.i.h.bf16 %v1505_v18  ;;  %v1506_v20 = vunpack.i.l.bf16 %v1505_v18  ;;  %v1064_v18 = vld [vmem:[%s1810_s1 + $0x30] sm:$0xff] }
 0x453   : > { %v1435_v22 = vpack.c.bf16 %v1507_v19, %v1506_v20  ;;  %v1553_v23 = vpop.eup %1552  ;;  %v1065_v19 = vld [vmem:[%s1810_s1 + $0x38] sm:$0xff] }
 0x454   : > { %v736_v26 = vmul.f32 %v1553_v23, %v1547_v62  ;;  %v1461_v20 = vpack.c.bf16 %v1065_v19, %v1064_v18 }
 0x455   : > { %1436 = vmatprep.subr.bf16.mxu1 %v1435_v22 }
 0x456   : > { %1438 = vmatpush3.bf16.msra.mxu1 %v1435_v22  ;;  %v1067_v22 = vld [vmem:[%s1810_s1 + $0x48] sm:$0xff] }
 0x457   : > { %v1555_v24 = vpop.eup %1554  ;;  %1441 = vmatprep.subr.msk.bf16.mxu1 %vm1624_vm1, %v1439_v21 }
 0x458   : > { %v734_v25 = vmul.f32 %v1555_v24, %v1549_v1  ;;  %v1068_v24 = vld [vmem:[%s1810_s1 + $0x50] sm:$0xff] }
 0x45a   : > { %1357 = vmatprep.mubr.msk.f32.mxu1 %vm314_vm2, %v734_v25  ;;  %v1069_v25 = vld [vmem:[%s1810_s1 + $0x58] sm:$0xff] }
 0x45b   : > { %1358 = vmatmul.mubr.msk.f32.vlgmr.msra.gmra.mrb[8].mxu1 %vm314_vm2, %v736_v26  ;;  %v1469_v26 = vpack.c.bf16 %v1069_v25, %v1068_v24 }
 0x45c   : > { %1364 = vmatprep.mubr.msk.f32.mxu1 %vm224_vm0, %v825_v5 }
 0x45f   : > { %1444 = vmatpush3.bf16.xpose.msk.msra.mxu1 %vm1624_vm1, %v1439_v21  ;;  %v1066_v21 = vld [vmem:[%s1810_s1 + $0x40] sm:$0xff] }
 0x460   : > { %v1465_v23 = vpack.c.bf16 %v1067_v22, %v1066_v21 }
 0x466   : > { %1365 = vmatmul.mubr.msk.f32.vlgmr.msra.gmra.mrb[10].mxu1 %vm224_vm0, %v827_v6 }
 0x481   : > { %v513_v27 = vpop.xlane.xlu0 %512 }
 0x482   : > { %v517_v30 = vsub.f32 %v509_v10, %v513_v27  ;;  %v1059_v10 = vld [vmem:[%s1810_s1 + $0x8] sm:$0xff]  ;;  %v1070_v27 = vld [vmem:[%s1810_s1 + $0x60] sm:$0xff] }
 0x484   : > { %v519_v32 = vmul.f32 1.442695, %v517_v30  ;;  %v1071_v30 = vld [vmem:[%s1810_s1 + $0x68] sm:$0xff] }
 0x485   : > { %v528_v55 = vpop.xlane.xlu1 %527 }
 0x486   : > { %1556 = vpow2.f32 %v519_v32  ;;  %v1473_v32 = vpack.c.bf16 %v1071_v30, %v1070_v27 }
 0x490   : > { %v1557_v38 = vpop.eup %1556 }
 0x491   : > { %v523_v39 = vsel %vm314_vm2, %v1557_v38, 0.0 }
 0x52e   : > { %v1718_v28 = vpop.f32.mrb[8].mxu1 }
 0x52f   : > { %v1720_v29 = vpop.f32.mrb[9].mxu1 }
 0x530   : > { %v1528_v31 = vpack.i.bf16 %v1718_v28, %v1720_v29 }
 0x539   : > { %v1366_v33 = vpop.f32.mrb[10].mxu1 }
 0x53a   : > { %v906_v34 = vpop.f32.mrb[11].mxu1  ;;  %v916_v36 = vmul.f32 0.17677669, %v1366_v33  ;;  %v1072_v33 = vld [vmem:[%s1810_s1 + $0x70] sm:$0xff] }
 0x53b   : > { %v915_v35 = vmul.f32 0.17677669, %v906_v34  ;;  %v1073_v34 = vld [vmem:[%s1810_s1 + $0x78] sm:$0xff] }
 0x53c   : > { %v920_v37 = vsel %vm314_vm2, %v916_v36, -inf }
 0x53d   : > { %v917_v0 = vsel %vm314_vm2, %v915_v35, -inf }
 0x53e   : > { %918 = vmax.xlane.f32.xlu0 %v917_v0 }
 0x542   : > { %921 = vmax.xlane.f32.xlu0 %v920_v37 }
 0x546   : > { %524 = vadd.xlane.f32.xlu0 %v523_v39 }
 0x5cb   : > { %v919_v40 = vpop.xlane.xlu0 %918 }
 0x5cc   : > { %v923_v41 = vsub.f32 %v915_v35, %v919_v40  ;;  %v1477_v35 = vpack.c.bf16 %v1073_v34, %v1072_v33 }
 0x5ce   : > { %v925_v42 = vmul.f32 1.442695, %v923_v41 }
 0x5cf   : > { %v922_v43 = vpop.xlane.xlu0 %921 }
 0x5d0   : > { %1558 = vpow2.f32 %v925_v42  ;;  %v924_v46 = vsub.f32 %v916_v36, %v922_v43 }
 0x5d2   : > { %v927_v47 = vmul.f32 1.442695, %v924_v46 }
 0x5d3   : > { %v525_v48 = vpop.xlane.xlu0 %524 }
 0x5d4   : > { %1560 = vpow2.f32 %v927_v47 }
 0x5d5   : > { %1562 = vrcp.f32 %v525_v48 }
 0x5d6   : > { %1564 = vrcp.f32 %v528_v55 }
 0x5da   : > { %v1559_v49 = vpop.eup %1558 }
 0x5db   : > { %v929_v50 = vsel %vm314_vm2, %v1559_v49, 0.0 }
 0x5dc   : > { %930 = vadd.xlane.f32.xlu0 %v929_v50 }
 0x5de   : > { %v1561_v51 = vpop.eup %1560 }
 0x5df   : > { %v1563_v52 = vpop.eup %1562  ;;  %v932_v53 = vsel %vm314_vm2, %v1561_v51, 0.0 }
 0x5e0   : > { %933 = vadd.xlane.f32.xlu1 %v932_v53  ;;  %v530_v54 = vmul.f32 %v1563_v52, %v1557_v38  ;;  %v1565_v62 = vpop.eup %1564 }
 0x5e2   : > { %1343 = vmatprep.mubr.msk.f32.mxu0 %vm314_vm2, %v530_v54 }
 0x5f1   : > { %1519 = vrot.lane.b32.xlu1 %v1701_v3, %s1580_s23 }
 0x5f2   : > { %1514 = vrot.lane.b32.xlu0 %v1701_v3, %s1579_s22  ;;  %v532_v3 = vmul.f32 %v1565_v62, %v1706_v12  ;;  %v1449_v12 = vpack.c.bf16 %v1059_v10, %v1058_v9 }
 0x669   : > { %v931_v56 = vpop.xlane.xlu0 %930 }
 0x66a   : > { %1566 = vrcp.f32 %v931_v56 }
 0x66d   : > { %v934_v57 = vpop.xlane.xlu1 %933  ;;  %v1515_v58 = vpop.permute.xlu0 %1514 }
 0x66e   : > { %1568 = vrcp.f32 %v934_v57  ;;  %v1517_v59 = vunpack.i.h.bf16 %v1515_v58  ;;  %v1516_v60 = vunpack.i.l.bf16 %v1515_v58 }
 0x670   : > { %v1425_v61 = vpack.c.bf16 %v1517_v59, %v1516_v60 }
 0x671   : > { %v1520_v63 = vpop.permute.xlu1 %1519 }
 0x672   : > { %v1522_v1 = vunpack.i.h.bf16 %v1520_v63  ;;  %v1521_v2 = vunpack.i.l.bf16 %v1520_v63  ;;  %1426 = vmatprep.subr.bf16.mxu0 %v1425_v61 }
 0x673   : > { %1428 = vmatpush3.bf16.msra.mxu0 %v1425_v61 }
 0x674   : > { %v1567_v4 = vpop.eup %1566  ;;  %v1445_v5 = vpack.c.bf16 %v1522_v1, %v1521_v2 }
 0x675   : > { %v936_v6 = vmul.f32 %v1567_v4, %v1559_v49 }
 0x676   : > { %1344 = vmatmul.mubr.msk.f32.vlgmr.msra.gmra.mrb[0].mxu0 %vm314_vm2, %v532_v3  ;;  %1446 = vmatprep.subr.bf16.mxu0 %v1445_v5 }
 0x677   : > { %1448 = vmatpush3.bf16.msra.mxu0 %v1445_v5  ;;  %1371 = vmatprep.mubr.msk.f32.mxu0 %vm314_vm2, %v936_v6 }
 0x678   : > { %v1569_v7 = vpop.eup %1568  ;;  %1450 = vmatprep.subr.bf16.mxu0 %v1449_v12 }
 0x679   : > { %v938_v8 = vmul.f32 %v1569_v7, %v1561_v51 }
 0x67b   : > { %1372 = vmatmul.mubr.msk.f32.vlgmr.msra.gmra.mrb[2].mxu0 %vm314_vm2, %v938_v8 }
 0x67c   : > { %1452 = vmatpush3.bf16.msra.mxu0 %v1449_v12 }
 0x67d   : > { %1454 = vmatprep.subr.bf16.mxu0 %v1453_v14 }
 0x680   : > { %1456 = vmatpush3.bf16.msra.mxu0 %v1453_v14 }
 0x681   : > { %1458 = vmatprep.subr.bf16.mxu0 %v1457_v17 }
 0x684   : > { %1460 = vmatpush3.bf16.msra.mxu0 %v1457_v17 }
 0x685   : > { %1462 = vmatprep.subr.bf16.mxu0 %v1461_v20 }
 0x688   : > { %1464 = vmatpush3.bf16.msra.mxu0 %v1461_v20 }
 0x689   : > { %1466 = vmatprep.subr.bf16.mxu0 %v1465_v23 }
 0x68c   : > { %1468 = vmatpush3.bf16.msra.mxu0 %v1465_v23 }
 0x68d   : > { %1470 = vmatprep.subr.bf16.mxu0 %v1469_v26 }
 0x690   : > { %1472 = vmatpush3.bf16.msra.mxu0 %v1469_v26 }
 0x691   : > { %1474 = vmatprep.subr.bf16.mxu0 %v1473_v32 }
 0x694   : > { %1476 = vmatpush3.bf16.msra.mxu0 %v1473_v32 }
 0x695   : > { %1478 = vmatprep.subr.bf16.mxu0 %v1477_v35 }
 0x698   : > { %1480 = vmatpush3.bf16.msra.mxu0 %v1477_v35 }
 0x749   : > { %v1345_v36 = vpop.f32.mrb[0].mxu0 }
 0x74a   : > { %v613_v0 = vpop.f32.mrb[1].mxu0 }
 0x74b   : > { %v1523_v37 = vpack.i.bf16 %v1345_v36, %v613_v0 }
 0x74d   : > { %1524 = vrot.lane.b32.xlu1 %v1523_v37, %s1580_s23 }
 0x74e   : > { %v1373_v38 = vpop.f32.mrb[2].mxu0 }
 0x74f   : > { %v1017_v39 = vpop.f32.mrb[3].mxu0 }
 0x750   : > { %v1533_v40 = vpack.i.bf16 %v1373_v38, %v1017_v39 }
 0x751   : > { %1529 = vrot.lane.b32.xlu1 %v1528_v31, %s1578_s21  ;;  %s1266_s21 = sshll.u32 %s1817_s16, 4 }
 0x752   : > { %1534 = vrot.lane.b32.xlu0 %v1533_v40, %s1579_s22  ;;  %s212_s9 = scalar_lea.vmem %s1812_s3, %s1266_s21  ;;  %s217_s14 = scalar_lea.vmem %s1813_s4, %s1266_s21 }
 0x753   : > { %v1157_v56 = vld [vmem:[%s212_s9 + $0x8] sm:$0xff] }
 0x7bf   : > { %v1525_v41 = vpop.permute.xlu1 %1524 }
 0x7c0   : > { %v1527_v42 = vunpack.i.h.bf16 %v1525_v41  ;;  %v1526_v43 = vunpack.i.l.bf16 %v1525_v41 }
 0x7c2   : > { %v1051_v50 = vsel %vm224_vm0, %v1684_v44, %v1527_v42  ;;  %v1050_v28 = vsel %vm224_vm0, %v1686_v45, %v1526_v43  ;;  %v1263_v44 = vld [vmem:[%s1811_s2] ss:$0 sm:$0xff] }
 0x7c3   : > { %v1530_v46 = vpop.permute.xlu1 %1529  ;;  %v1156_v45 = vld [vmem:[%s212_s9] sm:$0xff] }
 0x7c4   : > { %v1532_v47 = vunpack.i.h.bf16 %v1530_v46  ;;  %v1531_v48 = vunpack.i.l.bf16 %v1530_v46  ;;  %v1535_v49 = vpop.permute.xlu0 %1534 }
 0x7c5   : > { %v1537_v51 = vunpack.i.h.bf16 %v1535_v49  ;;  %v1536_v52 = vunpack.i.l.bf16 %v1535_v49 }
 0x7c6   : > { %v1054_v29 = vsel %vm1052_vm3, %v1051_v50, %v1532_v47  ;;  %v1053_v31 = vsel %vm1052_vm3, %v1050_v28, %v1531_v48 }
 0x7c7   : > { %v1056_v53 = vsel %vm1055_vm4, %v1053_v31, %v1536_v52  ;;  %v1057_v54 = vsel %vm1055_vm4, %v1054_v29, %v1537_v51 }
 0x7c8   : > { %1406 = vmatprep.mubr.f32.mxu0 %v1056_v53 }
 0x7c9   : > { %1407 = vmatmul.mubr.f32.vlgmr.msra.gmra.mrb[4].mxu0 %v1057_v54 }
 0x89c   : > { %v1408_v55 = vpop.f32.mrb[4].mxu0 }
 0x89d   : > { %v1153_v57 = vadd.f32 %v1408_v55, %v1263_v44  ;;  %v1147_v58 = vpop.f32.mrb[5].mxu0 }
 0x89e   : > { %v1148_v59 = vadd.f32 %v1263_v44, %v1147_v58 }
 0x89f   : > { %v1159_v60 = vadd.f32 %v1157_v56, %v1153_v57 }
 0x8a0   : > { %v1158_v61 = vadd.f32 %v1156_v45, %v1148_v59 }
 0x8a1   : > { %1161 = vst [vmem:[%s217_s14 + $0x8] sm:$0xff] %v1159_v60 }
 0x8a2   : > { %1160 = vst [vmem:[%s217_s14] sm:$0xff] %v1158_v61 }
 0x8a3 PF: > { %s14_s15 = sadd.s32 1, %s1576_s15  }
 0x8a4   : > { %p11_p4 = scmp.ge.s32.totalorder %s14_s15, 4  }
 0x8a6   :  { %13 = sbr.rel (!%p11_p4) target bundleno = 1 (0x1), region = 69 }

// kernel: a_call__.11
= control target key start
LH: loop header
LB: loop body
LE: loop exit
PB: predicated region body
PF: predicated region fallthrough
CT: control target
= control target key end

     0   :  { %s430_s1 = inlined_call_operand.vmem [shape: f32[256,128], index: 1, kind: input, shape index: {}]   ;;  %s431_s0 = inlined_call_operand.vmem [shape: f32[32,256], index: 0, kind: input, shape index: {}]   ;;  %s432_s2 = inlined_call_operand.vmem [shape: f32[1,128], index: 2, kind: input, shape index: {}]   ;;  %s433_s3 = inlined_call_operand.vmem [shape: f32[32,128], index: 3, kind: input, shape index: {}]   ;;  %s434_s4 = inlined_call_operand.vmem [shape: f32[32,128], index: 4, kind: output, shape index: {}]  }
   0x1   :  { %v41_v0 = vld [vmem:[%s430_s1 + $0x80] sm:$0xff]  ;;  %v42_v1 = vld [vmem:[%s430_s1 + $0x88] sm:$0xff]  ;;  %v43_v5 = vld [vmem:[%s430_s1 + $0x90] sm:$0xff] }
   0x2   :  { %v25_v2 = vld [vmem:[%s430_s1] sm:$0xff]  ;;  %v210_v3 = vpack.c.bf16 %v42_v1, %v41_v0  ;;  %v26_v4 = vld [vmem:[%s430_s1 + $0x8] sm:$0xff]  ;;  %v44_v6 = vld [vmem:[%s430_s1 + $0x98] sm:$0xff] }
   0x3   :  { %v212_v7 = vpack.c.bf16 %v26_v4, %v25_v2  ;;  %v214_v8 = vpack.c.bf16 %v44_v6, %v43_v5  ;;  %v27_v9 = vld [vmem:[%s430_s1 + $0x10] sm:$0xff]  ;;  %v28_v10 = vld [vmem:[%s430_s1 + $0x18] sm:$0xff]  ;;  %v45_v11 = vld [vmem:[%s430_s1 + $0xa0] sm:$0xff] }
   0x4   :  { %211 = vmatprep.subr.bf16.mxu0 %v210_v3  ;;  %242 = vmatprep.subr.bf16.mxu1 %v210_v3  ;;  %v46_v12 = vld [vmem:[%s430_s1 + $0xa8] sm:$0xff]  ;;  %v216_v13 = vpack.c.bf16 %v28_v10, %v27_v9  ;;  %v29_v15 = vld [vmem:[%s430_s1 + $0x20] sm:$0xff]  ;;  %v47_v17 = vld [vmem:[%s430_s1 + $0xb0] sm:$0xff] }
   0x5   :  { %213 = vmatpush3.bf16.msra.mxu0 %v212_v7  ;;  %250 = vmatpush3.bf16.msra.mxu1 %v212_v7  ;;  %v218_v14 = vpack.c.bf16 %v46_v12, %v45_v11  ;;  %v30_v16 = vld [vmem:[%s430_s1 + $0x28] sm:$0xff]  ;;  %v48_v18 = vld [vmem:[%s430_s1 + $0xb8] sm:$0xff]  ;;  %v31_v21 = vld [vmem:[%s430_s1 + $0x30] sm:$0xff] }
   0x6   :  { %215 = vmatprep.subr.bf16.mxu0 %v214_v8  ;;  %243 = vmatprep.subr.bf16.mxu1 %v214_v8  ;;  %v220_v19 = vpack.c.bf16 %v30_v16, %v29_v15  ;;  %v222_v20 = vpack.c.bf16 %v48_v18, %v47_v17  ;;  %v32_v22 = vld [vmem:[%s430_s1 + $0x38] sm:$0xff]  ;;  %v49_v23 = vld [vmem:[%s430_s1 + $0xc0] sm:$0xff]  ;;  %v50_v24 = vld [vmem:[%s430_s1 + $0xc8] sm:$0xff] }
   0x7   :  { %v18_v25 = vld [vmem:[%s431_s0 + $0x8] sm:$0xff]  ;;  %v224_v27 = vpack.c.bf16 %v32_v22, %v31_v21  ;;  %v226_v28 = vpack.c.bf16 %v50_v24, %v49_v23  ;;  %v33_v29 = vld [vmem:[%s430_s1 + $0x40] sm:$0xff]  ;;  %v51_v31 = vld [vmem:[%s430_s1 + $0xd0] sm:$0xff] }
   0x8   :  { %128 = vmatprep.mubr.f32.mxu0 %v18_v25  ;;  %v22_v26 = vld [vmem:[%s431_s0 + $0x28] sm:$0xff]  ;;  %v52_v32 = vld [vmem:[%s430_s1 + $0xd8] sm:$0xff]  ;;  %v35_v35 = vld [vmem:[%s430_s1 + $0x50] sm:$0xff] }
   0x9   :  { %217 = vmatpush3.bf16.msra.mxu0 %v216_v13  ;;  %251 = vmatpush3.bf16.msra.mxu1 %v216_v13  ;;  %v34_v30 = vld [vmem:[%s430_s1 + $0x48] sm:$0xff]  ;;  %v230_v34 = vpack.c.bf16 %v52_v32, %v51_v31  ;;  %v36_v36 = vld [vmem:[%s430_s1 + $0x58] sm:$0xff]  ;;  %v53_v37 = vld [vmem:[%s430_s1 + $0xe0] sm:$0xff] }
   0xa   :  { %219 = vmatprep.subr.bf16.mxu0 %v218_v14  ;;  %244 = vmatprep.subr.bf16.mxu1 %v218_v14  ;;  %v228_v33 = vpack.c.bf16 %v34_v30, %v33_v29  ;;  %v54_v38 = vld [vmem:[%s430_s1 + $0xe8] sm:$0xff]  ;;  %v232_v39 = vpack.c.bf16 %v36_v36, %v35_v35  ;;  %v37_v41 = vld [vmem:[%s430_s1 + $0x60] sm:$0xff]  ;;  %v55_v43 = vld [vmem:[%s430_s1 + $0xf0] sm:$0xff] }
   0xb   :  { %138 = vmatprep.mubr.f32.mxu1 %v22_v26  ;;  %v234_v40 = vpack.c.bf16 %v54_v38, %v53_v37  ;;  %v38_v42 = vld [vmem:[%s430_s1 + $0x68] sm:$0xff]  ;;  %v56_v44 = vld [vmem:[%s430_s1 + $0xf8] sm:$0xff]  ;;  %v39_v47 = vld [vmem:[%s430_s1 + $0x70] sm:$0xff] }
   0xc   :  { %v236_v45 = vpack.c.bf16 %v38_v42, %v37_v41  ;;  %v238_v46 = vpack.c.bf16 %v56_v44, %v55_v43  ;;  %v40_v48 = vld [vmem:[%s430_s1 + $0x78] sm:$0xff]  ;;  %v17_v50 = vld [vmem:[%s431_s0] sm:$0xff]  ;;  %v19_v54 = vld [vmem:[%s431_s0 + $0x10] sm:$0xff] }
   0xd   :  { %221 = vmatpush3.bf16.msra.mxu0 %v220_v19  ;;  %252 = vmatpush3.bf16.msra.mxu1 %v220_v19  ;;  %v240_v49 = vpack.c.bf16 %v40_v48, %v39_v47  ;;  %v21_v51 = vld [vmem:[%s431_s0 + $0x20] sm:$0xff]  ;;  %v20_v52 = vld [vmem:[%s431_s0 + $0x18] sm:$0xff]  ;;  %v23_v55 = vld [vmem:[%s431_s0 + $0x30] sm:$0xff] }
   0xe   :  { %223 = vmatprep.subr.bf16.mxu0 %v222_v20  ;;  %245 = vmatprep.subr.bf16.mxu1 %v222_v20  ;;  %v24_v53 = vld [vmem:[%s431_s0 + $0x38] sm:$0xff]  ;;  %v165_v58 = vld [vmem:[%s432_s2] ss:$0 sm:$0xff]  ;;  %v151_v0 = vld [vmem:[%s433_s3 + $0x10] sm:$0xff] }
   0xf   :  { %v149_v63 = vld [vmem:[%s433_s3] sm:$0xff]  ;;  %v150_v11 = vld [vmem:[%s433_s3 + $0x8] sm:$0xff]  ;;  %v152_v12 = vld [vmem:[%s433_s3 + $0x18] sm:$0xff] }
  0x11   :  { %225 = vmatpush3.bf16.msra.mxu0 %v224_v27  ;;  %253 = vmatpush3.bf16.msra.mxu1 %v224_v27 }
  0x12   :  { %227 = vmatprep.subr.bf16.mxu0 %v226_v28  ;;  %246 = vmatprep.subr.bf16.mxu1 %v226_v28 }
  0x15   :  { %229 = vmatpush3.bf16.msra.mxu0 %v228_v33  ;;  %254 = vmatpush3.bf16.msra.mxu1 %v228_v33 }
  0x16   :  { %231 = vmatprep.subr.bf16.mxu0 %v230_v34  ;;  %247 = vmatprep.subr.bf16.mxu1 %v230_v34 }
  0x19   :  { %233 = vmatpush3.bf16.msra.mxu0 %v232_v39  ;;  %255 = vmatpush3.bf16.msra.mxu1 %v232_v39 }
  0x1a   :  { %235 = vmatprep.subr.bf16.mxu0 %v234_v40  ;;  %248 = vmatprep.subr.bf16.mxu1 %v234_v40 }
  0x1d   :  { %237 = vmatpush3.bf16.msra.mxu0 %v236_v45  ;;  %256 = vmatpush3.bf16.msra.mxu1 %v236_v45 }
  0x1e   :  { %239 = vmatprep.subr.bf16.mxu0 %v238_v46  ;;  %249 = vmatprep.subr.bf16.mxu1 %v238_v46 }
  0x21   :  { %241 = vmatpush3.bf16.msra.mxu0 %v240_v49  ;;  %257 = vmatpush3.bf16.msra.mxu1 %v240_v49 }
  0x24   :  { %129 = vmatmul.mubr.f32.vlgmr.msra.gmra.mrb[0].mxu0 %v17_v50  ;;  %139 = vmatmul.mubr.f32.vlgmr.msra.gmra.mrb[0].mxu1 %v21_v51 }
  0x25   :  { %133 = vmatprep.mubr.f32.mxu0 %v20_v52  ;;  %143 = vmatprep.mubr.f32.mxu1 %v24_v53 }
  0x28   :  { %134 = vmatmul.mubr.f32.gmra.mrb[2].mxu0 %v19_v54  ;;  %144 = vmatmul.mubr.f32.gmra.mrb[2].mxu1 %v23_v55 }
  0xf7   :  { %v198_v56 = vpop.f32.mrb[0].mxu0  ;;  %v204_v57 = vpop.f32.mrb[0].mxu1 }
  0xf8   :  { %v199_v59 = vpop.f32.mrb[1].mxu0  ;;  %v205_v60 = vpop.f32.mrb[1].mxu1 }
  0xf9   :  { %v200_v61 = vadd.f32 %v199_v59, %v198_v56  ;;  %v206_v62 = vadd.f32 %v205_v60, %v204_v57 }
  0xfb   :  { %v131_v1 = vadd.f32 %v200_v61, %v165_v58  ;;  %v141_v2 = vadd.f32 %v206_v62, %v165_v58  ;;  %v201_v3 = vpop.f32.mrb[2].mxu0  ;;  %v207_v4 = vpop.f32.mrb[2].mxu1 }
  0xfc   :  { %v202_v5 = vpop.f32.mrb[3].mxu0  ;;  %v208_v6 = vpop.f32.mrb[3].mxu1 }
  0xfd   :  { %v153_v7 = vadd.f32 %v149_v63, %v131_v1  ;;  %v155_v8 = vadd.f32 %v151_v0, %v141_v2  ;;  %v203_v9 = vadd.f32 %v202_v5, %v201_v3  ;;  %v209_v10 = vadd.f32 %v208_v6, %v207_v4 }
  0xff   :  { %157 = vst [vmem:[%s434_s4] sm:$0xff] %v153_v7  ;;  %159 = vst [vmem:[%s434_s4 + $0x10] sm:$0xff] %v155_v8  ;;  %v136_v13 = vadd.f32 %v203_v9, %v165_v58  ;;  %v146_v14 = vadd.f32 %v209_v10, %v165_v58 }
 0x101   :  { %v154_v15 = vadd.f32 %v150_v11, %v136_v13  ;;  %v156_v16 = vadd.f32 %v152_v12, %v146_v14 }
 0x103   :  { %158 = vst [vmem:[%s434_s4 + $0x8] sm:$0xff] %v154_v15  ;;  %160 = vst [vmem:[%s434_s4 + $0x18] sm:$0xff] %v156_v16 }

// kernel: a_call__.15
= control target key start
LH: loop header
LB: loop body
LE: loop exit
PB: predicated region body
PF: predicated region fallthrough
CT: control target
= control target key end

     0   :  { %s473_s0 = inlined_call_operand.vmem [shape: f32[32,256], index: 0, kind: input, shape index: {}]   ;;  %s474_s1 = inlined_call_operand.vmem [shape: f32[256,128], index: 1, kind: input, shape index: {}]   ;;  %s475_s2 = inlined_call_operand.vmem [shape: f32[1,128], index: 2, kind: input, shape index: {}]   ;;  %s476_s3 = inlined_call_operand.vmem [shape: f32[32,128], index: 3, kind: input, shape index: {}]   ;;  %s477_s4 = inlined_call_operand.hbm [shape: f32[32,128], index: 4, kind: output, shape index: {}]  }
   0x1   :  { %v42_v0 = vld [vmem:[%s474_s1 + $0x80] sm:$0xff]  ;;  %v43_v1 = vld [vmem:[%s474_s1 + $0x88] sm:$0xff]  ;;  %v44_v5 = vld [vmem:[%s474_s1 + $0x90] sm:$0xff] }
   0x2   :  { %v26_v2 = vld [vmem:[%s474_s1] sm:$0xff]  ;;  %v223_v3 = vpack.c.bf16 %v43_v1, %v42_v0  ;;  %v27_v4 = vld [vmem:[%s474_s1 + $0x8] sm:$0xff]  ;;  %v45_v6 = vld [vmem:[%s474_s1 + $0x98] sm:$0xff] }
   0x3   :  { %v225_v7 = vpack.c.bf16 %v27_v4, %v26_v2  ;;  %v227_v8 = vpack.c.bf16 %v45_v6, %v44_v5  ;;  %v28_v9 = vld [vmem:[%s474_s1 + $0x10] sm:$0xff]  ;;  %v29_v10 = vld [vmem:[%s474_s1 + $0x18] sm:$0xff]  ;;  %v46_v11 = vld [vmem:[%s474_s1 + $0xa0] sm:$0xff] }
   0x4   :  { %224 = vmatprep.subr.bf16.mxu0 %v223_v3  ;;  %255 = vmatprep.subr.bf16.mxu1 %v223_v3  ;;  %v47_v12 = vld [vmem:[%s474_s1 + $0xa8] sm:$0xff]  ;;  %v229_v13 = vpack.c.bf16 %v29_v10, %v28_v9  ;;  %v30_v15 = vld [vmem:[%s474_s1 + $0x20] sm:$0xff]  ;;  %v48_v17 = vld [vmem:[%s474_s1 + $0xb0] sm:$0xff] }
   0x5   :  { %226 = vmatpush3.bf16.msra.mxu0 %v225_v7  ;;  %263 = vmatpush3.bf16.msra.mxu1 %v225_v7  ;;  %v231_v14 = vpack.c.bf16 %v47_v12, %v46_v11  ;;  %v31_v16 = vld [vmem:[%s474_s1 + $0x28] sm:$0xff]  ;;  %v49_v18 = vld [vmem:[%s474_s1 + $0xb8] sm:$0xff]  ;;  %v32_v21 = vld [vmem:[%s474_s1 + $0x30] sm:$0xff] }
   0x6   :  { %228 = vmatprep.subr.bf16.mxu0 %v227_v8  ;;  %256 = vmatprep.subr.bf16.mxu1 %v227_v8  ;;  %v233_v19 = vpack.c.bf16 %v31_v16, %v30_v15  ;;  %v235_v20 = vpack.c.bf16 %v49_v18, %v48_v17  ;;  %v33_v22 = vld [vmem:[%s474_s1 + $0x38] sm:$0xff]  ;;  %v50_v23 = vld [vmem:[%s474_s1 + $0xc0] sm:$0xff]  ;;  %v51_v24 = vld [vmem:[%s474_s1 + $0xc8] sm:$0xff] }
   0x7   :  { %v19_v25 = vld [vmem:[%s473_s0 + $0x8] sm:$0xff]  ;;  %v237_v27 = vpack.c.bf16 %v33_v22, %v32_v21  ;;  %v239_v28 = vpack.c.bf16 %v51_v24, %v50_v23  ;;  %v34_v29 = vld [vmem:[%s474_s1 + $0x40] sm:$0xff] }
   0x8   :  { %129 = vmatprep.mubr.f32.mxu0 %v19_v25  ;;  %v23_v26 = vld [vmem:[%s473_s0 + $0x28] sm:$0xff] }
   0x9   :  { %230 = vmatpush3.bf16.msra.mxu0 %v229_v13  ;;  %264 = vmatpush3.bf16.msra.mxu1 %v229_v13  ;;  %v35_v30 = vld [vmem:[%s474_s1 + $0x48] sm:$0xff] }
   0xa   :  { %232 = vmatprep.subr.bf16.mxu0 %v231_v14  ;;  %257 = vmatprep.subr.bf16.mxu1 %v231_v14 }
   0xd   :  { %234 = vmatpush3.bf16.msra.mxu0 %v233_v19  ;;  %265 = vmatpush3.bf16.msra.mxu1 %v233_v19 }
   0xe   :  { %236 = vmatprep.subr.bf16.mxu0 %v235_v20  ;;  %258 = vmatprep.subr.bf16.mxu1 %v235_v20 }
   0xf   :  { %9 = vsyncpa [#allocation3], 0  ;;  %v52_v31 = vld [vmem:[%s474_s1 + $0xd0] sm:$0xff]  ;;  %v53_v32 = vld [vmem:[%s474_s1 + $0xd8] sm:$0xff]  ;;  %139 = vmatprep.mubr.f32.mxu1 %v23_v26  ;;  %v241_v33 = vpack.c.bf16 %v35_v30, %v34_v29 }
  0x10   :  { %v243_v34 = vpack.c.bf16 %v53_v32, %v52_v31  ;;  %v36_v35 = vld [vmem:[%s474_s1 + $0x50] sm:$0xff]  ;;  %v37_v36 = vld [vmem:[%s474_s1 + $0x58] sm:$0xff]  ;;  %v54_v37 = vld [vmem:[%s474_s1 + $0xe0] sm:$0xff] }
  0x11   :  { %238 = vmatpush3.bf16.msra.mxu0 %v237_v27  ;;  %266 = vmatpush3.bf16.msra.mxu1 %v237_v27  ;;  %v55_v38 = vld [vmem:[%s474_s1 + $0xe8] sm:$0xff]  ;;  %v245_v39 = vpack.c.bf16 %v37_v36, %v36_v35  ;;  %v38_v41 = vld [vmem:[%s474_s1 + $0x60] sm:$0xff]  ;;  %v56_v43 = vld [vmem:[%s474_s1 + $0xf0] sm:$0xff] }
  0x12   :  { %240 = vmatprep.subr.bf16.mxu0 %v239_v28  ;;  %259 = vmatprep.subr.bf16.mxu1 %v239_v28  ;;  %v247_v40 = vpack.c.bf16 %v55_v38, %v54_v37  ;;  %v39_v42 = vld [vmem:[%s474_s1 + $0x68] sm:$0xff]  ;;  %v57_v44 = vld [vmem:[%s474_s1 + $0xf8] sm:$0xff]  ;;  %v40_v47 = vld [vmem:[%s474_s1 + $0x70] sm:$0xff] }
  0x13   :  { %v249_v45 = vpack.c.bf16 %v39_v42, %v38_v41  ;;  %v251_v46 = vpack.c.bf16 %v57_v44, %v56_v43  ;;  %v41_v48 = vld [vmem:[%s474_s1 + $0x78] sm:$0xff]  ;;  %v18_v50 = vld [vmem:[%s473_s0] sm:$0xff]  ;;  %v20_v54 = vld [vmem:[%s473_s0 + $0x10] sm:$0xff] }
  0x14   :  { %v253_v49 = vpack.c.bf16 %v41_v48, %v40_v47  ;;  %v22_v51 = vld [vmem:[%s473_s0 + $0x20] sm:$0xff]  ;;  %v21_v52 = vld [vmem:[%s473_s0 + $0x18] sm:$0xff]  ;;  %v24_v55 = vld [vmem:[%s473_s0 + $0x30] sm:$0xff] }
  0x15   :  { %242 = vmatpush3.bf16.msra.mxu0 %v241_v33  ;;  %267 = vmatpush3.bf16.msra.mxu1 %v241_v33  ;;  %v25_v53 = vld [vmem:[%s473_s0 + $0x38] sm:$0xff]  ;;  %v178_v58 = vld [vmem:[%s475_s2] ss:$0 sm:$0xff]  ;;  %v152_v0 = vld [vmem:[%s476_s3 + $0x10] sm:$0xff]  ;;  %s298_s0 = smov [#allocation2]  }
  0x16   :  { %244 = vmatprep.subr.bf16.mxu0 %v243_v34  ;;  %260 = vmatprep.subr.bf16.mxu1 %v243_v34  ;;  %v150_v63 = vld [vmem:[%s476_s3] sm:$0xff]  ;;  %s167_s2 = sshll.u32 %s298_s0, 4  ;;  %v151_v11 = vld [vmem:[%s476_s3 + $0x8] sm:$0xff]  ;;  %v153_v12 = vld [vmem:[%s476_s3 + $0x18] sm:$0xff]  ;;  %s168_s2 = int_to_ptr.vmem [resolvable:$true] %s167_s2 }
  0x17   :  { %s274_s26 = scalar_lea.vmem %s168_s2, 512  ;;  %p279_p1 = scmp.lt.s32.totalorder %s168_s2, %s168_s2 }
  0x18   :  { %p275_p0 = scmp.ne.s32.totalorder %s168_s2, %s274_s26  ;;  %p280_p2 = scmp.lt.s32.totalorder %s274_s26, %s274_s26 }
  0x19   :  { %246 = vmatpush3.bf16.msra.mxu0 %v245_v39  ;;  %268 = vmatpush3.bf16.msra.mxu1 %v245_v39 }
  0x1a   :  { %248 = vmatprep.subr.bf16.mxu0 %v247_v40  ;;  %261 = vmatprep.subr.bf16.mxu1 %v247_v40  ;;  %p281_p3 = por %p280_p2, %p279_p1 }
  0x1c   :  { %p282_p4 = pnand %p281_p3, %p275_p0 }
  0x1d   :  { %250 = vmatpush3.bf16.msra.mxu0 %v249_v45  ;;  %269 = vmatpush3.bf16.msra.mxu1 %v249_v45 }
  0x1e   :  { %252 = vmatprep.subr.bf16.mxu0 %v251_v46  ;;  %262 = vmatprep.subr.bf16.mxu1 %v251_v46 }
  0x21   :  { %254 = vmatpush3.bf16.msra.mxu0 %v253_v49  ;;  %270 = vmatpush3.bf16.msra.mxu1 %v253_v49 }
  0x24   :  { %130 = vmatmul.mubr.f32.vlgmr.msra.gmra.mrb[0].mxu0 %v18_v50  ;;  %140 = vmatmul.mubr.f32.vlgmr.msra.gmra.mrb[0].mxu1 %v22_v51 }
  0x25   :  { %134 = vmatprep.mubr.f32.mxu0 %v21_v52  ;;  %144 = vmatprep.mubr.f32.mxu1 %v25_v53 }
  0x28   :  { %135 = vmatmul.mubr.f32.gmra.mrb[2].mxu0 %v20_v54  ;;  %145 = vmatmul.mubr.f32.gmra.mrb[2].mxu1 %v24_v55 }
  0xf7   :  { %v211_v56 = vpop.f32.mrb[0].mxu0  ;;  %v217_v57 = vpop.f32.mrb[0].mxu1 }
  0xf8   :  { %v212_v59 = vpop.f32.mrb[1].mxu0  ;;  %v218_v60 = vpop.f32.mrb[1].mxu1 }
  0xf9   :  { %v213_v61 = vadd.f32 %v212_v59, %v211_v56  ;;  %v219_v62 = vadd.f32 %v218_v60, %v217_v57 }
  0xfb   :  { %v132_v1 = vadd.f32 %v213_v61, %v178_v58  ;;  %v142_v2 = vadd.f32 %v219_v62, %v178_v58  ;;  %v214_v3 = vpop.f32.mrb[2].mxu0  ;;  %v220_v4 = vpop.f32.mrb[2].mxu1 }
  0xfc   :  { %v215_v5 = vpop.f32.mrb[3].mxu0  ;;  %v221_v6 = vpop.f32.mrb[3].mxu1 }
  0xfd   :  { %v154_v7 = vadd.f32 %v150_v63, %v132_v1  ;;  %v156_v8 = vadd.f32 %v152_v0, %v142_v2  ;;  %v216_v9 = vadd.f32 %v215_v5, %v214_v3  ;;  %v222_v10 = vadd.f32 %v221_v6, %v220_v4 }
  0xff   :  { %158 = vst [vmem:[#allocation2] sm:$0xff] %v154_v7  ;;  %160 = vst [vmem:[#allocation2 + $0x10] sm:$0xff] %v156_v8  ;;  %v137_v13 = vadd.f32 %v216_v9, %v178_v58  ;;  %v147_v14 = vadd.f32 %v222_v10, %v178_v58 }
 0x101   :  { %v155_v15 = vadd.f32 %v151_v11, %v137_v13  ;;  %v157_v16 = vadd.f32 %v153_v12, %v147_v14 }
 0x103   :  { %159 = vst [vmem:[#allocation2 + $0x8] sm:$0xff] %v155_v15  ;;  %161 = vst [vmem:[#allocation2 + $0x18] sm:$0xff] %v157_v16 }
 0x104   :  { %285 = shalt.err (!%p282_p4)
}
 0x105   :  { %s286_s3 = scalar_lea.hbm %s477_s4, 512 }
 0x106   :  { %p287_p5 = scmp.ne.s32.totalorder %s477_s4, %s286_s3  ;;  %p290_p6 = scmp.lt.u32.totalorder %s286_s3, %s477_s4 }
 0x108   :  { %p292_p7 = pnand %p290_p6, %p287_p5 }
 0x10a   :  { %295 = shalt.err (!%p292_p7)
}
 0x10b   :  { %s299_s7 = smov 128   ;;  %s300_s8 = smov 8  }
 0x10c   :  { %173 = dma.vmem_to_hbm [thread:$0]  %s168_s2, 512, %s477_s4, [#allocation3], %s299_s7, %s299_s7, %s300_s8  }
 0x10d   :  { %296 = dma.done.wait [#allocation3], 512  }
 0x10e   :  { %297 = vsyncadd [#allocation3], 4294966784 }
 0x10f   :  { %177 = vsyncpa [#allocation3], 1 }

// kernel: a_call__.12
= control target key start
LH: loop header
LB: loop body
LE: loop exit
PB: predicated region body
PF: predicated region fallthrough
CT: control target
= control target key end

     0   :  { %s754_s0 = inlined_call_operand.vmem [shape: f32[32,128], index: 0, kind: input, shape index: {}]   ;;  %s755_s3 = inlined_call_operand.vmem [shape: f32[128,384], index: 3, kind: input, shape index: {}]   ;;  %s756_s1 = inlined_call_operand.vmem [shape: f32[1,128], index: 1, kind: input, shape index: {}]   ;;  %s757_s2 = inlined_call_operand.vmem [shape: f32[1,128], index: 2, kind: input, shape index: {}]   ;;  %s758_s4 = inlined_call_operand.vmem [shape: f32[1,384], index: 4, kind: input, shape index: {}]   ;;  %s759_s5 = inlined_call_operand.vmem [shape: f32[32,384], index: 5, kind: output, shape index: {}]  }
   0x1   :  { %v528_v0 = vld [vmem:[%s754_s0 + $0x8] sm:$0xff]  ;;  %v533_v1 = vld [vmem:[%s754_s0] sm:$0xff]  ;;  %v550_v6 = vld [vmem:[%s754_s0 + $0x10] sm:$0xff] }
   0x2   :  { %26 = vadd.xlane.f32.xlu1 %v528_v0  ;;  %24 = vadd.xlane.f32.xlu0 %v533_v1  ;;  %v33_v2 = vmul.f32 %v528_v0, %v528_v0  ;;  %v32_v3 = vmul.f32 %v533_v1, %v533_v1  ;;  %v107_v4 = vld [vmem:[%s755_s3 + $0x8] sm:$0xff]  ;;  %v110_v5 = vld [vmem:[%s755_s3 + $0x20] sm:$0xff]  ;;  %v34_v8 = vmul.f32 %v550_v6, %v550_v6  ;;  %v557_v9 = vld [vmem:[%s754_s0 + $0x18] sm:$0xff] }
   0x3   :  { %v421_v7 = vpack.c.bf16 %v110_v5, %v107_v4  ;;  %v35_v10 = vmul.f32 %v557_v9, %v557_v9  ;;  %v106_v11 = vld [vmem:[%s755_s3] sm:$0xff]  ;;  %v109_v12 = vld [vmem:[%s755_s3 + $0x18] sm:$0xff]  ;;  %v108_v13 = vld [vmem:[%s755_s3 + $0x10] sm:$0xff] }
   0x4   :  { %v423_v14 = vpack.c.bf16 %v109_v12, %v106_v11  ;;  %v111_v15 = vld [vmem:[%s755_s3 + $0x28] sm:$0xff]  ;;  %v113_v17 = vld [vmem:[%s755_s3 + $0x38] sm:$0xff]  ;;  %v116_v18 = vld [vmem:[%s755_s3 + $0x50] sm:$0xff]  ;;  %v494_v12 = vmov 0.0  }
   0x5   :  { %422 = vmatprep.subr.bf16.mxu0 %v421_v7  ;;  %v453_v16 = vpack.c.bf16 %v111_v15, %v108_v13  ;;  %v425_v19 = vpack.c.bf16 %v116_v18, %v113_v17  ;;  %v112_v20 = vld [vmem:[%s755_s3 + $0x30] sm:$0xff]  ;;  %v115_v21 = vld [vmem:[%s755_s3 + $0x48] sm:$0xff]  ;;  %v114_v22 = vld [vmem:[%s755_s3 + $0x40] sm:$0xff]  ;;  %235 = vmatprep.mubr.f32.mxu0 %v494_v12 }
   0x6   :  { %38 = vadd.xlane.f32.xlu1 %v33_v2  ;;  %36 = vadd.xlane.f32.xlu0 %v32_v3  ;;  %v427_v23 = vpack.c.bf16 %v115_v21, %v112_v20  ;;  %v117_v24 = vld [vmem:[%s755_s3 + $0x58] sm:$0xff]  ;;  %v119_v26 = vld [vmem:[%s755_s3 + $0x68] sm:$0xff]  ;;  %v122_v27 = vld [vmem:[%s755_s3 + $0x80] sm:$0xff] }
   0x7   :  { %424 = vmatpush1.bf16.msra.mxu0 %v423_v14  ;;  %454 = vmatprep.subr.bf16.mxu1 %v453_v16  ;;  %v457_v25 = vpack.c.bf16 %v117_v24, %v114_v22  ;;  %v429_v28 = vpack.c.bf16 %v122_v27, %v119_v26  ;;  %v118_v29 = vld [vmem:[%s755_s3 + $0x60] sm:$0xff]  ;;  %v121_v30 = vld [vmem:[%s755_s3 + $0x78] sm:$0xff]  ;;  %v120_v31 = vld [vmem:[%s755_s3 + $0x70] sm:$0xff] }
   0x8   :  { %456 = vmatpush3.bf16.msra.mxu1 %v453_v16  ;;  %426 = vmatprep.subr.bf16.mxu0 %v425_v19  ;;  %v431_v32 = vpack.c.bf16 %v121_v30, %v118_v29  ;;  %v123_v33 = vld [vmem:[%s755_s3 + $0x88] sm:$0xff]  ;;  %v125_v35 = vld [vmem:[%s755_s3 + $0x98] sm:$0xff]  ;;  %v128_v36 = vld [vmem:[%s755_s3 + $0xb0] sm:$0xff] }
   0x9   :  { %458 = vmatprep.subr.bf16.mxu1 %v457_v25  ;;  %v461_v34 = vpack.c.bf16 %v123_v33, %v120_v31  ;;  %v433_v37 = vpack.c.bf16 %v128_v36, %v125_v35  ;;  %v124_v38 = vld [vmem:[%s755_s3 + $0x90] sm:$0xff]  ;;  %v127_v39 = vld [vmem:[%s755_s3 + $0xa8] sm:$0xff]  ;;  %v126_v40 = vld [vmem:[%s755_s3 + $0xa0] sm:$0xff] }
   0xa   :  { %28 = vadd.xlane.f32.xlu0 %v550_v6  ;;  %40 = vadd.xlane.f32.xlu1 %v34_v8  ;;  %v435_v41 = vpack.c.bf16 %v127_v39, %v124_v38  ;;  %v129_v42 = vld [vmem:[%s755_s3 + $0xb8] sm:$0xff]  ;;  %v131_v44 = vld [vmem:[%s755_s3 + $0xc8] sm:$0xff]  ;;  %v134_v45 = vld [vmem:[%s755_s3 + $0xe0] sm:$0xff] }
   0xb   :  { %428 = vmatpush1.bf16.msra.mxu0 %v427_v23  ;;  %v465_v43 = vpack.c.bf16 %v129_v42, %v126_v40  ;;  %v437_v46 = vpack.c.bf16 %v134_v45, %v131_v44  ;;  %v130_v47 = vld [vmem:[%s755_s3 + $0xc0] sm:$0xff]  ;;  %v133_v48 = vld [vmem:[%s755_s3 + $0xd8] sm:$0xff]  ;;  %v132_v49 = vld [vmem:[%s755_s3 + $0xd0] sm:$0xff] }
   0xc   :  { %460 = vmatpush3.bf16.msra.mxu1 %v457_v25  ;;  %430 = vmatprep.subr.bf16.mxu0 %v429_v28  ;;  %v439_v50 = vpack.c.bf16 %v133_v48, %v130_v47  ;;  %v135_v51 = vld [vmem:[%s755_s3 + $0xe8] sm:$0xff]  ;;  %v137_v53 = vld [vmem:[%s755_s3 + $0xf8] sm:$0xff]  ;;  %v140_v54 = vld [vmem:[%s755_s3 + $0x110] sm:$0xff] }
   0xd   :  { %462 = vmatprep.subr.bf16.mxu1 %v461_v34  ;;  %v469_v52 = vpack.c.bf16 %v135_v51, %v132_v49  ;;  %v441_v55 = vpack.c.bf16 %v140_v54, %v137_v53  ;;  %v136_v56 = vld [vmem:[%s755_s3 + $0xf0] sm:$0xff]  ;;  %v139_v57 = vld [vmem:[%s755_s3 + $0x108] sm:$0xff]  ;;  %v138_v58 = vld [vmem:[%s755_s3 + $0x100] sm:$0xff] }
   0xe   :  { %30 = vadd.xlane.f32.xlu0 %v557_v9  ;;  %42 = vadd.xlane.f32.xlu1 %v35_v10  ;;  %v443_v59 = vpack.c.bf16 %v139_v57, %v136_v56  ;;  %v141_v60 = vld [vmem:[%s755_s3 + $0x118] sm:$0xff]  ;;  %v143_v62 = vld [vmem:[%s755_s3 + $0x128] sm:$0xff]  ;;  %v146_v63 = vld [vmem:[%s755_s3 + $0x140] sm:$0xff] }
   0xf   :  { %432 = vmatpush1.bf16.msra.mxu0 %v431_v32  ;;  %v473_v61 = vpack.c.bf16 %v141_v60, %v138_v58  ;;  %v445_v2 = vpack.c.bf16 %v146_v63, %v143_v62  ;;  %v142_v3 = vld [vmem:[%s755_s3 + $0x120] sm:$0xff]  ;;  %v145_v4 = vld [vmem:[%s755_s3 + $0x138] sm:$0xff]  ;;  %v144_v5 = vld [vmem:[%s755_s3 + $0x130] sm:$0xff] }
  0x10   :  { %464 = vmatpush3.bf16.msra.mxu1 %v461_v34  ;;  %434 = vmatprep.subr.bf16.mxu0 %v433_v37  ;;  %v447_v7 = vpack.c.bf16 %v145_v4, %v142_v3  ;;  %v147_v8 = vld [vmem:[%s755_s3 + $0x148] sm:$0xff]  ;;  %v149_v10 = vld [vmem:[%s755_s3 + $0x158] sm:$0xff]  ;;  %v152_v11 = vld [vmem:[%s755_s3 + $0x170] sm:$0xff] }
  0x11   :  { %466 = vmatprep.subr.bf16.mxu1 %v465_v43  ;;  %v477_v13 = vpack.c.bf16 %v147_v8, %v144_v5  ;;  %v449_v14 = vpack.c.bf16 %v152_v11, %v149_v10  ;;  %v148_v15 = vld [vmem:[%s755_s3 + $0x150] sm:$0xff]  ;;  %v151_v16 = vld [vmem:[%s755_s3 + $0x168] sm:$0xff]  ;;  %v150_v17 = vld [vmem:[%s755_s3 + $0x160] sm:$0xff] }
  0x12   :  { %v451_v18 = vpack.c.bf16 %v151_v16, %v148_v15  ;;  %v153_v19 = vld [vmem:[%s755_s3 + $0x178] sm:$0xff]  ;;  %v361_v53 = vld [vmem:[%s756_s1] ss:$0 sm:$0xff] }
  0x13   :  { %436 = vmatpush1.bf16.msra.mxu0 %v435_v41  ;;  %v481_v20 = vpack.c.bf16 %v153_v19, %v150_v17  ;;  %v362_v58 = vld [vmem:[%s757_s2] ss:$0 sm:$0xff] }
  0x14   :  { %468 = vmatpush3.bf16.msra.mxu1 %v465_v43  ;;  %438 = vmatprep.subr.bf16.mxu0 %v437_v46 }
  0x15   :  { %470 = vmatprep.subr.bf16.mxu1 %v469_v52 }
  0x17   :  { %440 = vmatpush1.bf16.msra.mxu0 %v439_v50 }
  0x18   :  { %472 = vmatpush3.bf16.msra.mxu1 %v469_v52  ;;  %442 = vmatprep.subr.bf16.mxu0 %v441_v55 }
  0x19   :  { %474 = vmatprep.subr.bf16.mxu1 %v473_v61 }
  0x1b   :  { %444 = vmatpush1.bf16.msra.mxu0 %v443_v59 }
  0x1c   :  { %476 = vmatpush3.bf16.msra.mxu1 %v473_v61  ;;  %446 = vmatprep.subr.bf16.mxu0 %v445_v2 }
  0x1d   :  { %478 = vmatprep.subr.bf16.mxu1 %v477_v13 }
  0x1f   :  { %448 = vmatpush1.bf16.msra.mxu0 %v447_v7 }
  0x20   :  { %450 = vmatprep.subr.bf16.mxu0 %v449_v14  ;;  %480 = vmatpush3.bf16.msra.mxu1 %v477_v13 }
  0x21   :  { %482 = vmatprep.subr.bf16.mxu1 %v481_v20 }
  0x23   :  { %452 = vmatpush1.bf16.msra.mxu0 %v451_v18 }
  0x24   :  { %484 = vmatpush3.bf16.msra.mxu1 %v481_v20  ;;  %v154_v20 = vld [vmem:[%s758_s4] sm:$0x7] }
  0x8f   :  { %v27_v21 = vpop.xlane.xlu1 %26  ;;  %v25_v22 = vpop.xlane.xlu0 %24 }
  0x90   :  { %v45_v23 = vmul.f32 0.0078125, %v27_v21  ;;  %v44_v24 = vmul.f32 0.0078125, %v25_v22 }
  0x92   :  { %v53_v25 = vmul.f32 %v45_v23, %v45_v23  ;;  %v52_v28 = vmul.f32 %v44_v24, %v44_v24 }
  0x93   :  { %v39_v26 = vpop.xlane.xlu1 %38  ;;  %v37_v27 = vpop.xlane.xlu0 %36 }
  0x94   :  { %v49_v29 = vmul.f32 0.0078125, %v39_v26  ;;  %v48_v30 = vmul.f32 0.0078125, %v37_v27 }
  0x96   :  { %v57_v31 = vsub.f32 %v49_v29, %v53_v25  ;;  %v56_v32 = vsub.f32 %v48_v30, %v52_v28 }
  0x97   :  { %v29_v33 = vpop.xlane.xlu0 %28  ;;  %v41_v34 = vpop.xlane.xlu1 %40 }
  0x98   :  { %v61_v35 = vmax.f32 %v57_v31, 0.0  ;;  %v60_v36 = vmax.f32 %v56_v32, 0.0  ;;  %v46_v37 = vmul.f32 0.0078125, %v29_v33  ;;  %v50_v38 = vmul.f32 0.0078125, %v41_v34 }
  0x9a   :  { %v65_v39 = vadd.f32 1e-05, %v61_v35  ;;  %v64_v40 = vadd.f32 1e-05, %v60_v36  ;;  %v54_v41 = vmul.f32 %v46_v37, %v46_v37 }
  0x9b   :  { %v31_v42 = vpop.xlane.xlu0 %30  ;;  %v43_v43 = vpop.xlane.xlu1 %42 }
  0x9c   :  { %486 = vrsqrt.f32 %v65_v39  ;;  %v58_v44 = vsub.f32 %v50_v38, %v54_v41  ;;  %v47_v45 = vmul.f32 0.0078125, %v31_v42  ;;  %v51_v46 = vmul.f32 0.0078125, %v43_v43 }
  0x9d   :  { %488 = vrsqrt.f32 %v64_v40 }
  0x9e   :  { %v62_v47 = vmax.f32 %v58_v44, 0.0  ;;  %v55_v48 = vmul.f32 %v47_v45, %v47_v45 }
  0xa0   :  { %v66_v49 = vadd.f32 1e-05, %v62_v47  ;;  %v59_v50 = vsub.f32 %v51_v46, %v55_v48 }
  0xa2   :  { %490 = vrsqrt.f32 %v66_v49  ;;  %v63_v51 = vmax.f32 %v59_v50, 0.0 }
  0xa4   :  { %v67_v52 = vadd.f32 1e-05, %v63_v51 }
  0xa6   :  { %v487_v54 = vpop.eup %486  ;;  %492 = vrsqrt.f32 %v67_v52 }
  0xa7   :  { %v489_v55 = vpop.eup %488  ;;  %v80_v56 = vmul.f32 %v487_v54, %v361_v53 }
  0xa8   :  { %v79_v57 = vmul.f32 %v489_v55, %v361_v53 }
  0xa9   :  { %v85_v59 = vmul.f32 %v80_v56, %v45_v23  ;;  %v99_v60 = vmul.f32 %v80_v56, %v528_v0 }
  0xaa   :  { %v84_v61 = vmul.f32 %v79_v57, %v44_v24  ;;  %v98_v3 = vmul.f32 %v79_v57, %v533_v1 }
  0xab   :  { %v95_v62 = vsub.f32 %v362_v58, %v85_v59 }
  0xac   :  { %v491_v63 = vpop.eup %490  ;;  %v94_v2 = vsub.f32 %v362_v58, %v84_v61 }
  0xad   :  { %v103_v4 = vadd.f32 %v99_v60, %v95_v62  ;;  %v81_v5 = vmul.f32 %v491_v63, %v361_v53 }
  0xae   :  { %v102_v7 = vadd.f32 %v98_v3, %v94_v2 }
  0xaf   :  { %v86_v8 = vmul.f32 %v81_v5, %v46_v37  ;;  %v100_v10 = vmul.f32 %v81_v5, %v550_v6  ;;  %v156_v6 = vlaneseq }
  0xb0   :  { %v493_v11 = vpop.eup %492  ;;  %236 = vmatmul.mubr.f32.vlgmr.msra.gmra.mrb[0].mxu0 %v102_v7  ;;  %415 = vmatprep.mubr.f32.mxu1 %v102_v7 }
  0xb1   :  { %416 = vmatmul.mubr.f32.vlgmr.msra.gmra.mrb[0].mxu1 %v103_v4  ;;  %241 = vmatprep.mubr.f32.mxu0 %v494_v12  ;;  %v96_v13 = vsub.f32 %v362_v58, %v86_v8  ;;  %v82_v0 = vmul.f32 %v493_v11, %v361_v53  ;;  %v157_v18 = vshrl.u32 %v156_v6, 7 }
  0xb3   :  { %v104_v14 = vadd.f32 %v100_v10, %v96_v13  ;;  %v87_v15 = vmul.f32 %v82_v0, %v47_v45  ;;  %v101_v16 = vmul.f32 %v82_v0, %v557_v9  ;;  %v158_v19 = vsub.s32 0, %v157_v18 }
  0xb4   :  { %242 = vmatmul.mubr.f32.gmra.mrb[2].mxu0 %v103_v4  ;;  %v162_v21 = vsub.s32 1, %v157_v18  ;;  %v166_v9 = vsub.s32 2, %v157_v18 }
  0xb5   :  { %418 = vmatprep.mubr.f32.mxu1 %v104_v14  ;;  %247 = vmatprep.mubr.f32.mxu0 %v494_v12  ;;  %v97_v1 = vsub.f32 %v362_v58, %v87_v15  ;;  %v159_v22 = vrot.slane %v154_v20, %v158_v19 }
  0xb6   :  { %v163_v23 = vrot.slane %v154_v20, %v162_v21  ;;  %v167_v24 = vrot.slane %v154_v20, %v166_v9 }
  0xb7   :  { %v105_v17 = vadd.f32 %v101_v16, %v97_v1 }
  0xb8   :  { %248 = vmatmul.mubr.f32.gmra.mrb[4].mxu0 %v104_v14 }
  0xb9   :  { %419 = vmatmul.mubr.f32.gmra.mrb[2].mxu1 %v105_v17  ;;  %253 = vmatprep.mubr.f32.mxu0 %v494_v12 }
  0xbc   :  { %254 = vmatmul.mubr.f32.gmra.mrb[6].mxu0 %v105_v17 }
 0x183   :  { %v237_v25 = vpop.f32.mrb[0].mxu0 }
 0x184   :  { %v238_v26 = vadd.f32 %v237_v25, %v159_v22  ;;  %v239_v27 = vpop.f32.mrb[1].mxu0  ;;  %v417_v28 = vpop.f32.mrb[0].mxu1 }
 0x185   :  { %v240_v29 = vadd.f32 %v239_v27, %v163_v23  ;;  %v332_v30 = vadd.f32 %v417_v28, %v167_v24  ;;  %v326_v12 = vpop.f32.mrb[1].mxu1 }
 0x186   :  { %345 = vst [vmem:[%s759_s5] sm:$0xff] %v238_v26  ;;  %v327_v31 = vadd.f32 %v326_v12, %v167_v24 }
 0x187   :  { %346 = vst [vmem:[%s759_s5 + $0x8] sm:$0xff] %v240_v29  ;;  %350 = vst [vmem:[%s759_s5 + $0x28] sm:$0xff] %v332_v30  ;;  %v243_v32 = vpop.f32.mrb[2].mxu0 }
 0x188   :  { %347 = vst [vmem:[%s759_s5 + $0x10] sm:$0xff] %v327_v31  ;;  %v244_v33 = vadd.f32 %v243_v32, %v159_v22  ;;  %v245_v34 = vpop.f32.mrb[3].mxu0 }
 0x189   :  { %v246_v35 = vadd.f32 %v245_v34, %v163_v23 }
 0x18a   :  { %348 = vst [vmem:[%s759_s5 + $0x18] sm:$0xff] %v244_v33 }
 0x18b   :  { %349 = vst [vmem:[%s759_s5 + $0x20] sm:$0xff] %v246_v35  ;;  %v249_v36 = vpop.f32.mrb[4].mxu0 }
 0x18c   :  { %v250_v37 = vadd.f32 %v249_v36, %v159_v22  ;;  %v251_v38 = vpop.f32.mrb[5].mxu0  ;;  %v420_v39 = vpop.f32.mrb[2].mxu1 }
 0x18d   :  { %v252_v40 = vadd.f32 %v251_v38, %v163_v23  ;;  %v342_v41 = vadd.f32 %v420_v39, %v167_v24  ;;  %v336_v42 = vpop.f32.mrb[3].mxu1 }
 0x18e   :  { %351 = vst [vmem:[%s759_s5 + $0x30] sm:$0xff] %v250_v37  ;;  %v337_v43 = vadd.f32 %v336_v42, %v167_v24 }
 0x18f   :  { %352 = vst [vmem:[%s759_s5 + $0x38] sm:$0xff] %v252_v40  ;;  %356 = vst [vmem:[%s759_s5 + $0x58] sm:$0xff] %v342_v41  ;;  %v255_v44 = vpop.f32.mrb[6].mxu0 }
 0x190   :  { %353 = vst [vmem:[%s759_s5 + $0x40] sm:$0xff] %v337_v43  ;;  %v256_v45 = vadd.f32 %v255_v44, %v159_v22  ;;  %v257_v46 = vpop.f32.mrb[7].mxu0 }
 0x191   :  { %v258_v47 = vadd.f32 %v257_v46, %v163_v23 }
 0x192   :  { %354 = vst [vmem:[%s759_s5 + $0x48] sm:$0xff] %v256_v45 }
 0x193   :  { %355 = vst [vmem:[%s759_s5 + $0x50] sm:$0xff] %v258_v47 }

</bundles_post_ra>
